<compile_context>
chip_gen: v7x
topology: tpu7x:2x2x1
jax: 0.10.0
libtpu: 0.0.40
codegen_flags: <defaults>
</compile_context>

<pallas_src>
from functools import partial

import jax
import jax.numpy as jnp
from jax import lax
from jax.experimental import pallas as pl
from jax.experimental.pallas import tpu as pltpu


def _round_up(x, m):
    return (x + m - 1) // m * m


# ----------------------------------------------------------------------------
# Kernel: nb batch images per grid step, NHWC layout, channels padded to
# multiples of 128 (lane-dense).  Each conv pair = k*k accumulated matmuls.
# ----------------------------------------------------------------------------
def _branch_sep_kernel(x_ref, w1_ref, b1_ref, w2_ref, b2_ref, o_ref,
                       pad1_ref, pad2_ref, *, k, pad, w_real):
    nb, H, Wp, _ = x_ref.shape                 # Wp already padded to mult of 8
    cmid_p = w1_ref.shape[2]
    cout_p = w2_ref.shape[2]
    m = nb * H * Wp
    hh = pad1_ref.shape[1]                     # H + 2*pad
    ws = pad1_ref.shape[2]                     # >= Wp + 2*pad, 16-aligned

    # Zero only the halo strips actually read by the taps (a few KB).  Done
    # every step (cheap) so a "parallel" grid axis stays correct on
    # multi-core chips, where each core has its own scratch copy.
    if pad:
        for ref in (pad1_ref, pad2_ref):
            c = ref.shape[-1]
            ref[:, :pad, :, :] = jnp.zeros((nb, pad, ws, c), ref.dtype)
            ref[:, pad + H:, :, :] = jnp.zeros((nb, hh - pad - H, ws, c),
                                               ref.dtype)
            ref[:, pad:pad + H, :pad, :] = jnp.zeros((nb, H, pad, c),
                                                     ref.dtype)
            ref[:, pad:pad + H, pad + Wp:pad + Wp + pad, :] = (
                jnp.zeros((nb, H, pad, c), ref.dtype))
            # columns >= Wp + 2*pad (16-alignment padding) are never read.

    def sep_conv_bn(pad_ref, w_ref, b_ref):
        # Per-tap accumulated matmuls: no materialized im2col buffer.  The
        # contraction per tap is >=128 lanes, accumulation stays f32.
        c = pad_ref.shape[-1]
        acc = None
        for ky in range(k):
            for kx in range(k):
                t = ky * k + kx
                lhs = pad_ref[:, ky:ky + H, kx:kx + Wp, :].reshape(m, c)
                part = jnp.dot(lhs, w_ref[t],
                               preferred_element_type=jnp.float32)
                acc = part if acc is None else acc + part
        return acc + b_ref[...]                # folded BatchNorm bias (f32)

    # ---- act_1 (ReLU) -> interior of padded slab 1 (bf16 MXU operand) ----
    pad1_ref[:, pad:pad + H, pad:pad + Wp, :] = (
        jnp.maximum(x_ref[...], 0).astype(pad1_ref.dtype))
    # ---- separable_1 + bn_sep_1 (scale folded into w1) ----
    y = sep_conv_bn(pad1_ref, w1_ref, b1_ref)

    # ---- act_2 (ReLU) -> interior of padded slab 2 ----
    y = jnp.maximum(y, 0.0).reshape(nb, H, Wp, cmid_p)
    if w_real < Wp:
        # Padded W columns of layer 1 are nonzero (bias term); zero them so
        # layer 2 sees exactly the reference 'same' padding at the right edge.
        col = lax.broadcasted_iota(jnp.int32, (nb, H, Wp, cmid_p), 2)
        y = jnp.where(col < w_real, y, 0.0)
    pad2_ref[:, pad:pad + H, pad:pad + Wp, :] = y.astype(pad2_ref.dtype)
    # ---- separable_2 + bn_sep_2 ----
    z = sep_conv_bn(pad2_ref, w2_ref, b2_ref)

    o_ref[...] = z.reshape(nb, H, Wp, cout_p).astype(o_ref.dtype)


# ----------------------------------------------------------------------------
# One-time parameter folding (cache the result across forward calls).
# ----------------------------------------------------------------------------
def fold_branch_separables_params(params, *, kernel_size, eps=1e-3,
                                  mxu_dtype=jnp.bfloat16):
    """Fold depthwise * pointwise * BN-scale into one fused weight per layer.

    Returns (w1, b1, w2, b2, out_channels) with
      w: (k*k, Cin_padded, Cout_padded)  in mxu_dtype
      b: (1, Cout_padded)                in f32
    Channel axes are zero-padded to multiples of 128 so the kernel is
    lane-dense; padded bias entries are 0 so padded lanes stay exactly zero.
    """
    dw1, pw1, g1, be1, m1, v1, dw2, pw2, g2, be2, m2, v2 = params
    k = kernel_size
    cin = dw1.shape[0]
    cmid = pw1.shape[0]
    cout = pw2.shape[0]
    cin_p = _round_up(cin, 128)
    cmid_p = _round_up(cmid, 128)
    cout_p = _round_up(cout, 128)

    s1 = (g1 / jnp.sqrt(v1 + eps)).astype(jnp.float32)
    b1 = (be1 - m1 * s1).astype(jnp.float32)
    s2 = (g2 / jnp.sqrt(v2 + eps)).astype(jnp.float32)
    b2 = (be2 - m2 * s2).astype(jnp.float32)

    def fuse(dw, pw, s, ci, ci_p, co, co_p):
        dw_t = jnp.transpose(dw.reshape(ci, k * k), (1, 0))            # (k*k, Ci)
        pw_m = jnp.transpose(pw[:, :, 0, 0], (1, 0))                   # (Ci, Co)
        w = dw_t[:, :, None] * pw_m[None, :, :] * s[None, None, :]     # (k*k,Ci,Co)
        w = jnp.pad(w, ((0, 0), (0, ci_p - ci), (0, co_p - co)))
        return w.astype(mxu_dtype)

    w1 = fuse(dw1, pw1, s1, cin, cin_p, cmid, cmid_p)
    w2 = fuse(dw2, pw2, s2, cmid, cmid_p, cout, cout_p)
    b1 = jnp.pad(b1, (0, cmid_p - cmid)).reshape(1, cmid_p)
    b2 = jnp.pad(b2, (0, cout_p - cout)).reshape(1, cout_p)
    # TODO(synk): for layers with real channels << 128 (toy configs) a packed
    #             contraction (pad k*k*C, not each tap) would waste less MXU.
    return w1, b1, w2, b2, cout


# ----------------------------------------------------------------------------
# Wrapper: NCHW <-> lane-dense NHWC glue + pallas_call.
# ----------------------------------------------------------------------------
@partial(jax.jit, static_argnames=("kernel_size", "out_channels"))
def branch_separables_pallas(x_nchw, w1, b1, w2, b2, *, kernel_size,
                             out_channels):
    N, cin, H, W = x_nchw.shape
    k = kernel_size
    pad = (k - 1) // 2                       # stride=1 static 'same' padding
    kk, cin_p, cmid_p = w1.shape
    cout_p = w2.shape[2]
    assert kk == k * k and w2.shape[1] == cmid_p and cin_p >= cin

    # NCHW -> NHWC bf16 (ReLU commutes with the cast, halves input DMA);
    # round W up to a multiple of 8 and channels up to cin_p with zeros.
    w_pad = _round_up(W, 8)
    x = jnp.transpose(x_nchw, (0, 2, 3, 1)).astype(jnp.bfloat16)
    x = jnp.pad(x, ((0, 0), (0, 0), (0, w_pad - W), (0, cin_p - cin)))

    hh = H + 2 * pad
    ws = _round_up(w_pad + 2 * pad, 16)      # bf16 sublane-tile aligned slabs

    # Per-generation VMEM budget (128 MiB v5e/v6e, 64 MiB per core on v7x).
    try:
        vmem_cap = int(pltpu.get_tpu_info().vmem_capacity_bytes)
    except Exception:                        # conservative fallback
        vmem_cap = 64 * 1024 * 1024
    scratch_budget = int(0.35 * vmem_cap)
    vmem_limit = int(0.75 * vmem_cap)

    w_bytes = (w1.size + w2.size) * 2 + (b1.size + b2.size) * 4

    def scratch_bytes(nb):
        # Count everything resident per step: halo slabs, double-buffered I/O
        # blocks, double-buffered weights, f32 accumulators, per-tap copies.
        m = nb * H * w_pad
        slabs = nb * hh * ws * (cin_p + cmid_p) * 2           # bf16 slabs
        io = 2 * (m * cin_p * 2 + m * cout_p * 4)             # dbl-buffered IO
        acc = m * (cmid_p + cout_p) * 4                       # f32 y/z accums
        taps = 2 * m * max(cin_p, cmid_p) * 2                 # tap lhs copies
        return slabs + io + acc + taps + 2 * w_bytes

    # Images per grid step: amortize per-step overhead / enlarge matmul M,
    # but keep >= min(4, N) grid steps so prefetch/writeback overlap compute
    # and the "parallel" batch axis can shard across TensorCores (v7x).
    steps_target = min(4, N)
    nb = 1
    for d in range(1, N + 1):
        if N % d or scratch_bytes(d) > scratch_budget:
            continue
        if N // d >= steps_target:
            nb = d
    # TODO(synk): if even nb=1 exceeds the budget (large H*W), switch to an
    #             H-tiled grid axis with a pad-row halo.

    m_total = N * H * w_pad
    cost = pl.CostEstimate(
        flops=2 * m_total * k * k * (cin_p * cmid_p + cmid_p * cout_p),
        transcendentals=0,
        bytes_accessed=(x.size * 2 + m_total * cout_p * 4 + w_bytes))

    out = pl.pallas_call(
        partial(_branch_sep_kernel, k=k, pad=pad, w_real=W),
        out_shape=jax.ShapeDtypeStruct((N, H, w_pad, cout_p), jnp.float32),
        grid=(N // nb,),
        in_specs=[
            pl.BlockSpec((nb, H, w_pad, cin_p), lambda n: (n, 0, 0, 0)),
            # TODO(synk): for real PNASNet channel counts single-buffer the
            #             fused weights (pipeline_mode=pl.Buffered(1)).
            pl.BlockSpec(w1.shape, lambda n: (0, 0, 0)),
            pl.BlockSpec(b1.shape, lambda n: (0, 0)),
            pl.BlockSpec(w2.shape, lambda n: (0, 0, 0)),
            pl.BlockSpec(b2.shape, lambda n: (0, 0)),
        ],
        out_specs=pl.BlockSpec((nb, H, w_pad, cout_p),
                               lambda n: (n, 0, 0, 0)),
        scratch_shapes=[
            pltpu.VMEM((nb, hh, ws, cin_p), jnp.bfloat16),    # haloed slab 1
            pltpu.VMEM((nb, hh, ws, cmid_p), jnp.bfloat16),   # haloed slab 2
        ],
        compiler_params=pltpu.CompilerParams(
            dimension_semantics=("parallel",),
            vmem_limit_bytes=vmem_limit),
        cost_estimate=cost,
    )(x, w1, b1, w2, b2)

    # Drop padded output channels / padded W columns, back to NCHW.
    out = out[:, :, :W, :out_channels]
    return jnp.transpose(out, (0, 3, 1, 2))


# ----------------------------------------------------------------------------
# Pure-JAX reference (NCHW, mirrors PyTorch semantics) for validation.
# ----------------------------------------------------------------------------
def branch_separables_ref(x, params, *, kernel_size=3, eps=1e-3):
    dw1, pw1, g1, be1, m1, v1, dw2, pw2, g2, be2, m2, v2 = params
    k = kernel_size
    pad = (k - 1) // 2

    def dwconv(x, w):
        return lax.conv_general_dilated(
            x, w, (1, 1), [(pad, pad), (pad, pad)],
            feature_group_count=w.shape[0],
            dimension_numbers=('NCHW', 'OIHW', 'NCHW'))

    def pwconv(x, w):
        return lax.conv_general_dilated(
            x, w, (1, 1), [(0, 0), (0, 0)],
            dimension_numbers=('NCHW', 'OIHW', 'NCHW'))

    def bn(x, g, b, m, v):
        scale = (g / jnp.sqrt(v + eps))[None, :, None, None]
        shift = (b - m * g / jnp.sqrt(v + eps))[None, :, None, None]
        return x * scale + shift

    x = jnp.maximum(x, 0.0)
    x = pwconv(dwconv(x, dw1), pw1)
    x = bn(x, g1, be1, m1, v1)
    x = jnp.maximum(x, 0.0)
    x = pwconv(dwconv(x, dw2), pw2)
    x = bn(x, g2, be2, m2, v2)
    return x


# ----------------------------------------------------------------------------
# Deterministic parameter construction (shapes per module __init__).
# ----------------------------------------------------------------------------
def make_params(key, in_channels, out_channels, kernel_size, stem_cell=False):
    mid = out_channels if stem_cell else in_channels
    k = kernel_size
    keys = jax.random.split(key, 12)
    f32 = jnp.float32
    dw1 = 0.2 * jax.random.normal(keys[0], (in_channels, 1, k, k), f32)
    pw1 = 0.2 * jax.random.normal(keys[1], (mid, in_channels, 1, 1), f32)
    g1 = 1.0 + 0.1 * jax.random.normal(keys[2], (mid,), f32)
    be1 = 0.1 * jax.random.normal(keys[3], (mid,), f32)
    m1 = 0.1 * jax.random.normal(keys[4], (mid,), f32)
    v1 = jax.random.uniform(keys[5], (mid,), f32, 0.5, 1.5)
    dw2 = 0.2 * jax.random.normal(keys[6], (mid, 1, k, k), f32)
    pw2 = 0.2 * jax.random.normal(keys[7], (out_channels, mid, 1, 1), f32)
    g2 = 1.0 + 0.1 * jax.random.normal(keys[8], (out_channels,), f32)
    be2 = 0.1 * jax.random.normal(keys[9], (out_channels,), f32)
    m2 = 0.1 * jax.random.normal(keys[10], (out_channels,), f32)
    v2 = jax.random.uniform(keys[11], (out_channels,), f32, 0.5, 1.5)
    return (dw1, pw1, g1, be1, m1, v1, dw2, pw2, g2, be2, m2, v2)


if __name__ == "__main__":
    key = jax.random.PRNGKey(0)
    kx, kp = jax.random.split(key)

    N, Cin, H, W = 2, 4, 16, 16
    Cout, K = 8, 3

    x = jax.random.normal(kx, (N, Cin, H, W), jnp.float32)
    params = make_params(kp, Cin, Cout, K, stem_cell=False)

    # Fold once (cacheable across calls), then run the Pallas forward.
    w1, b1, w2, b2, out_channels = fold_branch_separables_params(
        params, kernel_size=K)
    out = branch_separables_pallas(x, w1, b1, w2, b2, kernel_size=K,
                                   out_channels=out_channels)
    out = jax.block_until_ready(out)

    ref = branch_separables_ref(x, params, kernel_size=K)
    assert out.shape == (N, Cout, H, W), out.shape
    # bf16 MXU operands (activations + fused weights) -> ~1e-2 abs error budget.
    err = float(jnp.max(jnp.abs(out - ref)))
    assert jnp.allclose(out, ref, atol=5e-2, rtol=5e-2), err

    print("KERNEL_OK")
</pallas_src>

<mosaic_0001>
module attributes {stable_mosaic.version = 11 : i64} {
  func.func @_branch_sep_kernel(%arg0: i32, %arg1: memref<1x16x16x128xbf16, #tpu.memory_space<vmem>>, %arg2: memref<9x128x128xbf16, #tpu.memory_space<vmem>>, %arg3: memref<1x128xf32, #tpu.memory_space<vmem>>, %arg4: memref<9x128x128xbf16, #tpu.memory_space<vmem>>, %arg5: memref<1x128xf32, #tpu.memory_space<vmem>>, %arg6: memref<1x16x16x128xf32, #tpu.memory_space<vmem>>, %arg7: memref<1x18x32x128xbf16, #tpu.memory_space<vmem>>, %arg8: memref<1x18x32x128xbf16, #tpu.memory_space<vmem>>) attributes {dimension_semantics = [#tpu.dimension_semantics<parallel>], iteration_bounds = array<i64: 2>, scalar_prefetch = 0 : i64, scratch_operands = 2 : i64, tpu.core_type = #tpu.core_type<tc>, window_params = [{transform_indices = @transform_0, window_bounds = array<i64: 1, 16, 16, 128>}, {pipeline_mode = #tpu.pipeline_mode<synchronous>, transform_indices = @transform_1, window_bounds = array<i64: 9, 128, 128>}, {pipeline_mode = #tpu.pipeline_mode<synchronous>, transform_indices = @transform_2, window_bounds = array<i64: 1, 128>}, {pipeline_mode = #tpu.pipeline_mode<synchronous>, transform_indices = @transform_3, window_bounds = array<i64: 9, 128, 128>}, {pipeline_mode = #tpu.pipeline_mode<synchronous>, transform_indices = @transform_4, window_bounds = array<i64: 1, 128>}, {transform_indices = @transform_5, window_bounds = array<i64: 1, 16, 16, 128>}]} {
    %cst = arith.constant 0.000000e+00 : bf16
    %0 = vector.broadcast %cst : bf16 to vector<1x1x32x128xbf16>
    %c0 = arith.constant 0 : index
    %c0_0 = arith.constant 0 : index
    %c0_1 = arith.constant 0 : index
    %c0_2 = arith.constant 0 : index
    %1 = vector.load %arg7[%c0, %c0_0, %c0_1, %c0_2] : memref<1x18x32x128xbf16, #tpu.memory_space<vmem>>, vector<1x1x32x128xbf16>
    tpu.vector_store %arg7[%c0, %c0_0, %c0_1, %c0_2], %0 {strides = array<i32>} : memref<1x18x32x128xbf16, #tpu.memory_space<vmem>>, vector<1x1x32x128xbf16>,
    %cst_3 = arith.constant 0.000000e+00 : bf16
    %2 = vector.broadcast %cst_3 : bf16 to vector<1x1x32x128xbf16>
    %c0_4 = arith.constant 0 : index
    %c17 = arith.constant 17 : index
    %c0_5 = arith.constant 0 : index
    %c0_6 = arith.constant 0 : index
    %3 = vector.load %arg7[%c0_4, %c17, %c0_5, %c0_6] : memref<1x18x32x128xbf16, #tpu.memory_space<vmem>>, vector<1x1x32x128xbf16>
    tpu.vector_store %arg7[%c0_4, %c17, %c0_5, %c0_6], %2 {strides = array<i32>} : memref<1x18x32x128xbf16, #tpu.memory_space<vmem>>, vector<1x1x32x128xbf16>,
    %cst_7 = arith.constant 0.000000e+00 : bf16
    %4 = vector.broadcast %cst_7 : bf16 to vector<1x16x1x128xbf16>
    %c0_8 = arith.constant 0 : index
    %c1 = arith.constant 1 : index
    %c0_9 = arith.constant 0 : index
    %c0_10 = arith.constant 0 : index
    %5 = vector.load %arg7[%c0_8, %c1, %c0_9, %c0_10] : memref<1x18x32x128xbf16, #tpu.memory_space<vmem>>, vector<1x16x1x128xbf16>
    tpu.vector_store %arg7[%c0_8, %c1, %c0_9, %c0_10], %4 {strides = array<i32>} : memref<1x18x32x128xbf16, #tpu.memory_space<vmem>>, vector<1x16x1x128xbf16>,
    %cst_11 = arith.constant 0.000000e+00 : bf16
    %6 = vector.broadcast %cst_11 : bf16 to vector<1x16x1x128xbf16>
    %c0_12 = arith.constant 0 : index
    %c1_13 = arith.constant 1 : index
    %c17_14 = arith.constant 17 : index
    %c0_15 = arith.constant 0 : index
    %7 = vector.load %arg7[%c0_12, %c1_13, %c17_14, %c0_15] : memref<1x18x32x128xbf16, #tpu.memory_space<vmem>>, vector<1x16x1x128xbf16>
    tpu.vector_store %arg7[%c0_12, %c1_13, %c17_14, %c0_15], %6 {strides = array<i32>} : memref<1x18x32x128xbf16, #tpu.memory_space<vmem>>, vector<1x16x1x128xbf16>,
    %cst_16 = arith.constant 0.000000e+00 : bf16
    %8 = vector.broadcast %cst_16 : bf16 to vector<1x1x32x128xbf16>
    %c0_17 = arith.constant 0 : index
    %c0_18 = arith.constant 0 : index
    %c0_19 = arith.constant 0 : index
    %c0_20 = arith.constant 0 : index
    %9 = vector.load %arg8[%c0_17, %c0_18, %c0_19, %c0_20] : memref<1x18x32x128xbf16, #tpu.memory_space<vmem>>, vector<1x1x32x128xbf16>
    tpu.vector_store %arg8[%c0_17, %c0_18, %c0_19, %c0_20], %8 {strides = array<i32>} : memref<1x18x32x128xbf16, #tpu.memory_space<vmem>>, vector<1x1x32x128xbf16>,
    %cst_21 = arith.constant 0.000000e+00 : bf16
    %10 = vector.broadcast %cst_21 : bf16 to vector<1x1x32x128xbf16>
    %c0_22 = arith.constant 0 : index
    %c17_23 = arith.constant 17 : index
    %c0_24 = arith.constant 0 : index
    %c0_25 = arith.constant 0 : index
    %11 = vector.load %arg8[%c0_22, %c17_23, %c0_24, %c0_25] : memref<1x18x32x128xbf16, #tpu.memory_space<vmem>>, vector<1x1x32x128xbf16>
    tpu.vector_store %arg8[%c0_22, %c17_23, %c0_24, %c0_25], %10 {strides = array<i32>} : memref<1x18x32x128xbf16, #tpu.memory_space<vmem>>, vector<1x1x32x128xbf16>,
    %cst_26 = arith.constant 0.000000e+00 : bf16
    %12 = vector.broadcast %cst_26 : bf16 to vector<1x16x1x128xbf16>
    %c0_27 = arith.constant 0 : index
    %c1_28 = arith.constant 1 : index
    %c0_29 = arith.constant 0 : index
    %c0_30 = arith.constant 0 : index
    %13 = vector.load %arg8[%c0_27, %c1_28, %c0_29, %c0_30] : memref<1x18x32x128xbf16, #tpu.memory_space<vmem>>, vector<1x16x1x128xbf16>
    tpu.vector_store %arg8[%c0_27, %c1_28, %c0_29, %c0_30], %12 {strides = array<i32>} : memref<1x18x32x128xbf16, #tpu.memory_space<vmem>>, vector<1x16x1x128xbf16>,
    %cst_31 = arith.constant 0.000000e+00 : bf16
    %14 = vector.broadcast %cst_31 : bf16 to vector<1x16x1x128xbf16>
    %c0_32 = arith.constant 0 : index
    %c1_33 = arith.constant 1 : index
    %c17_34 = arith.constant 17 : index
    %c0_35 = arith.constant 0 : index
    %15 = vector.load %arg8[%c0_32, %c1_33, %c17_34, %c0_35] : memref<1x18x32x128xbf16, #tpu.memory_space<vmem>>, vector<1x16x1x128xbf16>
    tpu.vector_store %arg8[%c0_32, %c1_33, %c17_34, %c0_35], %14 {strides = array<i32>} : memref<1x18x32x128xbf16, #tpu.memory_space<vmem>>, vector<1x16x1x128xbf16>,
    %c0_36 = arith.constant 0 : index
    %c0_37 = arith.constant 0 : index
    %c0_38 = arith.constant 0 : index
    %c0_39 = arith.constant 0 : index
    %16 = vector.load %arg1[%c0_36, %c0_37, %c0_38, %c0_39] : memref<1x16x16x128xbf16, #tpu.memory_space<vmem>>, vector<1x16x16x128xbf16>
    %cst_40 = arith.constant 0.000000e+00 : bf16
    %17 = vector.broadcast %cst_40 : bf16 to vector<1x16x16x128xbf16>
    %18 = arith.maximumf %16, %17 : vector<1x16x16x128xbf16>
    %c0_41 = arith.constant 0 : index
    %c1_42 = arith.constant 1 : index
    %c1_43 = arith.constant 1 : index
    %c0_44 = arith.constant 0 : index
    %19 = vector.load %arg7[%c0_41, %c1_42, %c1_43, %c0_44] : memref<1x18x32x128xbf16, #tpu.memory_space<vmem>>, vector<1x16x16x128xbf16>
    tpu.vector_store %arg7[%c0_41, %c1_42, %c1_43, %c0_44], %18 {strides = array<i32>} : memref<1x18x32x128xbf16, #tpu.memory_space<vmem>>, vector<1x16x16x128xbf16>,
    %c0_45 = arith.constant 0 : index
    %c0_46 = arith.constant 0 : index
    %c0_47 = arith.constant 0 : index
    %c0_48 = arith.constant 0 : index
    %20 = vector.load %arg7[%c0_45, %c0_46, %c0_47, %c0_48] : memref<1x18x32x128xbf16, #tpu.memory_space<vmem>>, vector<1x16x16x128xbf16>
    %21 = vector.shape_cast %20 : vector<1x16x16x128xbf16> to vector<256x128xbf16>
    %c0_49 = arith.constant 0 : index
    %c0_50 = arith.constant 0 : index
    %c0_51 = arith.constant 0 : index
    %22 = vector.load %arg2[%c0_49, %c0_50, %c0_51] : memref<9x128x128xbf16, #tpu.memory_space<vmem>>, vector<1x128x128xbf16>
    %23 = vector.shape_cast %22 : vector<1x128x128xbf16> to vector<128x128xbf16>
    %cst_52 = arith.constant dense<0.000000e+00> : vector<256x128xf32>
    %24 = tpu.matmul %21, %23, %cst_52 {dimension_numbers = #tpu.dot_dimension_numbers<[1], [0], [0], [1], [0, 0, 1, 1], [], []>} : vector<256x128xbf16>, vector<128x128xbf16>, vector<256x128xf32> -> vector<256x128xf32>
    %c0_53 = arith.constant 0 : index
    %c0_54 = arith.constant 0 : index
    %c1_55 = arith.constant 1 : index
    %c0_56 = arith.constant 0 : index
    %25 = vector.load %arg7[%c0_53, %c0_54, %c1_55, %c0_56] : memref<1x18x32x128xbf16, #tpu.memory_space<vmem>>, vector<1x16x16x128xbf16>
    %26 = vector.shape_cast %25 : vector<1x16x16x128xbf16> to vector<256x128xbf16>
    %c1_57 = arith.constant 1 : index
    %c0_58 = arith.constant 0 : index
    %c0_59 = arith.constant 0 : index
    %27 = vector.load %arg2[%c1_57, %c0_58, %c0_59] : memref<9x128x128xbf16, #tpu.memory_space<vmem>>, vector<1x128x128xbf16>
    %28 = vector.shape_cast %27 : vector<1x128x128xbf16> to vector<128x128xbf16>
    %cst_60 = arith.constant dense<0.000000e+00> : vector<256x128xf32>
    %29 = tpu.matmul %26, %28, %cst_60 {dimension_numbers = #tpu.dot_dimension_numbers<[1], [0], [0], [1], [0, 0, 1, 1], [], []>} : vector<256x128xbf16>, vector<128x128xbf16>, vector<256x128xf32> -> vector<256x128xf32>
    %30 = arith.addf %24, %29 : vector<256x128xf32>
    %c0_61 = arith.constant 0 : index
    %c0_62 = arith.constant 0 : index
    %c2 = arith.constant 2 : index
    %c0_63 = arith.constant 0 : index
    %31 = vector.load %arg7[%c0_61, %c0_62, %c2, %c0_63] : memref<1x18x32x128xbf16, #tpu.memory_space<vmem>>, vector<1x16x16x128xbf16>
    %32 = vector.shape_cast %31 : vector<1x16x16x128xbf16> to vector<256x128xbf16>
    %c2_64 = arith.constant 2 : index
    %c0_65 = arith.constant 0 : index
    %c0_66 = arith.constant 0 : index
    %33 = vector.load %arg2[%c2_64, %c0_65, %c0_66] : memref<9x128x128xbf16, #tpu.memory_space<vmem>>, vector<1x128x128xbf16>
    %34 = vector.shape_cast %33 : vector<1x128x128xbf16> to vector<128x128xbf16>
    %cst_67 = arith.constant dense<0.000000e+00> : vector<256x128xf32>
    %35 = tpu.matmul %32, %34, %cst_67 {dimension_numbers = #tpu.dot_dimension_numbers<[1], [0], [0], [1], [0, 0, 1, 1], [], []>} : vector<256x128xbf16>, vector<128x128xbf16>, vector<256x128xf32> -> vector<256x128xf32>
    %36 = arith.addf %30, %35 : vector<256x128xf32>
    %c0_68 = arith.constant 0 : index
    %c1_69 = arith.constant 1 : index
    %c0_70 = arith.constant 0 : index
    %c0_71 = arith.constant 0 : index
    %37 = vector.load %arg7[%c0_68, %c1_69, %c0_70, %c0_71] : memref<1x18x32x128xbf16, #tpu.memory_space<vmem>>, vector<1x16x16x128xbf16>
    %38 = vector.shape_cast %37 : vector<1x16x16x128xbf16> to vector<256x128xbf16>
    %c3 = arith.constant 3 : index
    %c0_72 = arith.constant 0 : index
    %c0_73 = arith.constant 0 : index
    %39 = vector.load %arg2[%c3, %c0_72, %c0_73] : memref<9x128x128xbf16, #tpu.memory_space<vmem>>, vector<1x128x128xbf16>
    %40 = vector.shape_cast %39 : vector<1x128x128xbf16> to vector<128x128xbf16>
    %cst_74 = arith.constant dense<0.000000e+00> : vector<256x128xf32>
    %41 = tpu.matmul %38, %40, %cst_74 {dimension_numbers = #tpu.dot_dimension_numbers<[1], [0], [0], [1], [0, 0, 1, 1], [], []>} : vector<256x128xbf16>, vector<128x128xbf16>, vector<256x128xf32> -> vector<256x128xf32>
    %42 = arith.addf %36, %41 : vector<256x128xf32>
    %c0_75 = arith.constant 0 : index
    %c1_76 = arith.constant 1 : index
    %c1_77 = arith.constant 1 : index
    %c0_78 = arith.constant 0 : index
    %43 = vector.load %arg7[%c0_75, %c1_76, %c1_77, %c0_78] : memref<1x18x32x128xbf16, #tpu.memory_space<vmem>>, vector<1x16x16x128xbf16>
    %44 = vector.shape_cast %43 : vector<1x16x16x128xbf16> to vector<256x128xbf16>
    %c4 = arith.constant 4 : index
    %c0_79 = arith.constant 0 : index
    %c0_80 = arith.constant 0 : index
    %45 = vector.load %arg2[%c4, %c0_79, %c0_80] : memref<9x128x128xbf16, #tpu.memory_space<vmem>>, vector<1x128x128xbf16>
    %46 = vector.shape_cast %45 : vector<1x128x128xbf16> to vector<128x128xbf16>
    %cst_81 = arith.constant dense<0.000000e+00> : vector<256x128xf32>
    %47 = tpu.matmul %44, %46, %cst_81 {dimension_numbers = #tpu.dot_dimension_numbers<[1], [0], [0], [1], [0, 0, 1, 1], [], []>} : vector<256x128xbf16>, vector<128x128xbf16>, vector<256x128xf32> -> vector<256x128xf32>
    %48 = arith.addf %42, %47 : vector<256x128xf32>
    %c0_82 = arith.constant 0 : index
    %c1_83 = arith.constant 1 : index
    %c2_84 = arith.constant 2 : index
    %c0_85 = arith.constant 0 : index
    %49 = vector.load %arg7[%c0_82, %c1_83, %c2_84, %c0_85] : memref<1x18x32x128xbf16, #tpu.memory_space<vmem>>, vector<1x16x16x128xbf16>
    %50 = vector.shape_cast %49 : vector<1x16x16x128xbf16> to vector<256x128xbf16>
    %c5 = arith.constant 5 : index
    %c0_86 = arith.constant 0 : index
    %c0_87 = arith.constant 0 : index
    %51 = vector.load %arg2[%c5, %c0_86, %c0_87] : memref<9x128x128xbf16, #tpu.memory_space<vmem>>, vector<1x128x128xbf16>
    %52 = vector.shape_cast %51 : vector<1x128x128xbf16> to vector<128x128xbf16>
    %cst_88 = arith.constant dense<0.000000e+00> : vector<256x128xf32>
    %53 = tpu.matmul %50, %52, %cst_88 {dimension_numbers = #tpu.dot_dimension_numbers<[1], [0], [0], [1], [0, 0, 1, 1], [], []>} : vector<256x128xbf16>, vector<128x128xbf16>, vector<256x128xf32> -> vector<256x128xf32>
    %54 = arith.addf %48, %53 : vector<256x128xf32>
    %c0_89 = arith.constant 0 : index
    %c2_90 = arith.constant 2 : index
    %c0_91 = arith.constant 0 : index
    %c0_92 = arith.constant 0 : index
    %55 = vector.load %arg7[%c0_89, %c2_90, %c0_91, %c0_92] : memref<1x18x32x128xbf16, #tpu.memory_space<vmem>>, vector<1x16x16x128xbf16>
    %56 = vector.shape_cast %55 : vector<1x16x16x128xbf16> to vector<256x128xbf16>
    %c6 = arith.constant 6 : index
    %c0_93 = arith.constant 0 : index
    %c0_94 = arith.constant 0 : index
    %57 = vector.load %arg2[%c6, %c0_93, %c0_94] : memref<9x128x128xbf16, #tpu.memory_space<vmem>>, vector<1x128x128xbf16>
    %58 = vector.shape_cast %57 : vector<1x128x128xbf16> to vector<128x128xbf16>
    %cst_95 = arith.constant dense<0.000000e+00> : vector<256x128xf32>
    %59 = tpu.matmul %56, %58, %cst_95 {dimension_numbers = #tpu.dot_dimension_numbers<[1], [0], [0], [1], [0, 0, 1, 1], [], []>} : vector<256x128xbf16>, vector<128x128xbf16>, vector<256x128xf32> -> vector<256x128xf32>
    %60 = arith.addf %54, %59 : vector<256x128xf32>
    %c0_96 = arith.constant 0 : index
    %c2_97 = arith.constant 2 : index
    %c1_98 = arith.constant 1 : index
    %c0_99 = arith.constant 0 : index
    %61 = vector.load %arg7[%c0_96, %c2_97, %c1_98, %c0_99] : memref<1x18x32x128xbf16, #tpu.memory_space<vmem>>, vector<1x16x16x128xbf16>
    %62 = vector.shape_cast %61 : vector<1x16x16x128xbf16> to vector<256x128xbf16>
    %c7 = arith.constant 7 : index
    %c0_100 = arith.constant 0 : index
    %c0_101 = arith.constant 0 : index
    %63 = vector.load %arg2[%c7, %c0_100, %c0_101] : memref<9x128x128xbf16, #tpu.memory_space<vmem>>, vector<1x128x128xbf16>
    %64 = vector.shape_cast %63 : vector<1x128x128xbf16> to vector<128x128xbf16>
    %cst_102 = arith.constant dense<0.000000e+00> : vector<256x128xf32>
    %65 = tpu.matmul %62, %64, %cst_102 {dimension_numbers = #tpu.dot_dimension_numbers<[1], [0], [0], [1], [0, 0, 1, 1], [], []>} : vector<256x128xbf16>, vector<128x128xbf16>, vector<256x128xf32> -> vector<256x128xf32>
    %66 = arith.addf %60, %65 : vector<256x128xf32>
    %c0_103 = arith.constant 0 : index
    %c2_104 = arith.constant 2 : index
    %c2_105 = arith.constant 2 : index
    %c0_106 = arith.constant 0 : index
    %67 = vector.load %arg7[%c0_103, %c2_104, %c2_105, %c0_106] : memref<1x18x32x128xbf16, #tpu.memory_space<vmem>>, vector<1x16x16x128xbf16>
    %68 = vector.shape_cast %67 : vector<1x16x16x128xbf16> to vector<256x128xbf16>
    %c8 = arith.constant 8 : index
    %c0_107 = arith.constant 0 : index
    %c0_108 = arith.constant 0 : index
    %69 = vector.load %arg2[%c8, %c0_107, %c0_108] : memref<9x128x128xbf16, #tpu.memory_space<vmem>>, vector<1x128x128xbf16>
    %70 = vector.shape_cast %69 : vector<1x128x128xbf16> to vector<128x128xbf16>
    %cst_109 = arith.constant dense<0.000000e+00> : vector<256x128xf32>
    %71 = tpu.matmul %68, %70, %cst_109 {dimension_numbers = #tpu.dot_dimension_numbers<[1], [0], [0], [1], [0, 0, 1, 1], [], []>} : vector<256x128xbf16>, vector<128x128xbf16>, vector<256x128xf32> -> vector<256x128xf32>
    %72 = arith.addf %66, %71 : vector<256x128xf32>
    %c0_110 = arith.constant 0 : index
    %c0_111 = arith.constant 0 : index
    %73 = vector.load %arg3[%c0_110, %c0_111] : memref<1x128xf32, #tpu.memory_space<vmem>>, vector<1x128xf32>
    %74 = vector.broadcast %73 : vector<1x128xf32> to vector<256x128xf32>
    %75 = arith.addf %72, %74 : vector<256x128xf32>
    %cst_112 = arith.constant 0.000000e+00 : f32
    %76 = vector.broadcast %cst_112 : f32 to vector<256x128xf32>
    %77 = arith.maximumf %75, %76 : vector<256x128xf32>
    %78 = vector.shape_cast %77 : vector<256x128xf32> to vector<1x16x16x128xf32>
    %79 = arith.truncf %78 : vector<1x16x16x128xf32> to vector<1x16x16x128xbf16>
    %c0_113 = arith.constant 0 : index
    %c1_114 = arith.constant 1 : index
    %c1_115 = arith.constant 1 : index
    %c0_116 = arith.constant 0 : index
    %80 = vector.load %arg8[%c0_113, %c1_114, %c1_115, %c0_116] : memref<1x18x32x128xbf16, #tpu.memory_space<vmem>>, vector<1x16x16x128xbf16>
    tpu.vector_store %arg8[%c0_113, %c1_114, %c1_115, %c0_116], %79 {strides = array<i32>} : memref<1x18x32x128xbf16, #tpu.memory_space<vmem>>, vector<1x16x16x128xbf16>,
    %c0_117 = arith.constant 0 : index
    %c0_118 = arith.constant 0 : index
    %c0_119 = arith.constant 0 : index
    %c0_120 = arith.constant 0 : index
    %81 = vector.load %arg8[%c0_117, %c0_118, %c0_119, %c0_120] : memref<1x18x32x128xbf16, #tpu.memory_space<vmem>>, vector<1x16x16x128xbf16>
    %82 = vector.shape_cast %81 : vector<1x16x16x128xbf16> to vector<256x128xbf16>
    %c0_121 = arith.constant 0 : index
    %c0_122 = arith.constant 0 : index
    %c0_123 = arith.constant 0 : index
    %83 = vector.load %arg4[%c0_121, %c0_122, %c0_123] : memref<9x128x128xbf16, #tpu.memory_space<vmem>>, vector<1x128x128xbf16>
    %84 = vector.shape_cast %83 : vector<1x128x128xbf16> to vector<128x128xbf16>
    %cst_124 = arith.constant dense<0.000000e+00> : vector<256x128xf32>
    %85 = tpu.matmul %82, %84, %cst_124 {dimension_numbers = #tpu.dot_dimension_numbers<[1], [0], [0], [1], [0, 0, 1, 1], [], []>} : vector<256x128xbf16>, vector<128x128xbf16>, vector<256x128xf32> -> vector<256x128xf32>
    %c0_125 = arith.constant 0 : index
    %c0_126 = arith.constant 0 : index
    %c1_127 = arith.constant 1 : index
    %c0_128 = arith.constant 0 : index
    %86 = vector.load %arg8[%c0_125, %c0_126, %c1_127, %c0_128] : memref<1x18x32x128xbf16, #tpu.memory_space<vmem>>, vector<1x16x16x128xbf16>
    %87 = vector.shape_cast %86 : vector<1x16x16x128xbf16> to vector<256x128xbf16>
    %c1_129 = arith.constant 1 : index
    %c0_130 = arith.constant 0 : index
    %c0_131 = arith.constant 0 : index
    %88 = vector.load %arg4[%c1_129, %c0_130, %c0_131] : memref<9x128x128xbf16, #tpu.memory_space<vmem>>, vector<1x128x128xbf16>
    %89 = vector.shape_cast %88 : vector<1x128x128xbf16> to vector<128x128xbf16>
    %cst_132 = arith.constant dense<0.000000e+00> : vector<256x128xf32>
    %90 = tpu.matmul %87, %89, %cst_132 {dimension_numbers = #tpu.dot_dimension_numbers<[1], [0], [0], [1], [0, 0, 1, 1], [], []>} : vector<256x128xbf16>, vector<128x128xbf16>, vector<256x128xf32> -> vector<256x128xf32>
    %91 = arith.addf %85, %90 : vector<256x128xf32>
    %c0_133 = arith.constant 0 : index
    %c0_134 = arith.constant 0 : index
    %c2_135 = arith.constant 2 : index
    %c0_136 = arith.constant 0 : index
    %92 = vector.load %arg8[%c0_133, %c0_134, %c2_135, %c0_136] : memref<1x18x32x128xbf16, #tpu.memory_space<vmem>>, vector<1x16x16x128xbf16>
    %93 = vector.shape_cast %92 : vector<1x16x16x128xbf16> to vector<256x128xbf16>
    %c2_137 = arith.constant 2 : index
    %c0_138 = arith.constant 0 : index
    %c0_139 = arith.constant 0 : index
    %94 = vector.load %arg4[%c2_137, %c0_138, %c0_139] : memref<9x128x128xbf16, #tpu.memory_space<vmem>>, vector<1x128x128xbf16>
    %95 = vector.shape_cast %94 : vector<1x128x128xbf16> to vector<128x128xbf16>
    %cst_140 = arith.constant dense<0.000000e+00> : vector<256x128xf32>
    %96 = tpu.matmul %93, %95, %cst_140 {dimension_numbers = #tpu.dot_dimension_numbers<[1], [0], [0], [1], [0, 0, 1, 1], [], []>} : vector<256x128xbf16>, vector<128x128xbf16>, vector<256x128xf32> -> vector<256x128xf32>
    %97 = arith.addf %91, %96 : vector<256x128xf32>
    %c0_141 = arith.constant 0 : index
    %c1_142 = arith.constant 1 : index
    %c0_143 = arith.constant 0 : index
    %c0_144 = arith.constant 0 : index
    %98 = vector.load %arg8[%c0_141, %c1_142, %c0_143, %c0_144] : memref<1x18x32x128xbf16, #tpu.memory_space<vmem>>, vector<1x16x16x128xbf16>
    %99 = vector.shape_cast %98 : vector<1x16x16x128xbf16> to vector<256x128xbf16>
    %c3_145 = arith.constant 3 : index
    %c0_146 = arith.constant 0 : index
    %c0_147 = arith.constant 0 : index
    %100 = vector.load %arg4[%c3_145, %c0_146, %c0_147] : memref<9x128x128xbf16, #tpu.memory_space<vmem>>, vector<1x128x128xbf16>
    %101 = vector.shape_cast %100 : vector<1x128x128xbf16> to vector<128x128xbf16>
    %cst_148 = arith.constant dense<0.000000e+00> : vector<256x128xf32>
    %102 = tpu.matmul %99, %101, %cst_148 {dimension_numbers = #tpu.dot_dimension_numbers<[1], [0], [0], [1], [0, 0, 1, 1], [], []>} : vector<256x128xbf16>, vector<128x128xbf16>, vector<256x128xf32> -> vector<256x128xf32>
    %103 = arith.addf %97, %102 : vector<256x128xf32>
    %c0_149 = arith.constant 0 : index
    %c1_150 = arith.constant 1 : index
    %c1_151 = arith.constant 1 : index
    %c0_152 = arith.constant 0 : index
    %104 = vector.load %arg8[%c0_149, %c1_150, %c1_151, %c0_152] : memref<1x18x32x128xbf16, #tpu.memory_space<vmem>>, vector<1x16x16x128xbf16>
    %105 = vector.shape_cast %104 : vector<1x16x16x128xbf16> to vector<256x128xbf16>
    %c4_153 = arith.constant 4 : index
    %c0_154 = arith.constant 0 : index
    %c0_155 = arith.constant 0 : index
    %106 = vector.load %arg4[%c4_153, %c0_154, %c0_155] : memref<9x128x128xbf16, #tpu.memory_space<vmem>>, vector<1x128x128xbf16>
    %107 = vector.shape_cast %106 : vector<1x128x128xbf16> to vector<128x128xbf16>
    %cst_156 = arith.constant dense<0.000000e+00> : vector<256x128xf32>
    %108 = tpu.matmul %105, %107, %cst_156 {dimension_numbers = #tpu.dot_dimension_numbers<[1], [0], [0], [1], [0, 0, 1, 1], [], []>} : vector<256x128xbf16>, vector<128x128xbf16>, vector<256x128xf32> -> vector<256x128xf32>
    %109 = arith.addf %103, %108 : vector<256x128xf32>
    %c0_157 = arith.constant 0 : index
    %c1_158 = arith.constant 1 : index
    %c2_159 = arith.constant 2 : index
    %c0_160 = arith.constant 0 : index
    %110 = vector.load %arg8[%c0_157, %c1_158, %c2_159, %c0_160] : memref<1x18x32x128xbf16, #tpu.memory_space<vmem>>, vector<1x16x16x128xbf16>
    %111 = vector.shape_cast %110 : vector<1x16x16x128xbf16> to vector<256x128xbf16>
    %c5_161 = arith.constant 5 : index
    %c0_162 = arith.constant 0 : index
    %c0_163 = arith.constant 0 : index
    %112 = vector.load %arg4[%c5_161, %c0_162, %c0_163] : memref<9x128x128xbf16, #tpu.memory_space<vmem>>, vector<1x128x128xbf16>
    %113 = vector.shape_cast %112 : vector<1x128x128xbf16> to vector<128x128xbf16>
    %cst_164 = arith.constant dense<0.000000e+00> : vector<256x128xf32>
    %114 = tpu.matmul %111, %113, %cst_164 {dimension_numbers = #tpu.dot_dimension_numbers<[1], [0], [0], [1], [0, 0, 1, 1], [], []>} : vector<256x128xbf16>, vector<128x128xbf16>, vector<256x128xf32> -> vector<256x128xf32>
    %115 = arith.addf %109, %114 : vector<256x128xf32>
    %c0_165 = arith.constant 0 : index
    %c2_166 = arith.constant 2 : index
    %c0_167 = arith.constant 0 : index
    %c0_168 = arith.constant 0 : index
    %116 = vector.load %arg8[%c0_165, %c2_166, %c0_167, %c0_168] : memref<1x18x32x128xbf16, #tpu.memory_space<vmem>>, vector<1x16x16x128xbf16>
    %117 = vector.shape_cast %116 : vector<1x16x16x128xbf16> to vector<256x128xbf16>
    %c6_169 = arith.constant 6 : index
    %c0_170 = arith.constant 0 : index
    %c0_171 = arith.constant 0 : index
    %118 = vector.load %arg4[%c6_169, %c0_170, %c0_171] : memref<9x128x128xbf16, #tpu.memory_space<vmem>>, vector<1x128x128xbf16>
    %119 = vector.shape_cast %118 : vector<1x128x128xbf16> to vector<128x128xbf16>
    %cst_172 = arith.constant dense<0.000000e+00> : vector<256x128xf32>
    %120 = tpu.matmul %117, %119, %cst_172 {dimension_numbers = #tpu.dot_dimension_numbers<[1], [0], [0], [1], [0, 0, 1, 1], [], []>} : vector<256x128xbf16>, vector<128x128xbf16>, vector<256x128xf32> -> vector<256x128xf32>
    %121 = arith.addf %115, %120 : vector<256x128xf32>
    %c0_173 = arith.constant 0 : index
    %c2_174 = arith.constant 2 : index
    %c1_175 = arith.constant 1 : index
    %c0_176 = arith.constant 0 : index
    %122 = vector.load %arg8[%c0_173, %c2_174, %c1_175, %c0_176] : memref<1x18x32x128xbf16, #tpu.memory_space<vmem>>, vector<1x16x16x128xbf16>
    %123 = vector.shape_cast %122 : vector<1x16x16x128xbf16> to vector<256x128xbf16>
    %c7_177 = arith.constant 7 : index
    %c0_178 = arith.constant 0 : index
    %c0_179 = arith.constant 0 : index
    %124 = vector.load %arg4[%c7_177, %c0_178, %c0_179] : memref<9x128x128xbf16, #tpu.memory_space<vmem>>, vector<1x128x128xbf16>
    %125 = vector.shape_cast %124 : vector<1x128x128xbf16> to vector<128x128xbf16>
    %cst_180 = arith.constant dense<0.000000e+00> : vector<256x128xf32>
    %126 = tpu.matmul %123, %125, %cst_180 {dimension_numbers = #tpu.dot_dimension_numbers<[1], [0], [0], [1], [0, 0, 1, 1], [], []>} : vector<256x128xbf16>, vector<128x128xbf16>, vector<256x128xf32> -> vector<256x128xf32>
    %127 = arith.addf %121, %126 : vector<256x128xf32>
    %c0_181 = arith.constant 0 : index
    %c2_182 = arith.constant 2 : index
    %c2_183 = arith.constant 2 : index
    %c0_184 = arith.constant 0 : index
    %128 = vector.load %arg8[%c0_181, %c2_182, %c2_183, %c0_184] : memref<1x18x32x128xbf16, #tpu.memory_space<vmem>>, vector<1x16x16x128xbf16>
    %129 = vector.shape_cast %128 : vector<1x16x16x128xbf16> to vector<256x128xbf16>
    %c8_185 = arith.constant 8 : index
    %c0_186 = arith.constant 0 : index
    %c0_187 = arith.constant 0 : index
    %130 = vector.load %arg4[%c8_185, %c0_186, %c0_187] : memref<9x128x128xbf16, #tpu.memory_space<vmem>>, vector<1x128x128xbf16>
    %131 = vector.shape_cast %130 : vector<1x128x128xbf16> to vector<128x128xbf16>
    %cst_188 = arith.constant dense<0.000000e+00> : vector<256x128xf32>
    %132 = tpu.matmul %129, %131, %cst_188 {dimension_numbers = #tpu.dot_dimension_numbers<[1], [0], [0], [1], [0, 0, 1, 1], [], []>} : vector<256x128xbf16>, vector<128x128xbf16>, vector<256x128xf32> -> vector<256x128xf32>
    %133 = arith.addf %127, %132 : vector<256x128xf32>
    %c0_189 = arith.constant 0 : index
    %c0_190 = arith.constant 0 : index
    %134 = vector.load %arg5[%c0_189, %c0_190] : memref<1x128xf32, #tpu.memory_space<vmem>>, vector<1x128xf32>
    %135 = vector.broadcast %134 : vector<1x128xf32> to vector<256x128xf32>
    %136 = arith.addf %133, %135 : vector<256x128xf32>
    %137 = vector.shape_cast %136 : vector<256x128xf32> to vector<1x16x16x128xf32>
    %c0_191 = arith.constant 0 : index
    %c0_192 = arith.constant 0 : index
    %c0_193 = arith.constant 0 : index
    %c0_194 = arith.constant 0 : index
    %138 = vector.load %arg6[%c0_191, %c0_192, %c0_193, %c0_194] : memref<1x16x16x128xf32, #tpu.memory_space<vmem>>, vector<1x16x16x128xf32>
    tpu.vector_store %arg6[%c0_191, %c0_192, %c0_193, %c0_194], %137 {strides = array<i32>} : memref<1x16x16x128xf32, #tpu.memory_space<vmem>>, vector<1x16x16x128xf32>,
    return
  }
  func.func @transform_0(%arg0: i32) -> (i32, i32, i32, i32) {
    %c0_i32 = arith.constant 0 : i32
    %c0_i32_0 = arith.constant 0 : i32
    %c0_i32_1 = arith.constant 0 : i32
    %c0_i32_2 = arith.constant 0 : i32
    return %arg0, %c0_i32, %c0_i32_0, %c0_i32_1 : i32, i32, i32, i32
  }
  func.func @transform_1(%arg0: i32) -> (i32, i32, i32) {
    %c0_i32 = arith.constant 0 : i32
    %c0_i32_0 = arith.constant 0 : i32
    %c0_i32_1 = arith.constant 0 : i32
    %c0_i32_2 = arith.constant 0 : i32
    return %c0_i32, %c0_i32_0, %c0_i32_1 : i32, i32, i32
  }
  func.func @transform_2(%arg0: i32) -> (i32, i32) {
    %c0_i32 = arith.constant 0 : i32
    %c0_i32_0 = arith.constant 0 : i32
    %c0_i32_1 = arith.constant 0 : i32
    return %c0_i32, %c0_i32_0 : i32, i32
  }
  func.func @transform_3(%arg0: i32) -> (i32, i32, i32) {
    %c0_i32 = arith.constant 0 : i32
    %c0_i32_0 = arith.constant 0 : i32
    %c0_i32_1 = arith.constant 0 : i32
    %c0_i32_2 = arith.constant 0 : i32
    return %c0_i32, %c0_i32_0, %c0_i32_1 : i32, i32, i32
  }
  func.func @transform_4(%arg0: i32) -> (i32, i32) {
    %c0_i32 = arith.constant 0 : i32
    %c0_i32_0 = arith.constant 0 : i32
    %c0_i32_1 = arith.constant 0 : i32
    return %c0_i32, %c0_i32_0 : i32, i32
  }
  func.func @transform_5(%arg0: i32) -> (i32, i32, i32, i32) {
    %c0_i32 = arith.constant 0 : i32
    %c0_i32_0 = arith.constant 0 : i32
    %c0_i32_1 = arith.constant 0 : i32
    %c0_i32_2 = arith.constant 0 : i32
    return %arg0, %c0_i32, %c0_i32_0, %c0_i32_1 : i32, i32, i32, i32
  }
}

</mosaic_0001>

<bundles_post_ra>
// kernel: branch_separables_pallas.1
= control target key start
LH: loop header
LB: loop body
LE: loop exit
PB: predicated region body
PF: predicated region fallthrough
CT: control target
= control target key end

     0   :  { %10 = vsyncpa [#allocation5], 0  ;;  %s10370_s18 = smov 0   ;;  %s12131_s0 = inlined_call_operand.vmem [shape: bf16[2,16,16,128], index: 0, kind: input, shape index: {}]   ;;  %s12132_s1 = inlined_call_operand.vmem [shape: bf16[9,128,128], index: 1, kind: input, shape index: {}]   ;;  %s12133_s2 = inlined_call_operand.vmem [shape: f32[1,128], index: 2, kind: input, shape index: {}]   ;;  %s12134_s3 = inlined_call_operand.hbm [shape: bf16[9,128,128], index: 3, kind: input, shape index: {}]   ;;  %s12135_s4 = inlined_call_operand.vmem [shape: f32[1,128], index: 4, kind: input, shape index: {}]   ;;  %s12136_s5 = inlined_call_operand.vmem [shape: f32[2,16,16,128], index: 5, kind: output, shape index: {}]  }
   0x1 LB: > { %s10376_s19 = sadd.s32 4294967295, %s10334_s18   ;;  %p7997_p0 = scmp.ge.s32.totalorder %s10334_s18, 1  ;;  %s10334_s18 = sphi %s10370_s18, %s16_s18  }
   0x2   : > { %p157_p1 = scmp.lt.s32.totalorder %s10334_s18, 3  ;;  %s10336_s20 = smov [#allocation4]  }
   0x3   : > { %s175_s21 = sshll.u32 %s10336_s20, 4  ;;  %p12137_p3 = scmp.eq.s32.totalorder %s10376_s19, 0  ;;  %s176_s21 = int_to_ptr.vmem [resolvable:$true] %s175_s21 }
   0x4   : > { %p10380_p2 = pnand %p7997_p0, %p157_p1  ;;  %s10296_s26 = scalar_lea.hbm %s12134_s3, 9216 }
   0x5   : > { %p10297_p6 = scmp.ne.s32.totalorder %s12134_s3, %s10296_s26  ;;  %p10303_p10 = scmp.lt.u32.totalorder %s10296_s26, %s12134_s3 }
   0x6   : > { %s12139_s22 = scalar_select %p10380_p2, 1, 0 }
   0x7   : > { %p10112_p4 = pneg %p10380_p2 }
   0x9   : > { %p10389_p5 = pnand %p12137_p3, %p10112_p4 }
   0xb   : > { %p10298_p7 = pneg %p10389_p5 }
   0xd   : > { %p10299_p8 = pnand %p10298_p7, %p10297_p6 }
   0xf   : > { %p10300_p9 = pneg %p10299_p8 }
  0x11   : > { %p10305_p11 = pnand %p10303_p10, %p10300_p9 }
  0x13   : > { %10308 = shalt.err (!%p10305_p11)
}
  0x14   : > { %s10309_s6 = scalar_lea.vmem %s176_s21, 9216  ;;  %p10317_p1 = scmp.lt.s32.totalorder %s176_s21, %s176_s21 }
  0x15   : > { %p10310_p12 = scmp.ne.s32.totalorder %s176_s21, %s10309_s6  ;;  %p10318_p4 = scmp.lt.s32.totalorder %s10309_s6, %s10309_s6 }
  0x17   : > { %p10312_p13 = pnand %p10310_p12, %p10298_p7  ;;  %p10319_p3 = por %p10318_p4, %p10317_p1 }
  0x19   : > { %p10313_p0 = pneg %p10312_p13 }
  0x1b   : > { %p10320_p2 = pnand %p10319_p3, %p10313_p0 }
  0x1d   : > { %10323 = shalt.err (!%p10320_p2)
}
  0x1e   : > { %s10337_s7 = smov 64   ;;  %s10338_s8 = smov 4  }
  0x1f   : > { %10115 = dma.hbm_to_vmem [thread:$0]  (!%p10389_p5), %s12134_s3, 9216, %s176_s21, [#allocation5], %s10337_s7, %s10337_s7, %s10338_s8  }
  0x20   : > { %p12141_p6 = scmp.ne.s32.totalorder %s12139_s22, 0 }
  0x21   : > { %p12142_p8 = scmp.eq.s32.totalorder (!%p12141_p6), %s10376_s19, 0 }
  0x22   : > { %202 = sbr.rel (%p12141_p6) target bundleno = 1629 (0x65d), region = 40 }
  0x29   : > { %10329 = dma.done.wait (%p12142_p8), [#allocation5], 9216   ;;  %p12143_p7 = pmov %p12142_p8 }
  0x2a   : > { %v10339_v0 = vmov 0   ;;  %p230_p2 = scmp.lt.s32.totalorder %s10376_s19, 1  ;;  %vm248_vm0 = vsmask.f32 256  ;;  %v10130_v1 = vld [vmem:[%s12132_s1 + $0x40] sm:$0xff]   ;;  %v10131_v2 = vld [vmem:[%s12132_s1 + $0x48] sm:$0xff]  }
  0x2b   : > { %10331 = vsyncadd (%p12143_p7), [#allocation5], 4294958080  ;;  %241 = vst [vmem:[#allocation2] sm:$0xff] %v10339_v0  ;;  %8732 = vmatprep.subr.bf16.mxu0 %v10130_v1  ;;  %vm298_vm1 = vsmask.f32 7938  ;;  %vm247_vm2 = vcmask 1040384  }
  0x2c   : > { %242 = vst [vmem:[#allocation2 + $0x8] sm:$0xff] %v10339_v0  ;;  %244 = vst [vmem:[#allocation2 + $0x110] sm:$0xff] %v10339_v0  ;;  %s12151_s19 = smov (!%p230_p2, %s10376_s19), 1  ;;  %8733 = vmatpush3.bf16.msra.mxu0 %v10130_v1  ;;  %v10132_v3 = vld [vmem:[%s12132_s1 + $0x50] sm:$0xff]   ;;  %v890_v4 = vrot.slane %v10339_v0, 1  ;;  %v10133_v7 = vld [vmem:[%s12132_s1 + $0x58] sm:$0xff]  }
  0x2d   : > { %245 = vst [vmem:[#allocation2 + $0x118] sm:$0xff] %v10339_v0  ;;  %348 = vst [vmem:[#allocation3] sm:$0xff] %v10339_v0  ;;  %s8298_s15 = sshll.u32 %s12151_s19, 7  ;;  %8734 = vmatprep.subr.bf16.mxu0 %v10131_v2  ;;  %vm884_vm4 = vsmask.f32 7424  ;;  %vm738_vm6 = vcmask 1047552  }
  0x2e   : > { %349 = vst [vmem:[#allocation3 + $0x8] sm:$0xff] %v10339_v0  ;;  %351 = vst [vmem:[#allocation3 + $0x110] sm:$0xff] %v10339_v0  ;;  %s10445_s22 = scalar_lea.vmem %s12131_s0, %s8298_s15  ;;  %v250_v9 = vld [vmem:[#allocation2 + $0x10] sm:$0x1]  ;;  %v300_v10 = vld [vmem:[#allocation2 + $0x18] sm:$0x1] }
  0x2f   : > { %352 = vst [vmem:[#allocation3 + $0x118] sm:$0xff] %v10339_v0  ;;  %vm10438_vm3 = vmand %vm247_vm2, %vm248_vm0  ;;  %v450_v14 = vld [vmem:[%s10445_s22] sm:$0xf]  ;;  %v451_v15 = vld [vmem:[%s10445_s22 + $0x4] sm:$0xf]  ;;  %vm1576_vm8 = vcmask 1046528  }
  0x30   : > { %vm10448_vm5 = vmand %vm247_vm2, %vm298_vm1  ;;  %8735 = vmatpush3.bf16.msra.mxu0 %v10131_v2  ;;  %v251_v12 = vsel %vm10438_vm3, 0, %v250_v9  ;;  %v482_v16 = vmax.bf16 %v10339_v0, %v450_v14  ;;  %v10134_v17 = vld [vmem:[%s12132_s1 + $0x60] sm:$0xff]   ;;  %v483_v19 = vmax.bf16 %v10339_v0, %v451_v15  ;;  %v303_v21 = vld [vmem:[#allocation2 + $0x28] sm:$0x1]  ;;  %s8299_s26 = sshll.u32 %s12151_s19, 8 }
  0x31   : > { %8736 = vmatprep.subr.bf16.mxu0 %v10132_v3  ;;  %v301_v13 = vsel %vm10448_vm5, 0, %v300_v10  ;;  %252 = vst [vmem:[#allocation2 + $0x10] sm:$0x1] %v251_v12  ;;  %v253_v20 = vld [vmem:[#allocation2 + $0x20] sm:$0x1]  ;;  %v304_v23 = vsel %vm10448_vm5, 0, %v303_v21  ;;  %vm10491_vm7 = vmand %vm738_vm6, %vm298_vm1  ;;  %s12062_s6 = scalar_lea.vmem %s12136_s5, %s8299_s26 }
  0x32   : > { %302 = vst [vmem:[#allocation2 + $0x18] sm:$0x1] %v301_v13  ;;  %v254_v22 = vsel %vm10438_vm3, 0, %v253_v20  ;;  %v452_v24 = vld [vmem:[%s10445_s22 + $0x8] sm:$0xf]  ;;  %v8006_v27 = vcombine.low %v482_v16, %v483_v19  ;;  %v10498_v52 = vld [vmem:[%s12132_s1 + $0x70] sm:$0xff]  }
  0x33   : > { %v868_v8 = vld [vmem:[#allocation2 + $0x8] sm:$0x1]  ;;  %v453_v25 = vld [vmem:[%s10445_s22 + $0xc] sm:$0xf]  ;;  %255 = vst [vmem:[#allocation2 + $0x20] sm:$0x1] %v254_v22  ;;  %v484_v28 = vmax.bf16 %v10339_v0, %v452_v24 }
  0x34   : > { %v893_v11 = vshll.u32 %v868_v8, 16  ;;  %8737 = vmatpush3.bf16.msra.mxu0 %v10132_v3  ;;  %305 = vst [vmem:[#allocation2 + $0x28] sm:$0x1] %v304_v23  ;;  %v485_v29 = vmax.bf16 %v10339_v0, %v453_v25  ;;  %v256_v30 = vld [vmem:[#allocation2 + $0x30] sm:$0x1]  ;;  %v595_v37 = vshrl.u32 %v8006_v27, 16 }
  0x35   : > { %8738 = vmatprep.subr.bf16.mxu0 %v10133_v7  ;;  %v306_v31 = vld [vmem:[#allocation2 + $0x38] sm:$0x1]  ;;  %v454_v32 = vld [vmem:[%s10445_s22 + $0x10] sm:$0xf]  ;;  %v257_v33 = vsel %vm10438_vm3, 0, %v256_v30  ;;  %v598_v38 = vshll.u32 %v8006_v27, 16 }
  0x36   : > { %v895_v18 = vrot.slane %v893_v11, 1  ;;  %v307_v34 = vsel %vm10448_vm5, 0, %v306_v31  ;;  %v455_v35 = vld [vmem:[%s10445_s22 + $0x14] sm:$0xf]  ;;  %v486_v36 = vmax.bf16 %v10339_v0, %v454_v32  ;;  %v8007_v39 = vcombine.low %v484_v28, %v485_v29  ;;  %258 = vst [vmem:[#allocation2 + $0x30] sm:$0x1] %v257_v33 }
  0x37   : > { %308 = vst [vmem:[#allocation2 + $0x38] sm:$0x1] %v307_v34  ;;  %v487_v40 = vmax.bf16 %v10339_v0, %v455_v35  ;;  %v259_v41 = vld [vmem:[#allocation2 + $0x40] sm:$0x1]  ;;  %v10135_v42 = vld [vmem:[%s12132_s1 + $0x68] sm:$0xff]   ;;  %v597_v46 = vrot.slane %v595_v37, 7 }
  0x38   : > { %v896_v26 = vsel %vm884_vm4, %v890_v4, %v895_v18  ;;  %8739 = vmatpush3.bf16.msra.mxu0 %v10133_v7  ;;  %v260_v43 = vsel %vm10438_vm3, 0, %v259_v41  ;;  %v309_v44 = vld [vmem:[#allocation2 + $0x48] sm:$0x1]  ;;  %v456_v45 = vld [vmem:[%s10445_s22 + $0x18] sm:$0xf]  ;;  %v602_v49 = vshrl.u32 %v8007_v39, 16 }
  0x39   : > { %8748 = vmatprep.mubr.bf16.mxu0 %v896_v26  ;;  %8740 = vmatprep.subr.bf16.mxu0 %v10134_v17  ;;  %v743_v48 = vld [vmem:[#allocation2 + $0x18] sm:$0x1]  ;;  %v605_v50 = vshll.u32 %v8007_v39, 16  ;;  %v8008_v51 = vcombine.low %v486_v36, %v487_v40  ;;  %261 = vst [vmem:[#allocation2 + $0x40] sm:$0x1] %v260_v43  ;;  %v740_v53 = vld [vmem:[#allocation2 + $0x10] sm:$0xff]  ;;  %v488_v56 = vmax.bf16 %v10339_v0, %v456_v45 }
  0x3a   : > { %v310_v54 = vsel %vm10448_vm5, 0, %v309_v44  ;;  %v457_v55 = vld [vmem:[%s10445_s22 + $0x1c] sm:$0xf]  ;;  %v262_v57 = vld [vmem:[#allocation2 + $0x50] sm:$0x1]  ;;  %v600_v58 = vor.u32 %v598_v38, %v597_v46  ;;  %v744_v59 = vsel %vm10438_vm3, %v597_v46, %v743_v48  ;;  %v604_v60 = vrot.slane %v602_v49, 7 }
  0x3b   : > { %v609_v61 = vshrl.u32 %v8008_v51, 16  ;;  %311 = vst [vmem:[#allocation2 + $0x48] sm:$0x1] %v310_v54  ;;  %v312_v62 = vld [vmem:[#allocation2 + $0x58] sm:$0x1]  ;;  %v746_v1 = vld [vmem:[#allocation2 + $0x20] sm:$0xff]  ;;  %v489_v4 = vmax.bf16 %v10339_v0, %v457_v55 }
  0x3c   : > { %8741 = vmatpush3.bf16.msra.mxu0 %v10134_v17  ;;  %v458_v63 = vld [vmem:[%s10445_s22 + $0x20] sm:$0xf]  ;;  %745 = vst [vmem:[#allocation2 + $0x18] sm:$0x1] %v744_v59  ;;  %v749_v2 = vld [vmem:[#allocation2 + $0x28] sm:$0x1]  ;;  %v10514_v9 = vsel %vm10491_vm7, %v600_v58, %v740_v53  ;;  %v607_v10 = vor.u32 %v605_v50, %v604_v60 }
  0x3d   : > { %8742 = vmatprep.subr.bf16.mxu0 %v10135_v42  ;;  %v612_v3 = vshll.u32 %v8008_v51, 16  ;;  %v263_v7 = vsel %vm10438_vm3, 0, %v262_v57  ;;  %v313_v8 = vsel %vm10448_vm5, 0, %v312_v62  ;;  %v750_v11 = vsel %vm10438_vm3, %v604_v60, %v749_v2  ;;  %v459_v13 = vld [vmem:[%s10445_s22 + $0x24] sm:$0xf]  ;;  %742 = vst [vmem:[#allocation2 + $0x10] sm:$0xff] %v10514_v9 }
  0x3e   : > { %v611_v12 = vrot.slane %v609_v61, 7  ;;  %264 = vst [vmem:[#allocation2 + $0x50] sm:$0x1] %v263_v7  ;;  %314 = vst [vmem:[#allocation2 + $0x58] sm:$0x1] %v313_v8  ;;  %v898_v14 = vshrl.u32 %v10514_v9, 16  ;;  %v8009_v18 = vcombine.low %v488_v56, %v489_v4  ;;  %v490_v19 = vmax.bf16 %v10339_v0, %v458_v63 }
  0x3f   : > { %v900_v15 = vshll.u32 %v10514_v9, 16  ;;  %751 = vst [vmem:[#allocation2 + $0x28] sm:$0x1] %v750_v11  ;;  %v752_v16 = vld [vmem:[#allocation2 + $0x30] sm:$0xff]  ;;  %v755_v17 = vld [vmem:[#allocation2 + $0x38] sm:$0x1]  ;;  %v10528_v21 = vsel %vm10491_vm7, %v607_v10, %v746_v1  ;;  %v491_v24 = vmax.bf16 %v10339_v0, %v459_v13 }
  0x40   : > { %8743 = vmatpush3.bf16.msra.mxu0 %v10135_v42  ;;  %v10137_v20 = vld [vmem:[%s12132_s1 + $0x78] sm:$0xff]   ;;  %v614_v22 = vor.u32 %v612_v3, %v611_v12  ;;  %v756_v23 = vsel %vm10438_vm3, %v611_v12, %v755_v17  ;;  %v265_v25 = vld [vmem:[#allocation2 + $0x60] sm:$0x1]  ;;  %748 = vst [vmem:[#allocation2 + $0x20] sm:$0xff] %v10528_v21  ;;  %v910_v27 = vshrl.u32 %v10528_v21, 16  ;;  %v912_v28 = vshll.u32 %v10528_v21, 16 }
  0x41   : > { %8744 = vmatprep.subr.bf16.mxu0 %v10498_v52  ;;  %v902_v26 = vrot.slane %v900_v15, 1  ;;  %757 = vst [vmem:[#allocation2 + $0x38] sm:$0x1] %v756_v23  ;;  %v616_v29 = vshrl.u32 %v8009_v18, 16  ;;  %v315_v30 = vld [vmem:[#allocation2 + $0x68] sm:$0x1]  ;;  %v8010_v33 = vcombine.low %v490_v19, %v491_v24 }
  0x42   : > { %v10539_v31 = vsel %vm10491_vm7, %v614_v22, %v752_v16  ;;  %v619_v32 = vshll.u32 %v8009_v18, 16  ;;  %v266_v34 = vsel %vm10438_vm3, 0, %v265_v25  ;;  %v460_v35 = vld [vmem:[%s10445_s22 + $0x28] sm:$0xf]  ;;  %v461_v36 = vld [vmem:[%s10445_s22 + $0x2c] sm:$0xf] }
  0x43   : > { %v914_v37 = vrot.slane %v912_v28, 1  ;;  %754 = vst [vmem:[#allocation2 + $0x30] sm:$0xff] %v10539_v31  ;;  %v922_v38 = vshrl.u32 %v10539_v31, 16  ;;  %v924_v39 = vshll.u32 %v10539_v31, 16  ;;  %v761_v40 = vld [vmem:[#allocation2 + $0x48] sm:$0x1]  ;;  %v903_v46 = vor.u32 %v902_v26, %v898_v14 }
  0x44   : > { %267 = vst [vmem:[#allocation2 + $0x60] sm:$0x1] %v266_v34  ;;  %8745 = vmatpush3.bf16.msra.mxu0 %v10498_v52  ;;  %v869_v41 = vld [vmem:[#allocation2 + $0x18] sm:$0x1]  ;;  %v618_v42 = vrot.slane %v616_v29, 7  ;;  %v623_v43 = vshrl.u32 %v8010_v33, 16  ;;  %v492_v58 = vmax.bf16 %v10339_v0, %v460_v35  ;;  %v493_v1 = vmax.bf16 %v10339_v0, %v461_v36 }
  0x45   : > { %v626_v44 = vshll.u32 %v8010_v33, 16  ;;  %v316_v45 = vsel %vm10448_vm5, 0, %v315_v30  ;;  %8746 = vmatprep.subr.bf16.mxu0 %v10137_v20  ;;  %v905_v48 = vshll.u32 %v869_v41, 16  ;;  %v10138_v49 = vld [vmem:[%s12132_s1] sm:$0xff]   ;;  %v915_v50 = vor.u32 %v914_v37, %v910_v27  ;;  %v767_v54 = vld [vmem:[#allocation2 + $0x58] sm:$0x1] }
  0x46   : > { %v926_v51 = vrot.slane %v924_v39, 1  ;;  %v758_v53 = vld [vmem:[#allocation2 + $0x40] sm:$0xff]  ;;  %317 = vst [vmem:[#allocation2 + $0x68] sm:$0x1] %v316_v45  ;;  %v870_v52 = vld [vmem:[#allocation2 + $0x28] sm:$0x1]  ;;  %v621_v55 = vor.u32 %v619_v32, %v618_v42  ;;  %v762_v56 = vsel %vm10438_vm3, %v618_v42, %v761_v40  ;;  %v8011_v19 = vcombine.low %v492_v58, %v493_v1 }
  0x47   : > { %v625_v57 = vrot.slane %v623_v43, 7  ;;  %v268_v59 = vld [vmem:[#allocation2 + $0x70] sm:$0x1]  ;;  %v907_v60 = vrot.slane %v905_v48, 1  ;;  %v917_v61 = vshll.u32 %v870_v52, 16  ;;  %v10139_v15 = vld [vmem:[%s12132_s1 + $0x8] sm:$0xff]  }
  0x48   : > { %v927_v62 = vor.u32 %v926_v51, %v922_v38  ;;  %763 = vst [vmem:[#allocation2 + $0x48] sm:$0x1] %v762_v56  ;;  %v764_v63 = vld [vmem:[#allocation2 + $0x50] sm:$0xff]  ;;  %v318_v2 = vld [vmem:[#allocation2 + $0x78] sm:$0x1]  ;;  %8747 = vmatpush3.bf16.msra.mxu0 %v10137_v20  ;;  %v10560_v4 = vsel %vm10491_vm7, %v621_v55, %v758_v53  ;;  %v269_v10 = vsel %vm10438_vm3, 0, %v268_v59 }
  0x49   : > { %v871_v3 = vld [vmem:[#allocation2 + $0x38] sm:$0x1]  ;;  %v628_v7 = vor.u32 %v626_v44, %v625_v57  ;;  %v768_v8 = vsel %vm10438_vm3, %v625_v57, %v767_v54  ;;  %v462_v11 = vld [vmem:[%s10445_s22 + $0x30] sm:$0xf]  ;;  %v908_v12 = vsel %vm884_vm4, %v903_v46, %v907_v60  ;;  %8780 = vmatprep.subr.bf16.mxu0 %v10138_v49  ;;  %v919_v13 = vrot.slane %v917_v61, 1  ;;  %760 = vst [vmem:[#allocation2 + $0x40] sm:$0xff] %v10560_v4 }
  0x4a   : > { %v929_v14 = vshll.u32 %v871_v3, 16  ;;  %v934_v16 = vshrl.u32 %v10560_v4, 16  ;;  %769 = vst [vmem:[#allocation2 + $0x58] sm:$0x1] %v768_v8  ;;  %270 = vst [vmem:[#allocation2 + $0x70] sm:$0x1] %v269_v10  ;;  %v494_v34 = vmax.bf16 %v10339_v0, %v462_v11 }
  0x4b   : > { %v936_v17 = vshll.u32 %v10560_v4, 16  ;;  %v10576_v18 = vsel %vm10491_vm7, %v628_v7, %v764_v63  ;;  %v319_v20 = vsel %vm10448_vm5, 0, %v318_v2  ;;  %v463_v22 = vld [vmem:[%s10445_s22 + $0x34] sm:$0xf]  ;;  %8749 = vmatmul.mubr.bf16.vlgmr.msra.gmra.mrb[0].mxu0 %v908_v12  ;;  %v920_v23 = vsel %vm884_vm4, %v915_v50, %v919_v13  ;;  %v271_v27 = vld [vmem:[#allocation2 + $0x80] sm:$0x1] }
  0x4c   : > { %v931_v24 = vrot.slane %v929_v14, 1  ;;  %766 = vst [vmem:[#allocation2 + $0x50] sm:$0xff] %v10576_v18  ;;  %v946_v25 = vshrl.u32 %v10576_v18, 16  ;;  %v948_v26 = vshll.u32 %v10576_v18, 16  ;;  %320 = vst [vmem:[#allocation2 + $0x78] sm:$0x1] %v319_v20  ;;  %8781 = vmatpush3.bf16.msra.mxu0 %v10138_v49  ;;  %8752 = vmatprep.mubr.bf16.mxu0 %v920_v23  ;;  %v495_v36 = vmax.bf16 %v10339_v0, %v463_v22 }
  0x4d   : > { %v938_v28 = vrot.slane %v936_v17, 1  ;;  %v10140_v29 = vld [vmem:[%s12132_s1 + $0x10] sm:$0xff]   ;;  %v630_v30 = vshrl.u32 %v8011_v19, 16  ;;  %v633_v32 = vshll.u32 %v8011_v19, 16  ;;  %v773_v33 = vld [vmem:[#allocation2 + $0x68] sm:$0x1]  ;;  %8782 = vmatprep.subr.bf16.mxu0 %v10139_v15 }
  0x4e   : > { %v950_v35 = vrot.slane %v948_v26, 1  ;;  %v272_v37 = vsel %vm10438_vm3, 0, %v271_v27  ;;  %v321_v38 = vld [vmem:[#allocation2 + $0x88] sm:$0x1]  ;;  %v464_v39 = vld [vmem:[%s10445_s22 + $0x38] sm:$0xf]  ;;  %v932_v40 = vsel %vm884_vm4, %v927_v62, %v931_v24  ;;  %v8012_v50 = vcombine.low %v494_v34, %v495_v36 }
  0x4f   : > { %v872_v41 = vld [vmem:[#allocation2 + $0x48] sm:$0x1]  ;;  %v632_v42 = vrot.slane %v630_v30, 7  ;;  %273 = vst [vmem:[#allocation2 + $0x80] sm:$0x1] %v272_v37  ;;  %v322_v43 = vsel %vm10448_vm5, 0, %v321_v38  ;;  %v496_v45 = vmax.bf16 %v10339_v0, %v464_v39  ;;  %v939_v46 = vor.u32 %v938_v28, %v934_v16 }
  0x50   : > { %v465_v44 = vld [vmem:[%s10445_s22 + $0x3c] sm:$0xf]  ;;  %v941_v48 = vshll.u32 %v872_v41, 16  ;;  %v770_v49 = vld [vmem:[#allocation2 + $0x60] sm:$0xff]  ;;  %323 = vst [vmem:[#allocation2 + $0x88] sm:$0x1] %v322_v43  ;;  %8783 = vmatpush3.bf16.msra.mxu0 %v10139_v15  ;;  %v951_v2 = vor.u32 %v950_v35, %v946_v25 }
  0x51   : > { %v497_v51 = vmax.bf16 %v10339_v0, %v465_v44  ;;  %v274_v53 = vld [vmem:[#allocation2 + $0x90] sm:$0x1]  ;;  %v324_v54 = vld [vmem:[#allocation2 + $0x98] sm:$0x1]  ;;  %v635_v55 = vor.u32 %v633_v32, %v632_v42  ;;  %v774_v56 = vsel %vm10438_vm3, %v632_v42, %v773_v33  ;;  %8784 = vmatprep.subr.bf16.mxu0 %v10140_v29  ;;  %v637_v62 = vshrl.u32 %v8012_v50, 16  ;;  %v10142_v25 = vld [vmem:[%s12132_s1 + $0x20] sm:$0xff]  }
  0x52   : > { %v873_v52 = vld [vmem:[#allocation2 + $0x58] sm:$0x1]  ;;  %v275_v58 = vsel %vm10438_vm3, 0, %v274_v53  ;;  %v325_v59 = vsel %vm10448_vm5, 0, %v324_v54  ;;  %v943_v60 = vrot.slane %v941_v48, 1  ;;  %v640_v63 = vshll.u32 %v8012_v50, 16 }
  0x53   : > { %v10141_v57 = vld [vmem:[%s12132_s1 + $0x18] sm:$0xff]   ;;  %v953_v61 = vshll.u32 %v873_v52, 16  ;;  %775 = vst [vmem:[#allocation2 + $0x68] sm:$0x1] %v774_v56  ;;  %276 = vst [vmem:[#allocation2 + $0x90] sm:$0x1] %v275_v58  ;;  %v10611_v3 = vsel %vm10491_vm7, %v635_v55, %v770_v49  ;;  %v8013_v8 = vcombine.low %v496_v45, %v497_v51  ;;  %8753 = vmatmul.mubr.bf16.gmra.mrb[4].mxu0 %v932_v40 }
  0x54   : > { %326 = vst [vmem:[#allocation2 + $0x98] sm:$0x1] %v325_v59  ;;  %v466_v1 = vld [vmem:[%s10445_s22 + $0x40] sm:$0xf]  ;;  %v779_v7 = vld [vmem:[#allocation2 + $0x78] sm:$0x1]  ;;  %v944_v12 = vsel %vm884_vm4, %v939_v46, %v943_v60  ;;  %8785 = vmatpush3.bf16.msra.mxu0 %v10140_v29 }
  0x55   : > { %v467_v10 = vld [vmem:[%s10445_s22 + $0x44] sm:$0xf]  ;;  %v498_v11 = vmax.bf16 %v10339_v0, %v466_v1  ;;  %v955_v13 = vrot.slane %v953_v61, 1  ;;  %772 = vst [vmem:[#allocation2 + $0x60] sm:$0xff] %v10611_v3  ;;  %v958_v14 = vshrl.u32 %v10611_v3, 16  ;;  %v960_v15 = vshll.u32 %v10611_v3, 16  ;;  %8756 = vmatprep.mubr.bf16.mxu0 %v944_v12  ;;  %8786 = vmatprep.subr.bf16.mxu0 %v10141_v57 }
  0x56   : > { %v639_v16 = vrot.slane %v637_v62, 7  ;;  %v644_v17 = vshrl.u32 %v8013_v8, 16  ;;  %v647_v19 = vshll.u32 %v8013_v8, 16  ;;  %v499_v20 = vmax.bf16 %v10339_v0, %v467_v10  ;;  %v277_v22 = vld [vmem:[#allocation2 + $0xa0] sm:$0x1]  ;;  %v776_v24 = vld [vmem:[#allocation2 + $0x70] sm:$0xff] }
  0x57   : > { %v962_v23 = vrot.slane %v960_v15, 1  ;;  %v278_v26 = vsel %vm10438_vm3, 0, %v277_v22  ;;  %v327_v27 = vld [vmem:[#allocation2 + $0xa8] sm:$0x1]  ;;  %v956_v35 = vsel %vm884_vm4, %v951_v2, %v955_v13  ;;  %v782_v37 = vld [vmem:[#allocation2 + $0x80] sm:$0xff] }
  0x58   : > { %v642_v28 = vor.u32 %v640_v63, %v639_v16  ;;  %v780_v29 = vsel %vm10438_vm3, %v639_v16, %v779_v7  ;;  %v646_v30 = vrot.slane %v644_v17, 7  ;;  %v785_v32 = vld [vmem:[#allocation2 + $0x88] sm:$0x1]  ;;  %v8014_v33 = vcombine.low %v498_v11, %v499_v20  ;;  %279 = vst [vmem:[#allocation2 + $0xa0] sm:$0x1] %v278_v26  ;;  %8787 = vmatpush3.bf16.msra.mxu0 %v10141_v57  ;;  %v10144_v20 = vld [vmem:[%s12132_s1 + $0x30] sm:$0xff]  }
  0x59   : > { %v468_v34 = vld [vmem:[%s10445_s22 + $0x48] sm:$0xf]  ;;  %v963_v36 = vor.u32 %v962_v23, %v958_v14  ;;  %781 = vst [vmem:[#allocation2 + $0x78] sm:$0x1] %v780_v29  ;;  %v328_v38 = vsel %vm10448_vm5, 0, %v327_v27  ;;  %8788 = vmatprep.subr.bf16.mxu0 %v10142_v25 }
  0x5a   : > { %v469_v39 = vld [vmem:[%s10445_s22 + $0x4c] sm:$0xf]  ;;  %v500_v40 = vmax.bf16 %v10339_v0, %v468_v34  ;;  %v280_v41 = vld [vmem:[#allocation2 + $0xb0] sm:$0x1]  ;;  %v874_v42 = vld [vmem:[#allocation2 + $0x68] sm:$0x1]  ;;  %v10635_v43 = vsel %vm10491_vm7, %v642_v28, %v776_v24  ;;  %v649_v44 = vor.u32 %v647_v19, %v646_v30  ;;  %v786_v45 = vsel %vm10438_vm3, %v646_v30, %v785_v32 }
  0x5b   : > { %v651_v46 = vshrl.u32 %v8014_v33, 16  ;;  %v791_v48 = vld [vmem:[#allocation2 + $0x98] sm:$0x1]  ;;  %329 = vst [vmem:[#allocation2 + $0xa8] sm:$0x1] %v328_v38  ;;  %v10143_v49 = vld [vmem:[%s12132_s1 + $0x28] sm:$0xff]   ;;  %v501_v58 = vmax.bf16 %v10339_v0, %v469_v39  ;;  %8757 = vmatmul.mubr.bf16.gmra.mrb[8].mxu0 %v956_v35 }
  0x5c   : > { %v965_v50 = vshll.u32 %v874_v42, 16  ;;  %778 = vst [vmem:[#allocation2 + $0x70] sm:$0xff] %v10635_v43  ;;  %v970_v51 = vshrl.u32 %v10635_v43, 16  ;;  %v972_v53 = vshll.u32 %v10635_v43, 16  ;;  %787 = vst [vmem:[#allocation2 + $0x88] sm:$0x1] %v786_v45  ;;  %v10647_v56 = vsel %vm10491_vm7, %v649_v44, %v782_v37  ;;  %8789 = vmatpush3.bf16.msra.mxu0 %v10142_v25 }
  0x5d   : > { %v654_v54 = vshll.u32 %v8014_v33, 16  ;;  %v788_v52 = vld [vmem:[#allocation2 + $0x90] sm:$0xff]  ;;  %v330_v55 = vld [vmem:[#allocation2 + $0xb8] sm:$0x1]  ;;  %v653_v57 = vrot.slane %v651_v46, 7  ;;  %v281_v59 = vsel %vm10438_vm3, 0, %v280_v41  ;;  %v8015_v10 = vcombine.low %v500_v40, %v501_v58  ;;  %8790 = vmatprep.subr.bf16.mxu0 %v10143_v49 }
  0x5e   : > { %v470_v60 = vld [vmem:[%s10445_s22 + $0x50] sm:$0xf]  ;;  %v471_v61 = vld [vmem:[%s10445_s22 + $0x54] sm:$0xf]  ;;  %v967_v62 = vrot.slane %v965_v50, 1  ;;  %v974_v63 = vrot.slane %v972_v53, 1 }
  0x5f   : > { %784 = vst [vmem:[#allocation2 + $0x80] sm:$0xff] %v10647_v56  ;;  %v982_v1 = vshrl.u32 %v10647_v56, 16  ;;  %v984_v2 = vshll.u32 %v10647_v56, 16  ;;  %282 = vst [vmem:[#allocation2 + $0xb0] sm:$0x1] %v281_v59  ;;  %v656_v7 = vor.u32 %v654_v54, %v653_v57  ;;  %v792_v8 = vsel %vm10438_vm3, %v653_v57, %v791_v48  ;;  %v794_v42 = vld [vmem:[#allocation2 + $0xa0] sm:$0xff] }
  0x60   : > { %v331_v11 = vsel %vm10448_vm5, 0, %v330_v55  ;;  %v283_v12 = vld [vmem:[#allocation2 + $0xc0] sm:$0x1]  ;;  %v968_v13 = vsel %vm884_vm4, %v963_v36, %v967_v62  ;;  %v975_v14 = vor.u32 %v974_v63, %v970_v51  ;;  %793 = vst [vmem:[#allocation2 + $0x98] sm:$0x1] %v792_v8  ;;  %v502_v16 = vmax.bf16 %v10339_v0, %v470_v60  ;;  %8791 = vmatpush3.bf16.msra.mxu0 %v10143_v49  ;;  %v10145_v53 = vld [vmem:[%s12132_s1 + $0x38] sm:$0xff]  }
  0x61   : > { %v986_v15 = vrot.slane %v984_v2, 1  ;;  %332 = vst [vmem:[#allocation2 + $0xb8] sm:$0x1] %v331_v11  ;;  %v333_v17 = vld [vmem:[#allocation2 + $0xc8] sm:$0x1]  ;;  %8760 = vmatprep.mubr.bf16.mxu0 %v968_v13  ;;  %v10669_v23 = vsel %vm10491_vm7, %v656_v7, %v788_v52  ;;  %v658_v24 = vshrl.u32 %v8015_v10, 16  ;;  %v503_v26 = vmax.bf16 %v10339_v0, %v471_v61  ;;  %8792 = vmatprep.subr.bf16.mxu0 %v10144_v20 }
  0x62   : > { %v472_v19 = vld [vmem:[%s10445_s22 + $0x58] sm:$0xf]  ;;  %v661_v25 = vshll.u32 %v8015_v10, 16  ;;  %v473_v27 = vld [vmem:[%s10445_s22 + $0x5c] sm:$0xf]  ;;  %790 = vst [vmem:[#allocation2 + $0x90] sm:$0xff] %v10669_v23 }
  0x63   : > { %v875_v22 = vld [vmem:[#allocation2 + $0x78] sm:$0x1]  ;;  %v987_v29 = vor.u32 %v986_v15, %v982_v1  ;;  %v994_v30 = vshrl.u32 %v10669_v23, 16  ;;  %v996_v32 = vshll.u32 %v10669_v23, 16  ;;  %v797_v33 = vld [vmem:[#allocation2 + $0xa8] sm:$0x1]  ;;  %v8016_v36 = vcombine.low %v502_v16, %v503_v26 }
  0x64   : > { %v977_v28 = vshll.u32 %v875_v22, 16  ;;  %v876_v34 = vld [vmem:[#allocation2 + $0x88] sm:$0x1]  ;;  %v660_v35 = vrot.slane %v658_v24, 7  ;;  %v284_v37 = vsel %vm10438_vm3, 0, %v283_v12  ;;  %v334_v38 = vsel %vm10448_vm5, 0, %v333_v17  ;;  %8793 = vmatpush3.bf16.msra.mxu0 %v10144_v20 }
  0x65   : > { %v989_v40 = vshll.u32 %v876_v34, 16  ;;  %v998_v41 = vrot.slane %v996_v32, 1  ;;  %285 = vst [vmem:[#allocation2 + $0xc0] sm:$0x1] %v284_v37  ;;  %335 = vst [vmem:[#allocation2 + $0xc8] sm:$0x1] %v334_v38  ;;  %v504_v44 = vmax.bf16 %v10339_v0, %v472_v19  ;;  %v505_v57 = vmax.bf16 %v10339_v0, %v473_v27  ;;  %8794 = vmatprep.subr.bf16.mxu0 %v10145_v53 }
  0x66   : > { %v979_v39 = vrot.slane %v977_v28, 1  ;;  %v286_v45 = vld [vmem:[#allocation2 + $0xd0] sm:$0x1]  ;;  %v663_v46 = vor.u32 %v661_v25, %v660_v35  ;;  %v798_v48 = vsel %vm10438_vm3, %v660_v35, %v797_v33  ;;  %v665_v49 = vshrl.u32 %v8016_v36, 16  ;;  %v336_v51 = vld [vmem:[#allocation2 + $0xd8] sm:$0x1] }
  0x67   : > { %v668_v50 = vshll.u32 %v8016_v36, 16  ;;  %v991_v52 = vrot.slane %v989_v40, 1  ;;  %v999_v55 = vor.u32 %v998_v41, %v994_v30  ;;  %799 = vst [vmem:[#allocation2 + $0xa8] sm:$0x1] %v798_v48  ;;  %v474_v58 = vld [vmem:[%s10445_s22 + $0x60] sm:$0xf]  ;;  %v8017_v15 = vcombine.low %v504_v44, %v505_v57 }
  0x68   : > { %v980_v54 = vsel %vm884_vm4, %v975_v14, %v979_v39  ;;  %v475_v59 = vld [vmem:[%s10445_s22 + $0x64] sm:$0xf]  ;;  %v877_v60 = vld [vmem:[#allocation2 + $0x98] sm:$0x1]  ;;  %v10692_v61 = vsel %vm10491_vm7, %v663_v46, %v794_v42  ;;  %v667_v62 = vrot.slane %v665_v49, 7  ;;  %v287_v1 = vsel %vm10438_vm3, 0, %v286_v45  ;;  %8795 = vmatpush3.bf16.msra.mxu0 %v10145_v53 }
  0x69   : > { %8761 = vmatmul.mubr.bf16.gmra.mrb[12].mxu0 %v980_v54  ;;  %v803_v63 = vld [vmem:[#allocation2 + $0xb8] sm:$0x1]  ;;  %v506_v2 = vmax.bf16 %v10339_v0, %v474_v58  ;;  %v992_v7 = vsel %vm884_vm4, %v987_v29, %v991_v52  ;;  %v1001_v8 = vshll.u32 %v877_v60, 16  ;;  %796 = vst [vmem:[#allocation2 + $0xa0] sm:$0xff] %v10692_v61  ;;  %v1006_v10 = vshrl.u32 %v10692_v61, 16  ;;  %v800_v12 = vld [vmem:[#allocation2 + $0xb0] sm:$0xff] }
  0x6a   : > { %v1008_v11 = vshll.u32 %v10692_v61, 16  ;;  %288 = vst [vmem:[#allocation2 + $0xd0] sm:$0x1] %v287_v1  ;;  %8764 = vmatprep.mubr.bf16.mxu0 %v992_v7  ;;  %v670_v13 = vor.u32 %v668_v50, %v667_v62  ;;  %v804_v14 = vsel %vm10438_vm3, %v667_v62, %v803_v63  ;;  %v337_v16 = vsel %vm10448_vm5, 0, %v336_v51  ;;  %v289_v17 = vld [vmem:[#allocation2 + $0xe0] sm:$0x1] }
  0x6b   : > { %v10708_v19 = vld [vmem:[%s12132_s1 + $0x80] sm:$0xff]   ;;  %v1003_v22 = vrot.slane %v1001_v8, 1  ;;  %805 = vst [vmem:[#allocation2 + $0xb8] sm:$0x1] %v804_v14  ;;  %338 = vst [vmem:[#allocation2 + $0xd8] sm:$0x1] %v337_v16  ;;  %v507_v20 = vmax.bf16 %v10339_v0, %v475_v59 }
  0x6c   : > { %v1010_v24 = vrot.slane %v1008_v11, 1  ;;  %v290_v25 = vsel %vm10438_vm3, 0, %v289_v17  ;;  %v339_v26 = vld [vmem:[#allocation2 + $0xe8] sm:$0x1]  ;;  %v10715_v27 = vsel %vm10491_vm7, %v670_v13, %v800_v12  ;;  %v672_v28 = vshrl.u32 %v8017_v15, 16  ;;  %8828 = vmatprep.subr.bf16.mxu0 %v10708_v19  ;;  %v806_v49 = vld [vmem:[#allocation2 + $0xc0] sm:$0xff] }
  0x6d   : > { %v675_v29 = vshll.u32 %v8017_v15, 16  ;;  %v809_v30 = vld [vmem:[#allocation2 + $0xc8] sm:$0x1]  ;;  %291 = vst [vmem:[#allocation2 + $0xe0] sm:$0x1] %v290_v25  ;;  %v340_v32 = vsel %vm10448_vm5, 0, %v339_v26  ;;  %v1004_v33 = vsel %vm884_vm4, %v999_v55, %v1003_v22  ;;  %v8018_v40 = vcombine.low %v506_v2, %v507_v20 }
  0x6e   : > { %802 = vst [vmem:[#allocation2 + $0xb0] sm:$0xff] %v10715_v27  ;;  %v1018_v34 = vshrl.u32 %v10715_v27, 16  ;;  %v1020_v35 = vshll.u32 %v10715_v27, 16  ;;  %341 = vst [vmem:[#allocation2 + $0xe8] sm:$0x1] %v340_v32  ;;  %v674_v39 = vrot.slane %v672_v28, 7  ;;  %v1011_v45 = vor.u32 %v1010_v24, %v1006_v10 }
  0x6f   : > { %v476_v36 = vld [vmem:[%s10445_s22 + $0x68] sm:$0xf]  ;;  %v477_v37 = vld [vmem:[%s10445_s22 + $0x6c] sm:$0xf]  ;;  %v292_v44 = vld [vmem:[#allocation2 + $0xf0] sm:$0x1] }
  0x70   : > { %v10725_v38 = vld [vmem:[#allocation2 + $0xa8] sm:$0x1]  ;;  %v508_v41 = vmax.bf16 %v10339_v0, %v476_v36  ;;  %v509_v42 = vmax.bf16 %v10339_v0, %v477_v37  ;;  %v1022_v48 = vrot.slane %v1020_v35, 1  ;;  %v293_v50 = vsel %vm10438_vm3, 0, %v292_v44  ;;  %v342_v51 = vld [vmem:[#allocation2 + $0xf8] sm:$0x1] }
  0x71   : > { %v1013_v46 = vshll.u32 %v10725_v38, 16  ;;  %8765 = vmatmul.mubr.bf16.gmra.mrb[16].mxu0 %v1004_v33  ;;  %v677_v53 = vor.u32 %v675_v29, %v674_v39  ;;  %v810_v54 = vsel %vm10438_vm3, %v674_v39, %v809_v30  ;;  %v679_v52 = vshrl.u32 %v8018_v40, 16  ;;  %294 = vst [vmem:[#allocation2 + $0xf0] sm:$0x1] %v293_v50  ;;  %v478_v57 = vld [vmem:[%s10445_s22 + $0x70] sm:$0xf] }
  0x72   : > { %v682_v55 = vshll.u32 %v8018_v40, 16  ;;  %v1023_v59 = vor.u32 %v1022_v48, %v1018_v34  ;;  %811 = vst [vmem:[#allocation2 + $0xc8] sm:$0x1] %v810_v54  ;;  %v8019_v60 = vcombine.low %v508_v41, %v509_v42  ;;  %v343_v62 = vsel %vm10448_vm5, 0, %v342_v51  ;;  %v479_v63 = vld [vmem:[%s10445_s22 + $0x74] sm:$0xf] }
  0x73   : > { %v1015_v58 = vrot.slane %v1013_v46, 1  ;;  %v10739_v1 = vld [vmem:[#allocation2 + $0xb8] sm:$0x1]  ;;  %v10743_v2 = vsel %vm10491_vm7, %v677_v53, %v806_v49  ;;  %v681_v7 = vrot.slane %v679_v52, 7  ;;  %344 = vst [vmem:[#allocation2 + $0xf8] sm:$0x1] %v343_v62  ;;  %v510_v10 = vmax.bf16 %v10339_v0, %v478_v57 }
  0x74   : > { %v815_v8 = vld [vmem:[#allocation2 + $0xd8] sm:$0x1]  ;;  %v511_v11 = vmax.bf16 %v10339_v0, %v479_v63  ;;  %v1025_v13 = vshll.u32 %v10739_v1, 16  ;;  %808 = vst [vmem:[#allocation2 + $0xc0] sm:$0xff] %v10743_v2  ;;  %v1030_v14 = vshrl.u32 %v10743_v2, 16  ;;  %v1032_v15 = vshll.u32 %v10743_v2, 16 }
  0x75   : > { %v1016_v12 = vsel %vm884_vm4, %v1011_v45, %v1015_v58  ;;  %v812_v16 = vld [vmem:[#allocation2 + $0xd0] sm:$0xff]  ;;  %v684_v17 = vor.u32 %v682_v55, %v681_v7  ;;  %v816_v22 = vsel %vm10438_vm3, %v681_v7, %v815_v8  ;;  %v686_v24 = vshrl.u32 %v8019_v60, 16  ;;  %v821_v25 = vld [vmem:[#allocation2 + $0xe8] sm:$0x1]  ;;  %v818_v35 = vld [vmem:[#allocation2 + $0xe0] sm:$0xff] }
  0x76   : > { %8768 = vmatprep.mubr.bf16.mxu0 %v1016_v12  ;;  %v689_v20 = vshll.u32 %v8019_v60, 16  ;;  %v1027_v0 = vrot.slane %v1025_v13, 1  ;;  %v1034_v26 = vrot.slane %v1032_v15, 1  ;;  %817 = vst [vmem:[#allocation2 + $0xd8] sm:$0x1] %v816_v22  ;;  %v8020_v28 = vcombine.low %v510_v10, %v511_v11 }
  0x77   : > { %v10756_v29 = vsel %vm10491_vm7, %v684_v17, %v812_v16  ;;  %v688_v30 = vrot.slane %v686_v24, 7 }
  0x78   : > { %v1028_v32 = vsel %vm884_vm4, %v1023_v59, %v1027_v0  ;;  %814 = vst [vmem:[#allocation2 + $0xd0] sm:$0xff] %v10756_v29  ;;  %v1042_v33 = vshrl.u32 %v10756_v29, 16  ;;  %v1044_v34 = vshll.u32 %v10756_v29, 16  ;;  %v693_v40 = vshrl.u32 %v8020_v28, 16  ;;  %v824_v54 = vld [vmem:[#allocation2 + $0xf0] sm:$0xff] }
  0x79   : > { %8769 = vmatmul.mubr.bf16.gmra.mrb[20].mxu0 %v1028_v32  ;;  %v10762_v36 = vld [vmem:[#allocation2 + $0xc8] sm:$0x1]  ;;  %v691_v37 = vor.u32 %v689_v20, %v688_v30  ;;  %v822_v39 = vsel %vm10438_vm3, %v688_v30, %v821_v25  ;;  %v696_v41 = vshll.u32 %v8020_v28, 16  ;;  %v1035_v42 = vor.u32 %v1034_v26, %v1030_v14  ;;  %v10274_v26 = vld [vmem:[#allocation2] sm:$0xff]  ;;  %v10148_v30 = vld [vmem:[%s12132_s1 + $0x90] sm:$0xff]  }
  0x7a   : > { %v1037_v44 = vshll.u32 %v10762_v36, 16  ;;  %v1046_v45 = vrot.slane %v1044_v34, 1  ;;  %823 = vst [vmem:[#allocation2 + $0xe8] sm:$0x1] %v822_v39  ;;  %v827_v46 = vld [vmem:[#allocation2 + $0xf8] sm:$0x1] }
  0x7b   : > { %v10769_v48 = vsel %vm10491_vm7, %v691_v37, %v818_v35  ;;  %v695_v49 = vrot.slane %v693_v40, 7  ;;  %v10147_v28 = vld [vmem:[%s12132_s1 + $0x88] sm:$0xff]   ;;  %v10149_v32 = vld [vmem:[%s12132_s1 + $0x98] sm:$0xff]  }
  0x7c   : > { %v1039_v50 = vrot.slane %v1037_v44, 1  ;;  %820 = vst [vmem:[#allocation2 + $0xe0] sm:$0xff] %v10769_v48  ;;  %v1054_v51 = vshrl.u32 %v10769_v48, 16  ;;  %v1056_v53 = vshll.u32 %v10769_v48, 16  ;;  %v10779_v59 = vor.u32 %v1046_v45, %v1042_v33  ;;  %v295_v33 = vld [vmem:[#allocation2 + $0x100] sm:$0x1] }
  0x7d   : > { %v10774_v52 = vld [vmem:[#allocation2 + $0xd8] sm:$0x1]  ;;  %v698_v55 = vor.u32 %v696_v41, %v695_v49  ;;  %v828_v57 = vsel %vm10438_vm3, %v695_v49, %v827_v46  ;;  %v10275_v39 = vld [vmem:[#allocation2 + $0x8] sm:$0x1]  ;;  %v1529_v41 = vld [vmem:[#allocation2 + $0x10] sm:$0xfe] }
  0x7e   : > { %v1040_v58 = vsel %vm884_vm4, %v1035_v42, %v1039_v50  ;;  %v1049_v60 = vshll.u32 %v10774_v52, 16  ;;  %v1058_v62 = vrot.slane %v1056_v53, 1  ;;  %829 = vst [vmem:[#allocation2 + $0xf8] sm:$0x1] %v828_v57  ;;  %v1530_v42 = vld [vmem:[#allocation2 + $0x20] sm:$0xfe] }
  0x7f   : > { %8772 = vmatprep.mubr.bf16.mxu0 %v1040_v58  ;;  %v10784_v63 = vsel %vm10491_vm7, %v698_v55, %v824_v54  ;;  %v10276_v50 = vld [vmem:[#allocation2 + $0x18] sm:$0x1]  ;;  %v1580_v53 = vrot.slane %v1529_v41, 1  ;;  %v1583_v54 = vrot.slane %v1530_v42, 1  ;;  %v10277_v55 = vld [vmem:[#allocation2 + $0x28] sm:$0x1] }
  0x80   : > { %v1051_v7 = vrot.slane %v1049_v60, 1  ;;  %826 = vst [vmem:[#allocation2 + $0xf0] sm:$0xff] %v10784_v63  ;;  %v1068_v8 = vshll.u32 %v10784_v63, 16  ;;  %v10790_v11 = vor.u32 %v1058_v62, %v1054_v51  ;;  %v1066_v14 = vshrl.u32 %v10784_v63, 16  ;;  %v1531_v58 = vld [vmem:[#allocation2 + $0x30] sm:$0xfe] }
  0x81   : > { %v10788_v10 = vld [vmem:[#allocation2 + $0xe8] sm:$0x1]  ;;  %v1581_v51 = vrot.slane %v10276_v50, 1  ;;  %v1584_v57 = vrot.slane %v10277_v55, 1  ;;  %v1537_v41 = vld [vmem:[#allocation2 + $0x90] sm:$0xfe] }
  0x82   : > { %v1052_v12 = vsel %vm884_vm4, %v10779_v59, %v1051_v7  ;;  %v1061_v13 = vshll.u32 %v10788_v10, 16  ;;  %v1070_v15 = vrot.slane %v1068_v8, 1  ;;  %v10155_v60 = vld [vmem:[%s12132_s1 + $0xc8] sm:$0xff]   ;;  %v1532_v7 = vld [vmem:[#allocation2 + $0x40] sm:$0xfe]  ;;  %v10161_v42 = vld [vmem:[%s12132_s1 + $0xf8] sm:$0xff]  }
  0x83   : > { %8773 = vmatmul.mubr.bf16.gmra.mrb[24].mxu0 %v1052_v12  ;;  %v1582_v62 = vsel %vm1576_vm8, %v1580_v53, %v1581_v51  ;;  %v1585_v8 = vsel %vm1576_vm8, %v1583_v54, %v1584_v57  ;;  %v1586_v12 = vrot.slane %v1531_v58, 1  ;;  %v1604_v50 = vrot.slane %v1537_v41, 1  ;;  %v10284_v51 = vld [vmem:[#allocation2 + $0x98] sm:$0x1]  ;;  %v10162_v57 = vld [vmem:[%s12132_s1 + $0x100] sm:$0xff]  }
  0x84   : > { %v1063_v16 = vrot.slane %v1061_v13, 1  ;;  %v10800_v24 = vor.u32 %v1070_v15, %v1066_v14  ;;  %v10278_v13 = vld [vmem:[#allocation2 + $0x38] sm:$0x1]  ;;  %v1589_v15 = vrot.slane %v1532_v7, 1  ;;  %v1605_v53 = vrot.slane %v10284_v51, 1  ;;  %v10288_v41 = vld [vmem:[#allocation2 + $0xa0] sm:$0xff] }
  0x85   : > { %v10796_v17 = vld [vmem:[#allocation2 + $0xf8] sm:$0x1]  ;;  %v1587_v14 = vrot.slane %v10278_v13, 1  ;;  %v1608_v54 = vrot.slane %v10725_v38, 1  ;;  %v1540_v7 = vld [vmem:[#allocation2 + $0xc0] sm:$0xfe] }
  0x86   : > { %v1064_v22 = vsel %vm884_vm4, %v10790_v11, %v1063_v16  ;;  %v1073_v20 = vshll.u32 %v10796_v17, 16  ;;  %v10279_v16 = vld [vmem:[#allocation2 + $0x48] sm:$0x1]  ;;  %v1606_v58 = vsel %vm1576_vm8, %v1604_v50, %v1605_v53  ;;  %v1611_v38 = vrot.slane %v10739_v1, 1 }
  0x87   : > { %8776 = vmatprep.mubr.bf16.mxu0 %v1064_v22  ;;  %v1590_v22 = vrot.slane %v10279_v16, 1  ;;  %v1614_v13 = vrot.slane %v10762_v36, 1 }
  0x88   : > { %v1075_v25 = vrot.slane %v1073_v20, 1  ;;  %v10156_v20 = vld [vmem:[%s12132_s1 + $0xd0] sm:$0xff]  }
  0x8a   : > { %v1076_v0 = vsel %vm884_vm4, %v10800_v24, %v1075_v25  ;;  %v1533_v25 = vld [vmem:[#allocation2 + $0x50] sm:$0xfe] }
  0x8b   : > { %8777 = vmatmul.mubr.bf16.gmra.mrb[28].mxu0 %v1076_v0  ;;  %v10157_v0 = vld [vmem:[%s12132_s1 + $0xd8] sm:$0xff]  }
  0x8c   : > { %8796 = vmatprep.mubr.bf16.mxu0 %v10274_v26 }
  0x93   : > { %8797 = vmatmul.mubr.bf16.vlgmr.msra.gmra.mrb[0].mxu0 %v10514_v9  ;;  %v10150_v9 = vld [vmem:[%s12132_s1 + $0xa0] sm:$0xff]  }
  0x94   : > { %8829 = vmatpush3.bf16.msra.mxu0 %v10708_v19  ;;  %8800 = vmatprep.mubr.bf16.mxu0 %v10528_v21  ;;  %v10151_v21 = vld [vmem:[%s12132_s1 + $0xa8] sm:$0xff]   ;;  %v481_v19 = vld [vmem:[%s10445_s22 + $0x7c] sm:$0xf] }
  0x95   : > { %8830 = vmatprep.subr.bf16.mxu0 %v10147_v28  ;;  %v513_v35 = vmax.bf16 %v10274_v26, %v481_v19  ;;  %v1536_v19 = vld [vmem:[#allocation2 + $0x80] sm:$0xfe] }
  0x98   : > { %8831 = vmatpush3.bf16.msra.mxu0 %v10147_v28  ;;  %v1534_v28 = vld [vmem:[#allocation2 + $0x60] sm:$0xfe] }
  0x99   : > { %8832 = vmatprep.subr.bf16.mxu0 %v10148_v30 }
  0x9b   : > { %8801 = vmatmul.mubr.bf16.gmra.mrb[4].mxu0 %v10539_v31  ;;  %v10152_v31 = vld [vmem:[%s12132_s1 + $0xb0] sm:$0xff]  }
  0x9c   : > { %8804 = vmatprep.mubr.bf16.mxu0 %v10560_v4  ;;  %8833 = vmatpush3.bf16.msra.mxu0 %v10148_v30  ;;  %v10153_v4 = vld [vmem:[%s12132_s1 + $0xb8] sm:$0xff]   ;;  %v1591_v30 = vsel %vm1576_vm8, %v1589_v15, %v1590_v22 }
  0x9d   : > { %8834 = vmatprep.subr.bf16.mxu0 %v10149_v32 }
  0xa0   : > { %8835 = vmatpush3.bf16.msra.mxu0 %v10149_v32  ;;  %v1592_v32 = vrot.slane %v1533_v25, 1  ;;  %v1542_v25 = vld [vmem:[#allocation2 + $0xe0] sm:$0xfe] }
  0xa1   : > { %8836 = vmatprep.subr.bf16.mxu0 %v10150_v9  ;;  %v1619_v1 = vrot.slane %v1542_v25, 1 }
  0xa3   : > { %8805 = vmatmul.mubr.bf16.gmra.mrb[8].mxu0 %v10576_v18  ;;  %v10154_v18 = vld [vmem:[%s12132_s1 + $0xc0] sm:$0xff]  }
  0xa4   : > { %8808 = vmatprep.mubr.bf16.mxu0 %v10611_v3  ;;  %8837 = vmatpush3.bf16.msra.mxu0 %v10150_v9  ;;  %v1528_v3 = vld [vmem:[#allocation2] sm:$0xfe]  ;;  %v10280_v9 = vld [vmem:[#allocation2 + $0x58] sm:$0x1] }
  0xa5   : > { %8838 = vmatprep.subr.bf16.mxu0 %v10151_v21 }
  0xa8   : > { %8839 = vmatpush3.bf16.msra.mxu0 %v10151_v21  ;;  %v1593_v21 = vrot.slane %v10280_v9, 1 }
  0xa9   : > { %8840 = vmatprep.subr.bf16.mxu0 %v10152_v31 }
  0xab   : > { %8809 = vmatmul.mubr.bf16.gmra.mrb[12].mxu0 %v10635_v43  ;;  %v480_v43 = vld [vmem:[%s10445_s22 + $0x78] sm:$0xf] }
  0xac   : > { %8812 = vmatprep.mubr.bf16.mxu0 %v10647_v56  ;;  %8841 = vmatpush3.bf16.msra.mxu0 %v10152_v31  ;;  %v512_v34 = vmax.bf16 %v10274_v26, %v480_v43  ;;  %v296_v56 = vsel %vm10438_vm3, 0, %v295_v33  ;;  %v1588_v26 = vsel %vm1576_vm8, %v1586_v12, %v1587_v14  ;;  %v10158_v31 = vld [vmem:[%s12132_s1 + $0xe0] sm:$0xff]   ;;  %v1535_v43 = vld [vmem:[#allocation2 + $0x70] sm:$0xfe]  ;;  %v10159_v33 = vld [vmem:[%s12132_s1 + $0xe8] sm:$0xff]   ;;  %v1613_v12 = vrot.slane %v1540_v7, 1 }
  0xad   : > { %8842 = vmatprep.subr.bf16.mxu0 %v10153_v4  ;;  %297 = vst [vmem:[#allocation2 + $0x100] sm:$0x1] %v296_v56  ;;  %v1598_v56 = vrot.slane %v1535_v43, 1  ;;  %v345_v14 = vld [vmem:[#allocation2 + $0x108] sm:$0x1]  ;;  %v10920_v43 = vld [vmem:[#allocation2 + $0x40] sm:$0xff] }
  0xae   : > { %v8021_v37 = vcombine.low %v512_v34, %v513_v35  ;;  %v1594_v34 = vsel %vm1576_vm8, %v1592_v32, %v1593_v21  ;;  %v346_v15 = vsel %vm10448_vm5, 0, %v345_v14  ;;  %v1615_v22 = vsel %vm1576_vm8, %v1613_v12, %v1614_v13  ;;  %v1543_v21 = vld [vmem:[#allocation2 + $0xf0] sm:$0xfe] }
  0xaf   : > { %347 = vst [vmem:[#allocation2 + $0x108] sm:$0x1] %v346_v15  ;;  %v2244_v15 = vshll.u32 %v10920_v43, 16 }
  0xb0   : > { %8843 = vmatpush3.bf16.msra.mxu0 %v10153_v4  ;;  %v1595_v4 = vrot.slane %v1534_v28, 1  ;;  %v1620_v28 = vrot.slane %v10788_v10, 1  ;;  %v10908_v10 = vld [vmem:[#allocation2 + $0x20] sm:$0xff] }
  0xb1   : > { %8876 = vmatprep.subr.bf16.mxu0 %v10154_v18 }
  0xb2   : > { %v1621_v9 = vsel %vm1576_vm8, %v1619_v1, %v1620_v28  ;;  %v2242_v1 = vshrl.u32 %v10920_v43, 16  ;;  %v2246_v28 = vrot.slane %v2244_v15, 1 }
  0xb3   : > { %8813 = vmatmul.mubr.bf16.gmra.mrb[16].mxu0 %v10669_v23  ;;  %v1577_v23 = vrot.slane %v1528_v3, 1 }
  0xb4   : > { %8816 = vmatprep.mubr.bf16.mxu0 %v10692_v61  ;;  %v1578_v61 = vrot.slane %v10275_v39, 1  ;;  %v830_v46 = vld [vmem:[#allocation2 + $0x100] sm:$0xff]  ;;  %v1601_v39 = vrot.slane %v1536_v19, 1  ;;  %v10922_v19 = vld [vmem:[#allocation2 + $0x50] sm:$0xff] }
  0xb5   : > { %v2256_v25 = vshll.u32 %v10922_v19, 16 }
  0xb6   : > { %v1579_v45 = vsel %vm1576_vm8, %v1577_v23, %v1578_v61  ;;  %v10283_v61 = vld [vmem:[#allocation2 + $0x88] sm:$0x1] }
  0xb7   : > { %v833_v36 = vld [vmem:[#allocation2 + $0x108] sm:$0x1] }
  0xbb   : > { %8817 = vmatmul.mubr.bf16.gmra.mrb[20].mxu0 %v10715_v27  ;;  %v700_v27 = vshrl.u32 %v8021_v37, 16 }
  0xbc   : > { %8820 = vmatprep.mubr.bf16.mxu0 %v10743_v2  ;;  %v703_v2 = vshll.u32 %v8021_v37, 16  ;;  %v10282_v37 = vld [vmem:[#allocation2 + $0x78] sm:$0x1] }
  0xbd   : > { %v10848_v40 = vrot.slane %v700_v27, 7  ;;  %v1599_v23 = vrot.slane %v10282_v37, 1  ;;  %v1602_v27 = vrot.slane %v10283_v61, 1  ;;  %v10285_v37 = vld [vmem:[#allocation2 + $0x70] sm:$0xff]  ;;  %v10286_v61 = vld [vmem:[#allocation2 + $0x80] sm:$0xff] }
  0xbf   : > { %v705_v44 = vor.u32 %v703_v2, %v10848_v40  ;;  %v10160_v2 = vld [vmem:[%s12132_s1 + $0xf0] sm:$0xff]  }
  0xc1   : > { %v10854_v49 = vsel %vm10491_vm7, %v705_v44, %v830_v46  ;;  %v1600_v44 = vsel %vm1576_vm8, %v1598_v56, %v1599_v23  ;;  %v1538_v46 = vld [vmem:[#allocation2 + $0xa0] sm:$0xfe]  ;;  %v10167_v56 = vld [vmem:[%s12132_s1 + $0x128] sm:$0xff]   ;;  %v10168_v23 = vld [vmem:[%s12132_s1 + $0x130] sm:$0xff]  }
  0xc2   : > { %832 = vst [vmem:[#allocation2 + $0x100] sm:$0xff] %v10854_v49  ;;  %v1607_v55 = vrot.slane %v1538_v46, 1  ;;  %v10948_v46 = vld [vmem:[#allocation2 + $0x18] sm:$0x1] }
  0xc3   : > { %8821 = vmatmul.mubr.bf16.gmra.mrb[24].mxu0 %v10756_v29  ;;  %v2213_v53 = vshll.u32 %v10948_v46, 16 }
  0xc4   : > { %8824 = vmatprep.mubr.bf16.mxu0 %v10769_v48 }
  0xcb   : > { %8825 = vmatmul.mubr.bf16.gmra.mrb[28].mxu0 %v10784_v63 }
  0xcc   : > { %8844 = vmatprep.mubr.bf16.mxu0 %v1579_v45  ;;  %v1603_v45 = vsel %vm1576_vm8, %v1601_v39, %v1602_v27  ;;  %v10169_v39 = vld [vmem:[%s12132_s1 + $0x138] sm:$0xff]   ;;  %v10287_v27 = vld [vmem:[#allocation2 + $0x90] sm:$0xff] }
  0xd3   : > { %8845 = vmatmul.mubr.bf16.vlgmr.msra.gmra.mrb[0].mxu0 %v1582_v62  ;;  %v1539_v62 = vld [vmem:[#allocation2 + $0xb0] sm:$0xfe] }
  0xd4   : > { %8877 = vmatpush3.bf16.msra.mxu0 %v10154_v18  ;;  %8848 = vmatprep.mubr.bf16.mxu0 %v1585_v8  ;;  %v10281_v18 = vld [vmem:[#allocation2 + $0x68] sm:$0x1]  ;;  %v1610_v8 = vrot.slane %v1539_v62, 1  ;;  %v2218_v62 = vshrl.u32 %v10908_v10, 16 }
  0xd5   : > { %8878 = vmatprep.subr.bf16.mxu0 %v10155_v60  ;;  %v1596_v3 = vrot.slane %v10281_v18, 1  ;;  %v1899_v18 = vld [vmem:[#allocation2 + $0x10] sm:$0xff] }
  0xd6   : > { %v1612_v16 = vsel %vm1576_vm8, %v1610_v8, %v1611_v38  ;;  %v2206_v50 = vshrl.u32 %v1899_v18, 16 }
  0xd7   : > { %v1597_v35 = vsel %vm1576_vm8, %v1595_v4, %v1596_v3  ;;  %v1623_v4 = vrot.slane %v10796_v17, 1  ;;  %v10910_v3 = vld [vmem:[#allocation2 + $0x30] sm:$0xff] }
  0xd8   : > { %8879 = vmatpush3.bf16.msra.mxu0 %v10155_v60  ;;  %v1609_v60 = vsel %vm1576_vm8, %v1607_v55, %v1608_v54  ;;  %v10164_v17 = vld [vmem:[%s12132_s1 + $0x110] sm:$0xff]   ;;  %v2220_v54 = vshll.u32 %v10908_v10, 16 }
  0xd9   : > { %8880 = vmatprep.subr.bf16.mxu0 %v10156_v20 }
  0xda   : > { %v2222_v7 = vrot.slane %v2220_v54, 1 }
  0xdb   : > { %8849 = vmatmul.mubr.bf16.gmra.mrb[4].mxu0 %v1588_v26  ;;  %v1617_v26 = vrot.slane %v10774_v52, 1 }
  0xdc   : > { %8852 = vmatprep.mubr.bf16.mxu0 %v1591_v30  ;;  %8881 = vmatpush3.bf16.msra.mxu0 %v10156_v20  ;;  %v1541_v20 = vld [vmem:[#allocation2 + $0xd0] sm:$0xfe]  ;;  %v834_v30 = vsel %vm10438_vm3, %v10848_v40, %v833_v36  ;;  %v10163_v40 = vld [vmem:[%s12132_s1 + $0x108] sm:$0xff]   ;;  %v10965_v13 = vor.u32 %v2222_v7, %v2218_v62 }
  0xdd   : > { %8882 = vmatprep.subr.bf16.mxu0 %v10157_v0  ;;  %835 = vst [vmem:[#allocation2 + $0x108] sm:$0x1] %v834_v30  ;;  %v11019_v7 = vld [vmem:[#allocation2 + $0x88] sm:$0x1] }
  0xde   : > { %v2297_v15 = vshll.u32 %v11019_v7, 16 }
  0xe0   : > { %8883 = vmatpush3.bf16.msra.mxu0 %v10157_v0  ;;  %v1616_v0 = vrot.slane %v1541_v20, 1  ;;  %v10970_v20 = vld [vmem:[#allocation2 + $0x48] sm:$0x1] }
  0xe1   : > { %8884 = vmatprep.subr.bf16.mxu0 %v10158_v31  ;;  %v2249_v36 = vshll.u32 %v10970_v20, 16 }
  0xe2   : > { %v1618_v32 = vsel %vm1576_vm8, %v1616_v0, %v1617_v26  ;;  %v10973_v0 = vld [vmem:[#allocation2 + $0x58] sm:$0x1] }
  0xe3   : > { %8853 = vmatmul.mubr.bf16.gmra.mrb[8].mxu0 %v1594_v34  ;;  %v10166_v34 = vld [vmem:[%s12132_s1 + $0x120] sm:$0xff]  }
  0xe4   : > { %8856 = vmatprep.mubr.bf16.mxu0 %v1597_v35  ;;  %8885 = vmatpush3.bf16.msra.mxu0 %v10158_v31  ;;  %v1622_v31 = vrot.slane %v1543_v21, 1  ;;  %v10932_v35 = vld [vmem:[#allocation2 + $0x60] sm:$0xff]  ;;  %v2258_v21 = vrot.slane %v2256_v25, 1 }
  0xe5   : > { %8886 = vmatprep.subr.bf16.mxu0 %v10159_v33 }
  0xe6   : > { %v1624_v52 = vsel %vm1576_vm8, %v1622_v31, %v1623_v4  ;;  %v2261_v31 = vshll.u32 %v10973_v0, 16  ;;  %v10986_v4 = vld [vmem:[#allocation2 + $0x70] sm:$0xff] }
  0xe8   : > { %8887 = vmatpush3.bf16.msra.mxu0 %v10159_v33  ;;  %v10165_v33 = vld [vmem:[%s12132_s1 + $0x118] sm:$0xff]  }
  0xe9   : > { %8888 = vmatprep.subr.bf16.mxu0 %v10160_v2 }
  0xeb   : > { %8857 = vmatmul.mubr.bf16.gmra.mrb[12].mxu0 %v1600_v44  ;;  %v10290_v44 = vld [vmem:[#allocation2 + $0xc0] sm:$0xff] }
  0xec   : > { %8860 = vmatprep.mubr.bf16.mxu0 %v1603_v45  ;;  %8889 = vmatpush3.bf16.msra.mxu0 %v10160_v2  ;;  %v10170_v2 = vld [vmem:[%s12132_s1 + $0x140] sm:$0xff]   ;;  %v2208_v45 = vshll.u32 %v1899_v18, 16 }
  0xed   : > { %8890 = vmatprep.subr.bf16.mxu0 %v10161_v42 }
  0xee   : > { %v2210_v51 = vrot.slane %v2208_v45, 1 }
  0xf0   : > { %8891 = vmatpush3.bf16.msra.mxu0 %v10161_v42  ;;  %v10289_v42 = vld [vmem:[#allocation2 + $0xb0] sm:$0xff]  ;;  %v2211_v55 = vor.u32 %v2210_v51, %v2206_v50  ;;  %v11009_v50 = vld [vmem:[#allocation2 + $0x80] sm:$0xff]  ;;  %v10173_v51 = vld [vmem:[%s12132_s1 + $0x158] sm:$0xff]  }
  0xf1   : > { %8924 = vmatprep.subr.bf16.mxu0 %v10162_v57 }
  0xf3   : > { %8861 = vmatmul.mubr.bf16.gmra.mrb[16].mxu0 %v1606_v58  ;;  %v10954_v58 = vld [vmem:[#allocation2 + $0x28] sm:$0x1] }
  0xf4   : > { %8864 = vmatprep.mubr.bf16.mxu0 %v1609_v60  ;;  %v2232_v60 = vshll.u32 %v10910_v3, 16  ;;  %v2225_v8 = vshll.u32 %v10954_v58, 16 }
  0xf6   : > { %v2227_v14 = vrot.slane %v2225_v8, 1 }
  0xf8   : > { %v2228_v26 = vsel %vm884_vm4, %v10965_v13, %v2227_v14 }
  0xfb   : > { %8865 = vmatmul.mubr.bf16.gmra.mrb[20].mxu0 %v1612_v16 }
  0xfc   : > { %8868 = vmatprep.mubr.bf16.mxu0 %v1615_v22 }
 0x103   : > { %8869 = vmatmul.mubr.bf16.gmra.mrb[24].mxu0 %v1618_v32  ;;  %v10171_v32 = vld [vmem:[%s12132_s1 + $0x148] sm:$0xff]  }
 0x104   : > { %8872 = vmatprep.mubr.bf16.mxu0 %v1621_v9  ;;  %v2254_v9 = vshrl.u32 %v10922_v19, 16 }
 0x10b   : > { %8873 = vmatmul.mubr.bf16.gmra.mrb[28].mxu0 %v1624_v52  ;;  %v10988_v52 = vor.u32 %v2246_v28, %v2242_v1  ;;  %v11034_v28 = vld [vmem:[#allocation2 + $0xa0] sm:$0xff] }
 0x10c   : > { %8892 = vmatprep.mubr.bf16.mxu0 %v1899_v18  ;;  %v2251_v18 = vrot.slane %v2249_v36, 1  ;;  %v10175_v36 = vld [vmem:[%s12132_s1 + $0x168] sm:$0xff]  }
 0x113   : > { %8893 = vmatmul.mubr.bf16.vlgmr.msra.gmra.mrb[0].mxu0 %v10908_v10 }
 0x114   : > { %8925 = vmatpush3.bf16.msra.mxu0 %v10162_v57  ;;  %8896 = vmatprep.mubr.bf16.mxu0 %v10910_v3  ;;  %v2215_v57 = vrot.slane %v2213_v53, 1  ;;  %v11014_v53 = vld [vmem:[#allocation2 + $0x90] sm:$0xff] }
 0x115   : > { %8926 = vmatprep.subr.bf16.mxu0 %v10163_v40  ;;  %v2304_v8 = vshll.u32 %v11014_v53, 16  ;;  %v2302_v25 = vshrl.u32 %v11014_v53, 16 }
 0x116   : > { %v2216_v38 = vsel %vm884_vm4, %v2211_v55, %v2215_v57  ;;  %v2292_v57 = vshll.u32 %v11009_v50, 16 }
 0x118   : > { %8927 = vmatpush3.bf16.msra.mxu0 %v10163_v40  ;;  %v2268_v40 = vshll.u32 %v10932_v35, 16  ;;  %v2294_v14 = vrot.slane %v2292_v57, 1 }
 0x119   : > { %8928 = vmatprep.subr.bf16.mxu0 %v10164_v17 }
 0x11b   : > { %8897 = vmatmul.mubr.bf16.gmra.mrb[4].mxu0 %v10920_v43 }
 0x11c   : > { %8900 = vmatprep.mubr.bf16.mxu0 %v10922_v19  ;;  %8929 = vmatpush3.bf16.msra.mxu0 %v10164_v17  ;;  %v10991_v17 = vor.u32 %v2258_v21, %v2254_v9  ;;  %v2299_v9 = vrot.slane %v2297_v15, 1  ;;  %v2316_v21 = vshll.u32 %v11034_v28, 16 }
 0x11d   : > { %8930 = vmatprep.subr.bf16.mxu0 %v10165_v33 }
 0x120   : > { %8931 = vmatpush3.bf16.msra.mxu0 %v10165_v33  ;;  %v2263_v33 = vrot.slane %v2261_v31, 1 }
 0x121   : > { %8932 = vmatprep.subr.bf16.mxu0 %v10166_v34 }
 0x123   : > { %8901 = vmatmul.mubr.bf16.gmra.mrb[8].mxu0 %v10932_v35 }
 0x124   : > { %8904 = vmatprep.mubr.bf16.mxu0 %v10285_v37  ;;  %8933 = vmatpush3.bf16.msra.mxu0 %v10166_v34  ;;  %v10993_v34 = vld [vmem:[#allocation2 + $0x68] sm:$0x1]  ;;  %v2280_v37 = vshll.u32 %v10986_v4, 16 }
 0x125   : > { %8934 = vmatprep.subr.bf16.mxu0 %v10167_v56 }
 0x128   : > { %8935 = vmatpush3.bf16.msra.mxu0 %v10167_v56  ;;  %v10172_v56 = vld [vmem:[%s12132_s1 + $0x150] sm:$0xff]  }
 0x129   : > { %8936 = vmatprep.subr.bf16.mxu0 %v10168_v23 }
 0x12b   : > { %8905 = vmatmul.mubr.bf16.gmra.mrb[12].mxu0 %v10286_v61  ;;  %v2266_v61 = vshrl.u32 %v10932_v35, 16 }
 0x12c   : > { %8908 = vmatprep.mubr.bf16.mxu0 %v10287_v27  ;;  %8937 = vmatpush3.bf16.msra.mxu0 %v10168_v23  ;;  %v10999_v23 = vld [vmem:[#allocation2 + $0x78] sm:$0x1]  ;;  %v2270_v27 = vrot.slane %v2268_v40, 1  ;;  %v11046_v40 = vld [vmem:[#allocation2 + $0xa8] sm:$0x1] }
 0x12d   : > { %8938 = vmatprep.subr.bf16.mxu0 %v10169_v39  ;;  %v2285_v45 = vshll.u32 %v10999_v23, 16 }
 0x12e   : > { %v2271_v54 = vor.u32 %v2270_v27, %v2266_v61  ;;  %v2314_v61 = vshrl.u32 %v11034_v28, 16  ;;  %v2318_v27 = vrot.slane %v2316_v21, 1 }
 0x12f   : > { %v2287_v62 = vrot.slane %v2285_v45, 1 }
 0x130   : > { %8939 = vmatpush3.bf16.msra.mxu0 %v10169_v39  ;;  %v2252_v39 = vsel %vm884_vm4, %v10988_v52, %v2251_v18 }
 0x131   : > { %8972 = vmatprep.subr.bf16.mxu0 %v10170_v2 }
 0x133   : > { %8909 = vmatmul.mubr.bf16.gmra.mrb[16].mxu0 %v10288_v41  ;;  %v2264_v41 = vsel %vm884_vm4, %v10991_v17, %v2263_v33 }
 0x134   : > { %8912 = vmatprep.mubr.bf16.mxu0 %v10289_v42  ;;  %v2278_v42 = vshrl.u32 %v10986_v4, 16 }
 0x13b   : > { %8913 = vmatmul.mubr.bf16.gmra.mrb[20].mxu0 %v10290_v44  ;;  %v2282_v44 = vrot.slane %v2280_v37, 1  ;;  %v11052_v37 = vld [vmem:[#allocation2 + $0xb8] sm:$0x1] }
 0x13c   : > { %8916 = vmatprep.mubr.bf16.mxu0 %v10756_v29  ;;  %v10957_v29 = vld [vmem:[#allocation2 + $0x38] sm:$0x1]  ;;  %v2333_v45 = vshll.u32 %v11052_v37, 16 }
 0x13d   : > { %v2237_v12 = vshll.u32 %v10957_v29, 16 }
 0x13f   : > { %v2239_v22 = vrot.slane %v2237_v12, 1  ;;  %v2290_v12 = vshrl.u32 %v11009_v50, 16 }
 0x143   : > { %8917 = vmatmul.mubr.bf16.gmra.mrb[24].mxu0 %v10769_v48  ;;  %v2230_v48 = vshrl.u32 %v10910_v3, 16 }
 0x144   : > { %8920 = vmatprep.mubr.bf16.mxu0 %v10784_v63  ;;  %v2234_v63 = vrot.slane %v2232_v60, 1  ;;  %v11017_v60 = vor.u32 %v2282_v44, %v2278_v42 }
 0x146   : > { %v10968_v16 = vor.u32 %v2234_v63, %v2230_v48  ;;  %v11025_v48 = vld [vmem:[#allocation2 + $0x98] sm:$0x1] }
 0x147   : > { %v2309_v1 = vshll.u32 %v11025_v48, 16 }
 0x148   : > { %v2240_v30 = vsel %vm884_vm4, %v10968_v16, %v2239_v22  ;;  %v2288_v22 = vsel %vm884_vm4, %v11017_v60, %v2287_v62 }
 0x149   : > { %v2311_v18 = vrot.slane %v2309_v1, 1 }
 0x14b   : > { %8921 = vmatmul.mubr.bf16.gmra.mrb[28].mxu0 %v10854_v49 }
 0x14c   : > { %8940 = vmatprep.mubr.bf16.mxu0 %v2216_v38  ;;  %v10174_v38 = vld [vmem:[%s12132_s1 + $0x160] sm:$0xff]  }
 0x153   : > { %8941 = vmatmul.mubr.bf16.vlgmr.msra.gmra.mrb[0].mxu0 %v2228_v26  ;;  %v2306_v26 = vrot.slane %v2304_v8, 1 }
 0x154   : > { %8973 = vmatpush3.bf16.msra.mxu0 %v10170_v2  ;;  %8944 = vmatprep.mubr.bf16.mxu0 %v2240_v30  ;;  %v2273_v2 = vshll.u32 %v10993_v34, 16  ;;  %v11039_v30 = vld [vmem:[#allocation2 + $0xb0] sm:$0xff] }
 0x155   : > { %8974 = vmatprep.subr.bf16.mxu0 %v10171_v32  ;;  %v11044_v31 = vor.u32 %v2306_v26, %v2302_v25  ;;  %v2328_v33 = vshll.u32 %v11039_v30, 16  ;;  %v2326_v42 = vshrl.u32 %v11039_v30, 16 }
 0x156   : > { %v2275_v55 = vrot.slane %v2273_v2, 1  ;;  %v2321_v2 = vshll.u32 %v11046_v40, 16 }
 0x157   : > { %v2330_v44 = vrot.slane %v2328_v33, 1  ;;  %v11088_v33 = vld [vmem:[#allocation2 + $0xe8] sm:$0x1] }
 0x158   : > { %8975 = vmatpush3.bf16.msra.mxu0 %v10171_v32  ;;  %v2276_v63 = vsel %vm884_vm4, %v2271_v54, %v2275_v55  ;;  %v11041_v32 = vor.u32 %v2294_v14, %v2290_v12  ;;  %v10177_v54 = vld [vmem:[%s12132_s1 + $0x178] sm:$0xff]   ;;  %v11067_v55 = vor.u32 %v2318_v27, %v2314_v61  ;;  %v2323_v57 = vrot.slane %v2321_v2, 1  ;;  %v10178_v12 = vld [vmem:[%s12132_s1 + $0x180] sm:$0xff]  }
 0x159   : > { %8976 = vmatprep.subr.bf16.mxu0 %v10172_v56  ;;  %v11070_v8 = vor.u32 %v2330_v44, %v2326_v42  ;;  %v11077_v14 = vld [vmem:[#allocation2 + $0xd8] sm:$0x1]  ;;  %v2369_v61 = vshll.u32 %v11088_v33, 16  ;;  %v2388_v42 = vshll.u32 %v10854_v49, 16 }
 0x15a   : > { %v2324_v15 = vsel %vm884_vm4, %v11067_v55, %v2323_v57  ;;  %v2386_v57 = vshrl.u32 %v10854_v49, 16  ;;  %v2673_v49 = vld [vmem:[#allocation2 + $0x30] sm:$0xfe] }
 0x15b   : > { %8945 = vmatmul.mubr.bf16.gmra.mrb[4].mxu0 %v2252_v39  ;;  %v2300_v39 = vsel %vm884_vm4, %v11041_v32, %v2299_v9 }
 0x15c   : > { %8948 = vmatprep.mubr.bf16.mxu0 %v2264_v41  ;;  %8977 = vmatpush3.bf16.msra.mxu0 %v10172_v56  ;;  %v10176_v56 = vld [vmem:[%s12132_s1 + $0x170] sm:$0xff]   ;;  %v2312_v41 = vsel %vm884_vm4, %v11044_v31, %v2311_v18 }
 0x15d   : > { %8978 = vmatprep.subr.bf16.mxu0 %v10173_v51 }
 0x160   : > { %8979 = vmatpush3.bf16.msra.mxu0 %v10173_v51  ;;  %v11062_v51 = vld [vmem:[#allocation2 + $0xc0] sm:$0xff] }
 0x161   : > { %8980 = vmatprep.subr.bf16.mxu0 %v10174_v38  ;;  %v2340_v62 = vshll.u32 %v11062_v51, 16 }
 0x163   : > { %8949 = vmatmul.mubr.bf16.gmra.mrb[8].mxu0 %v2276_v63  ;;  %v11072_v63 = vld [vmem:[#allocation2 + $0xc8] sm:$0x1]  ;;  %v2342_v25 = vrot.slane %v2340_v62, 1  ;;  %v2390_v62 = vrot.slane %v2388_v42, 1  ;;  %v2675_v42 = vld [vmem:[#allocation2 + $0x50] sm:$0xfe] }
 0x164   : > { %8952 = vmatprep.mubr.bf16.mxu0 %v2288_v22  ;;  %8981 = vmatpush3.bf16.msra.mxu0 %v10174_v38  ;;  %v2335_v38 = vrot.slane %v2333_v45, 1  ;;  %v2338_v22 = vshrl.u32 %v11062_v51, 16  ;;  %v2345_v26 = vshll.u32 %v11072_v63, 16  ;;  %v11099_v45 = vld [vmem:[#allocation2 + $0x108] sm:$0x1] }
 0x165   : > { %8982 = vmatprep.subr.bf16.mxu0 %v10175_v36 }
 0x166   : > { %v2336_v1 = vsel %vm884_vm4, %v11070_v8, %v2335_v38  ;;  %v11086_v9 = vor.u32 %v2342_v25, %v2338_v22  ;;  %v2347_v21 = vrot.slane %v2345_v26, 1  ;;  %v2393_v38 = vshll.u32 %v11099_v45, 16 }
 0x167   : > { %v2391_v22 = vor.u32 %v2390_v62, %v2386_v57  ;;  %v10180_v57 = vld [vmem:[%s12132_s1 + $0x190] sm:$0xff]  }
 0x168   : > { %8983 = vmatpush3.bf16.msra.mxu0 %v10175_v36  ;;  %v2357_v36 = vshll.u32 %v11077_v14, 16  ;;  %v2395_v25 = vrot.slane %v2393_v38, 1 }
 0x169   : > { %8984 = vmatprep.subr.bf16.mxu0 %v10176_v56 }
 0x16a   : > { %v2359_v18 = vrot.slane %v2357_v36, 1  ;;  %v2396_v36 = vsel %vm884_vm4, %v2391_v22, %v2395_v25  ;;  %v2738_v25 = vrot.slane %v10999_v23, 1 }
 0x16b   : > { %8953 = vmatmul.mubr.bf16.gmra.mrb[12].mxu0 %v2300_v39  ;;  %v2348_v39 = vsel %vm884_vm4, %v11086_v9, %v2347_v21  ;;  %v2672_v21 = vld [vmem:[#allocation2 + $0x20] sm:$0xfe] }
 0x16c   : > { %8956 = vmatprep.mubr.bf16.mxu0 %v2312_v41  ;;  %8985 = vmatpush3.bf16.msra.mxu0 %v10176_v56  ;;  %v11090_v56 = vld [vmem:[#allocation2 + $0xf8] sm:$0x1]  ;;  %v2360_v27 = vsel %vm884_vm4, %v10779_v59, %v2359_v18  ;;  %v2371_v41 = vrot.slane %v2369_v61, 1  ;;  %v2722_v18 = vrot.slane %v2672_v21, 1  ;;  %v2726_v61 = vrot.slane %v10957_v29, 1 }
 0x16d   : > { %8986 = vmatprep.subr.bf16.mxu0 %v10177_v54  ;;  %v2381_v2 = vshll.u32 %v11090_v56, 16  ;;  %v2732_v29 = vrot.slane %v10973_v0, 1  ;;  %v2735_v0 = vrot.slane %v10993_v34, 1  ;;  %v10183_v34 = vld [vmem:[%s12132_s1 + $0x1a8] sm:$0xff]   ;;  %v2679_v21 = vld [vmem:[#allocation2 + $0x90] sm:$0xfe] }
 0x16f   : > { %v2383_v44 = vrot.slane %v2381_v2, 1 }
 0x170   : > { %8987 = vmatpush3.bf16.msra.mxu0 %v10177_v54  ;;  %v2372_v54 = vsel %vm884_vm4, %v10790_v11, %v2371_v41  ;;  %v2674_v41 = vld [vmem:[#allocation2 + $0x40] sm:$0xfe] }
 0x171   : > { %9020 = vmatprep.subr.bf16.mxu0 %v10178_v12  ;;  %v2384_v59 = vsel %vm884_vm4, %v10800_v24, %v2383_v44  ;;  %v2725_v24 = vrot.slane %v2673_v49, 1  ;;  %v2728_v44 = vrot.slane %v2674_v41, 1  ;;  %v2741_v49 = vrot.slane %v11019_v7, 1  ;;  %v10185_v7 = vld [vmem:[%s12132_s1 + $0x1b8] sm:$0xff]   ;;  %v2681_v41 = vld [vmem:[#allocation2 + $0xb0] sm:$0xfe] }
 0x173   : > { %8957 = vmatmul.mubr.bf16.gmra.mrb[16].mxu0 %v2324_v15  ;;  %v2671_v15 = vld [vmem:[#allocation2 + $0x10] sm:$0xfe]  ;;  %v2727_v2 = vsel %vm1576_vm8, %v2725_v24, %v2726_v61 }
 0x174   : > { %8960 = vmatprep.mubr.bf16.mxu0 %v2336_v1  ;;  %v2719_v26 = vrot.slane %v2671_v15, 1  ;;  %v2720_v1 = vrot.slane %v10948_v46, 1  ;;  %v10179_v46 = vld [vmem:[%s12132_s1 + $0x188] sm:$0xff]   ;;  %v10184_v24 = vld [vmem:[%s12132_s1 + $0x1b0] sm:$0xff]  }
 0x176   : > { %v2721_v11 = vsel %vm1576_vm8, %v2719_v26, %v2720_v1  ;;  %v10182_v26 = vld [vmem:[%s12132_s1 + $0x1a0] sm:$0xff]  }
 0x17b   : > { %8961 = vmatmul.mubr.bf16.gmra.mrb[20].mxu0 %v2348_v39  ;;  %v2723_v39 = vrot.slane %v10954_v58, 1  ;;  %v2731_v58 = vrot.slane %v2675_v42, 1  ;;  %v2749_v42 = vrot.slane %v2681_v41, 1 }
 0x17c   : > { %8964 = vmatprep.mubr.bf16.mxu0 %v2360_v27 }
 0x17d   : > { %v2724_v27 = vsel %vm1576_vm8, %v2722_v18, %v2723_v39  ;;  %v2733_v38 = vsel %vm1576_vm8, %v2731_v58, %v2732_v29  ;;  %v2743_v18 = vrot.slane %v2679_v21, 1  ;;  %v2744_v39 = vrot.slane %v11025_v48, 1 }
 0x183   : > { %8965 = vmatmul.mubr.bf16.gmra.mrb[24].mxu0 %v2372_v54  ;;  %v2729_v54 = vrot.slane %v10970_v20, 1  ;;  %v2677_v20 = vld [vmem:[#allocation2 + $0x70] sm:$0xfe] }
 0x184   : > { %8968 = vmatprep.mubr.bf16.mxu0 %v2384_v59  ;;  %v2676_v59 = vld [vmem:[#allocation2 + $0x60] sm:$0xfe]  ;;  %v2737_v22 = vrot.slane %v2677_v20, 1 }
 0x185   : > { %v2730_v62 = vsel %vm1576_vm8, %v2728_v44, %v2729_v54  ;;  %v2734_v15 = vrot.slane %v2676_v59, 1  ;;  %v2750_v44 = vrot.slane %v11052_v37, 1  ;;  %v10186_v54 = vld [vmem:[%s12132_s1 + $0x1c0] sm:$0xff]   ;;  %v2756_v37 = vrot.slane %v11077_v14, 1 }
 0x187   : > { %v2736_v1 = vsel %vm1576_vm8, %v2734_v15, %v2735_v0  ;;  %v2751_v29 = vsel %vm1576_vm8, %v2749_v42, %v2750_v44  ;;  %v2684_v15 = vld [vmem:[#allocation2 + $0xe0] sm:$0xfe]  ;;  %v2685_v0 = vld [vmem:[#allocation2 + $0xf0] sm:$0xfe]  ;;  %v11224_v42 = vld [vmem:[#allocation2 + $0x68] sm:$0x1] }
 0x18b   : > { %8969 = vmatmul.mubr.bf16.gmra.mrb[28].mxu0 %v2396_v36  ;;  %v2739_v36 = vsel %vm1576_vm8, %v2737_v22, %v2738_v25  ;;  %v2758_v22 = vrot.slane %v2684_v15, 1  ;;  %v2759_v25 = vrot.slane %v11088_v33, 1  ;;  %v10187_v33 = vld [vmem:[%s12132_s1 + $0x1c8] sm:$0xff]  }
 0x18c   : > { %8988 = vmatprep.mubr.bf16.mxu0 %v2721_v11  ;;  %v2678_v11 = vld [vmem:[#allocation2 + $0x80] sm:$0xfe] }
 0x18d   : > { %v2740_v23 = vrot.slane %v2678_v11, 1  ;;  %v2686_v11 = vld [vmem:[#allocation2 + $0x100] sm:$0xfe] }
 0x18e   : > { %v2764_v14 = vrot.slane %v2686_v11, 1 }
 0x18f   : > { %v2742_v61 = vsel %vm1576_vm8, %v2740_v23, %v2741_v49  ;;  %v10291_v49 = vld [vmem:[#allocation2 + $0x100] sm:$0xff] }
 0x193   : > { %8989 = vmatmul.mubr.bf16.vlgmr.msra.gmra.mrb[0].mxu0 %v2724_v27  ;;  %v2745_v27 = vsel %vm1576_vm8, %v2743_v18, %v2744_v39  ;;  %v11213_v18 = vld [vmem:[#allocation2 + $0x48] sm:$0x1] }
 0x194   : > { %9021 = vmatpush3.bf16.msra.mxu0 %v10178_v12  ;;  %8992 = vmatprep.mubr.bf16.mxu0 %v2727_v2  ;;  %v10181_v12 = vld [vmem:[%s12132_s1 + $0x198] sm:$0xff]   ;;  %v2680_v2 = vld [vmem:[#allocation2 + $0xa0] sm:$0xfe] }
 0x195   : > { %9022 = vmatprep.subr.bf16.mxu0 %v10179_v46  ;;  %v2746_v48 = vrot.slane %v2680_v2, 1  ;;  %v11219_v2 = vld [vmem:[#allocation2] sm:$0xff] }
 0x198   : > { %9023 = vmatpush3.bf16.msra.mxu0 %v10179_v46  ;;  %v2747_v46 = vrot.slane %v11046_v40, 1 }
 0x199   : > { %9024 = vmatprep.subr.bf16.mxu0 %v10180_v57 }
 0x19a   : > { %v2748_v58 = vsel %vm1576_vm8, %v2746_v48, %v2747_v46  ;;  %v11222_v48 = vld [vmem:[#allocation2 + $0x58] sm:$0x1] }
 0x19b   : > { %8993 = vmatmul.mubr.bf16.gmra.mrb[4].mxu0 %v2730_v62  ;;  %v2683_v62 = vld [vmem:[#allocation2 + $0xd0] sm:$0xfe] }
 0x19c   : > { %8996 = vmatprep.mubr.bf16.mxu0 %v2733_v38  ;;  %9025 = vmatpush3.bf16.msra.mxu0 %v10180_v57  ;;  %v2682_v57 = vld [vmem:[#allocation2 + $0xc0] sm:$0xfe]  ;;  %v2753_v38 = vrot.slane %v11072_v63, 1  ;;  %v2755_v59 = vrot.slane %v2683_v62, 1  ;;  %v3404_v62 = vshll.u32 %v11224_v42, 16 }
 0x19d   : > { %9026 = vmatprep.subr.bf16.mxu0 %v10181_v12  ;;  %v2752_v40 = vrot.slane %v2682_v57, 1 }
 0x19e   : > { %v2757_v20 = vsel %vm1576_vm8, %v2755_v59, %v2756_v37  ;;  %v11235_v59 = vld [vmem:[#allocation2 + $0x78] sm:$0x1]  ;;  %v11240_v37 = vld [vmem:[#allocation2 + $0x88] sm:$0x1] }
 0x1a0   : > { %9027 = vmatpush3.bf16.msra.mxu0 %v10181_v12  ;;  %v2754_v12 = vsel %vm1576_vm8, %v2752_v40, %v2753_v38 }
 0x1a1   : > { %9028 = vmatprep.subr.bf16.mxu0 %v10182_v26 }
 0x1a3   : > { %8997 = vmatmul.mubr.bf16.gmra.mrb[8].mxu0 %v2736_v1  ;;  %v2762_v1 = vrot.slane %v11090_v56, 1  ;;  %v10188_v56 = vld [vmem:[%s12132_s1 + $0x1d0] sm:$0xff]  }
 0x1a4   : > { %9000 = vmatprep.mubr.bf16.mxu0 %v2739_v36  ;;  %9029 = vmatpush3.bf16.msra.mxu0 %v10182_v26  ;;  %v2761_v26 = vrot.slane %v2685_v0, 1  ;;  %v2760_v36 = vsel %vm1576_vm8, %v2758_v22, %v2759_v25  ;;  %v3428_v0 = vshll.u32 %v11240_v37, 16  ;;  %v10197_v22 = vld [vmem:[%s12132_s1 + $0x218] sm:$0xff]  }
 0x1a5   : > { %9030 = vmatprep.subr.bf16.mxu0 %v10183_v34 }
 0x1a6   : > { %v2763_v63 = vsel %vm1576_vm8, %v2761_v26, %v2762_v1  ;;  %v3430_v26 = vrot.slane %v3428_v0, 1  ;;  %v11250_v1 = vld [vmem:[#allocation2 + $0x98] sm:$0x1] }
 0x1a7   : > { %v3440_v11 = vshll.u32 %v11250_v1, 16 }
 0x1a8   : > { %9031 = vmatpush3.bf16.msra.mxu0 %v10183_v34  ;;  %v2765_v34 = vrot.slane %v11099_v45, 1  ;;  %v11201_v45 = vld [vmem:[#allocation2 + $0xe0] sm:$0xff] }
 0x1a9   : > { %9032 = vmatprep.subr.bf16.mxu0 %v10184_v24 }
 0x1aa   : > { %v2766_v21 = vsel %vm1576_vm8, %v2764_v14, %v2765_v34  ;;  %v3431_v14 = vsel %vm884_vm4, %v11041_v32, %v3430_v26  ;;  %v11271_v32 = vld [vmem:[#allocation2 + $0xc8] sm:$0x1]  ;;  %v3531_v26 = vshll.u32 %v11219_v2, 16 }
 0x1ab   : > { %9001 = vmatmul.mubr.bf16.gmra.mrb[12].mxu0 %v2742_v61  ;;  %v3380_v61 = vshll.u32 %v11213_v18, 16 }
 0x1ac   : > { %9004 = vmatprep.mubr.bf16.mxu0 %v2745_v27  ;;  %9033 = vmatpush3.bf16.msra.mxu0 %v10184_v24  ;;  %v3324_v27 = vld [vmem:[#allocation2 + $0x60] sm:$0xff] }
 0x1ad   : > { %9034 = vmatprep.subr.bf16.mxu0 %v10185_v7  ;;  %v3382_v41 = vrot.slane %v3380_v61, 1  ;;  %v3399_v46 = vshll.u32 %v3324_v27, 16 }
 0x1af   : > { %v3401_v57 = vrot.slane %v3399_v46, 1  ;;  %v3493_v46 = vshrl.u32 %v11201_v45, 16 }
 0x1b0   : > { %9035 = vmatpush3.bf16.msra.mxu0 %v10185_v7 }
 0x1b1   : > { %9068 = vmatprep.subr.bf16.mxu0 %v10186_v54 }
 0x1b3   : > { %9005 = vmatmul.mubr.bf16.gmra.mrb[16].mxu0 %v2748_v58  ;;  %v10195_v58 = vld [vmem:[%s12132_s1 + $0x208] sm:$0xff]  }
 0x1b4   : > { %9008 = vmatprep.mubr.bf16.mxu0 %v2751_v29  ;;  %v3397_v29 = vshrl.u32 %v3324_v27, 16 }
 0x1b6   : > { %v3402_v38 = vor.u32 %v3401_v57, %v3397_v29 }
 0x1bb   : > { %9009 = vmatmul.mubr.bf16.gmra.mrb[20].mxu0 %v2754_v12 }
 0x1bc   : > { %9012 = vmatprep.mubr.bf16.mxu0 %v2757_v20  ;;  %v3416_v20 = vshll.u32 %v11235_v59, 16 }
 0x1be   : > { %v3418_v25 = vrot.slane %v3416_v20, 1 }
 0x1c3   : > { %9013 = vmatmul.mubr.bf16.gmra.mrb[24].mxu0 %v2760_v36  ;;  %v11255_v36 = vld [vmem:[#allocation2 + $0xa8] sm:$0x1] }
 0x1c4   : > { %9016 = vmatprep.mubr.bf16.mxu0 %v2763_v63  ;;  %v3419_v63 = vsel %vm884_vm4, %v11017_v60, %v3418_v25  ;;  %v3452_v34 = vshll.u32 %v11255_v36, 16  ;;  %v10200_v60 = vld [vmem:[%s12132_s1 + $0x230] sm:$0xff]  }
 0x1cb   : > { %9017 = vmatmul.mubr.bf16.gmra.mrb[28].mxu0 %v2766_v21  ;;  %v10199_v21 = vld [vmem:[%s12132_s1 + $0x228] sm:$0xff]  }
 0x1cc   : > { %9036 = vmatprep.mubr.bf16.mxu0 %v10908_v10  ;;  %v10189_v10 = vld [vmem:[%s12132_s1 + $0x1d8] sm:$0xff]  }
 0x1d3   : > { %9037 = vmatmul.mubr.bf16.vlgmr.msra.gmra.mrb[0].mxu0 %v10910_v3  ;;  %v10190_v3 = vld [vmem:[%s12132_s1 + $0x1e0] sm:$0xff]  }
 0x1d4   : > { %9069 = vmatpush3.bf16.msra.mxu0 %v10186_v54  ;;  %9040 = vmatprep.mubr.bf16.mxu0 %v10920_v43  ;;  %v10191_v43 = vld [vmem:[%s12132_s1 + $0x1e8] sm:$0xff]   ;;  %v3383_v54 = vsel %vm884_vm4, %v10988_v52, %v3382_v41  ;;  %v10196_v52 = vld [vmem:[%s12132_s1 + $0x210] sm:$0xff]  }
 0x1d5   : > { %9070 = vmatprep.subr.bf16.mxu0 %v10187_v33 }
 0x1d8   : > { %9071 = vmatpush3.bf16.msra.mxu0 %v10187_v33  ;;  %v3442_v33 = vrot.slane %v3440_v11, 1  ;;  %v11307_v11 = vld [vmem:[#allocation2 + $0x118] sm:$0x1] }
 0x1d9   : > { %9072 = vmatprep.subr.bf16.mxu0 %v10188_v56 }
 0x1db   : > { %9041 = vmatmul.mubr.bf16.gmra.mrb[4].mxu0 %v10922_v19  ;;  %v10192_v19 = vld [vmem:[%s12132_s1 + $0x1f0] sm:$0xff]  }
 0x1dc   : > { %9044 = vmatprep.mubr.bf16.mxu0 %v10932_v35  ;;  %9073 = vmatpush3.bf16.msra.mxu0 %v10188_v56  ;;  %v10193_v35 = vld [vmem:[%s12132_s1 + $0x1f8] sm:$0xff]   ;;  %v3454_v56 = vrot.slane %v3452_v34, 1  ;;  %v3533_v34 = vrot.slane %v3531_v26, 1  ;;  %v3893_v26 = vrot.slane %v11271_v32, 1 }
 0x1dd   : > { %9074 = vmatprep.subr.bf16.mxu0 %v10189_v10 }
 0x1e0   : > { %9075 = vmatpush3.bf16.msra.mxu0 %v10189_v10  ;;  %v11266_v10 = vld [vmem:[#allocation2 + $0xb8] sm:$0x1] }
 0x1e1   : > { %9076 = vmatprep.subr.bf16.mxu0 %v10190_v3 }
 0x1e3   : > { %9045 = vmatmul.mubr.bf16.gmra.mrb[8].mxu0 %v10986_v4  ;;  %v10194_v4 = vld [vmem:[%s12132_s1 + $0x200] sm:$0xff]  }
 0x1e4   : > { %9048 = vmatprep.mubr.bf16.mxu0 %v11009_v50  ;;  %9077 = vmatpush3.bf16.msra.mxu0 %v10190_v3  ;;  %v11199_v50 = vld [vmem:[#allocation2 + $0xd0] sm:$0xff]  ;;  %v3443_v3 = vsel %vm884_vm4, %v11044_v31, %v3442_v33 }
 0x1e5   : > { %9078 = vmatprep.subr.bf16.mxu0 %v10191_v43  ;;  %v3481_v61 = vshrl.u32 %v11199_v50, 16 }
 0x1e8   : > { %9079 = vmatpush3.bf16.msra.mxu0 %v10191_v43  ;;  %v3464_v43 = vshll.u32 %v11266_v10, 16 }
 0x1e9   : > { %9080 = vmatprep.subr.bf16.mxu0 %v10192_v19 }
 0x1eb   : > { %9049 = vmatmul.mubr.bf16.gmra.mrb[12].mxu0 %v11014_v53  ;;  %v11205_v53 = vld [vmem:[#allocation2 + $0x28] sm:$0x1] }
 0x1ec   : > { %9052 = vmatprep.mubr.bf16.mxu0 %v11034_v28  ;;  %9081 = vmatpush3.bf16.msra.mxu0 %v10192_v19  ;;  %v11207_v28 = vld [vmem:[#allocation2 + $0xf0] sm:$0xff]  ;;  %v3356_v23 = vshll.u32 %v11205_v53, 16  ;;  %v3455_v19 = vsel %vm884_vm4, %v11067_v55, %v3454_v56  ;;  %v11286_v55 = vld [vmem:[#allocation2 + $0xe8] sm:$0x1]  ;;  %v3814_v56 = vld [vmem:[#allocation2 + $0x20] sm:$0xfe] }
 0x1ed   : > { %9082 = vmatprep.subr.bf16.mxu0 %v10193_v35 }
 0x1f0   : > { %9083 = vmatpush3.bf16.msra.mxu0 %v10193_v35  ;;  %v3476_v35 = vshll.u32 %v11271_v32, 16  ;;  %v3828_v32 = vld [vmem:[#allocation2 + $0x100] sm:$0xfe] }
 0x1f1   : > { %9116 = vmatprep.subr.bf16.mxu0 %v10194_v4 }
 0x1f2   : > { %v3478_v31 = vrot.slane %v3476_v35, 1 }
 0x1f3   : > { %9053 = vmatmul.mubr.bf16.gmra.mrb[16].mxu0 %v11039_v30  ;;  %v3358_v30 = vrot.slane %v3356_v23, 1  ;;  %v3466_v23 = vrot.slane %v3464_v43, 1  ;;  %v3862_v43 = vrot.slane %v3814_v56, 1  ;;  %v3827_v56 = vld [vmem:[#allocation2 + $0xf0] sm:$0xfe] }
 0x1f4   : > { %9056 = vmatprep.mubr.bf16.mxu0 %v11062_v51  ;;  %v11211_v51 = vld [vmem:[#allocation2 + $0x38] sm:$0x1]  ;;  %v3479_v41 = vsel %vm884_vm4, %v11086_v9, %v3478_v31 }
 0x1f5   : > { %v3368_v39 = vshll.u32 %v11211_v51, 16  ;;  %v3359_v24 = vsel %vm884_vm4, %v10965_v13, %v3358_v30  ;;  %v3392_v13 = vshll.u32 %v11222_v48, 16  ;;  %v11283_v30 = vld [vmem:[#allocation2 + $0xd8] sm:$0x1]  ;;  %v3866_v31 = vrot.slane %v11211_v51, 1 }
 0x1f7   : > { %v3370_v7 = vrot.slane %v3368_v39, 1  ;;  %v3394_v40 = vrot.slane %v3392_v13, 1  ;;  %v3495_v39 = vshll.u32 %v11201_v45, 16  ;;  %v3500_v13 = vshll.u32 %v11286_v55, 16 }
 0x1f9   : > { %v3371_v44 = vsel %vm884_vm4, %v10968_v16, %v3370_v7  ;;  %v3406_v16 = vrot.slane %v3404_v62, 1  ;;  %v3395_v12 = vsel %vm884_vm4, %v10991_v17, %v3394_v40  ;;  %v10198_v17 = vld [vmem:[%s12132_s1 + $0x220] sm:$0xff]   ;;  %v3488_v7 = vshll.u32 %v11283_v30, 16  ;;  %v11297_v62 = vld [vmem:[#allocation2 + $0xf8] sm:$0x1] }
 0x1fa   : > { %v3502_v57 = vrot.slane %v3500_v13, 1  ;;  %v3875_v13 = vrot.slane %v11224_v42, 1  ;;  %v3822_v42 = vld [vmem:[#allocation2 + $0xa0] sm:$0xfe] }
 0x1fb   : > { %9057 = vmatmul.mubr.bf16.gmra.mrb[20].mxu0 %v11199_v50  ;;  %v3407_v15 = vsel %vm884_vm4, %v3402_v38, %v3406_v16  ;;  %v3490_v29 = vrot.slane %v3488_v7, 1  ;;  %v11299_v38 = vld [vmem:[#allocation2 + $0x108] sm:$0x1]  ;;  %v3818_v7 = vld [vmem:[#allocation2 + $0x60] sm:$0xfe] }
 0x1fc   : > { %9060 = vmatprep.mubr.bf16.mxu0 %v11201_v45  ;;  %v3505_v45 = vshrl.u32 %v11207_v28, 16  ;;  %v3524_v0 = vshll.u32 %v11299_v38, 16 }
 0x203   : > { %9061 = vmatmul.mubr.bf16.gmra.mrb[24].mxu0 %v11207_v28 }
 0x204   : > { %9064 = vmatprep.mubr.bf16.mxu0 %v10291_v49  ;;  %v3483_v49 = vshll.u32 %v11199_v50, 16 }
 0x206   : > { %v3485_v27 = vrot.slane %v3483_v49, 1 }
 0x20b   : > { %9065 = vmatmul.mubr.bf16.gmra.mrb[28].mxu0 %v11219_v2 }
 0x20c   : > { %9084 = vmatprep.mubr.bf16.mxu0 %v3359_v24  ;;  %v3467_v24 = vsel %vm884_vm4, %v11070_v8, %v3466_v23  ;;  %v3507_v8 = vshll.u32 %v11207_v28, 16  ;;  %v3816_v23 = vld [vmem:[#allocation2 + $0x40] sm:$0xfe] }
 0x20e   : > { %v3509_v16 = vrot.slane %v3507_v8, 1  ;;  %v3878_v8 = vrot.slane %v11235_v59, 1 }
 0x213   : > { %9085 = vmatmul.mubr.bf16.vlgmr.msra.gmra.mrb[0].mxu0 %v3371_v44  ;;  %v3497_v44 = vrot.slane %v3495_v39, 1  ;;  %v3868_v39 = vrot.slane %v3816_v23, 1  ;;  %v3908_v23 = vrot.slane %v11307_v11, 1 }
 0x214   : > { %9117 = vmatpush3.bf16.msra.mxu0 %v10194_v4  ;;  %9088 = vmatprep.mubr.bf16.mxu0 %v3383_v54  ;;  %v10201_v4 = vld [vmem:[%s12132_s1 + $0x238] sm:$0xff]   ;;  %v3344_v54 = vld [vmem:[#allocation2 + $0x100] sm:$0xff] }
 0x215   : > { %9118 = vmatprep.subr.bf16.mxu0 %v10195_v58  ;;  %v3498_v50 = vor.u32 %v3497_v44, %v3493_v46  ;;  %v3519_v40 = vshll.u32 %v3344_v54, 16  ;;  %v3517_v20 = vshrl.u32 %v3344_v54, 16  ;;  %v3872_v46 = vrot.slane %v11222_v48, 1 }
 0x216   : > { %v3874_v44 = vrot.slane %v3818_v7, 1  ;;  %v354_v7 = vld [vmem:[#allocation3 + $0x10] sm:$0x1] }
 0x218   : > { %9119 = vmatpush3.bf16.msra.mxu0 %v10195_v58  ;;  %v3486_v58 = vor.u32 %v3485_v27, %v3481_v61  ;;  %v3876_v51 = vsel %vm1576_vm8, %v3874_v44, %v3875_v13  ;;  %v10206_v44 = vld [vmem:[#allocation4 + $0x60] sm:$0xff]   ;;  %v411_v13 = vld [vmem:[#allocation3 + $0x48] sm:$0x1] }
 0x219   : > { %9120 = vmatprep.subr.bf16.mxu0 %v10196_v52 }
 0x21a   : > { %v3491_v9 = vsel %vm884_vm4, %v3486_v58, %v3490_v29  ;;  %v3819_v58 = vld [vmem:[#allocation2 + $0x70] sm:$0xfe] }
 0x21b   : > { %9089 = vmatmul.mubr.bf16.gmra.mrb[4].mxu0 %v3395_v12  ;;  %v3503_v12 = vsel %vm884_vm4, %v3498_v50, %v3502_v57  ;;  %v3877_v29 = vrot.slane %v3819_v58, 1  ;;  %v3881_v57 = vrot.slane %v11240_v37, 1  ;;  %v3824_v37 = vld [vmem:[#allocation2 + $0xc0] sm:$0xfe]  ;;  %v363_v58 = vld [vmem:[#allocation3 + $0x40] sm:$0x1] }
 0x21c   : > { %9092 = vmatprep.mubr.bf16.mxu0 %v3407_v15  ;;  %9121 = vmatpush3.bf16.msra.mxu0 %v10196_v52  ;;  %v3512_v52 = vshll.u32 %v11297_v62, 16  ;;  %v3521_v15 = vrot.slane %v3519_v40, 1 }
 0x21d   : > { %9122 = vmatprep.subr.bf16.mxu0 %v10197_v22  ;;  %v3879_v40 = vsel %vm1576_vm8, %v3877_v29, %v3878_v8  ;;  %v364_v29 = vsel %vm10438_vm3, 0, %v363_v58  ;;  %v360_v8 = vld [vmem:[#allocation3 + $0x30] sm:$0x1]  ;;  %v11421_v58 = vld [vmem:[%s12133_s2] ss:$0 sm:$0xff] }
 0x21e   : > { %v3514_v25 = vrot.slane %v3512_v52, 1  ;;  %v3886_v52 = vrot.slane %v3822_v42, 1  ;;  %365 = vst [vmem:[#allocation3 + $0x40] sm:$0x1] %v364_v29  ;;  %v414_v42 = vld [vmem:[#allocation3 + $0x58] sm:$0x1] }
 0x220   : > { %9123 = vmatpush3.bf16.msra.mxu0 %v10197_v22  ;;  %v3510_v22 = vor.u32 %v3509_v16, %v3505_v45  ;;  %v3884_v16 = vrot.slane %v11250_v1, 1 }
 0x221   : > { %9124 = vmatprep.subr.bf16.mxu0 %v10198_v17 }
 0x222   : > { %v3515_v28 = vsel %vm884_vm4, %v3510_v22, %v3514_v25  ;;  %v3890_v22 = vrot.slane %v11266_v10, 1  ;;  %v3892_v25 = vrot.slane %v3824_v37, 1 }
 0x223   : > { %9093 = vmatmul.mubr.bf16.gmra.mrb[8].mxu0 %v3419_v63  ;;  %v3526_v63 = vrot.slane %v3524_v0, 1 }
 0x224   : > { %9096 = vmatprep.mubr.bf16.mxu0 %v3431_v14  ;;  %9125 = vmatpush3.bf16.msra.mxu0 %v10198_v17  ;;  %v3522_v17 = vor.u32 %v3521_v15, %v3517_v20  ;;  %v3529_v14 = vshrl.u32 %v11219_v2, 16  ;;  %v3815_v2 = vld [vmem:[#allocation2 + $0x30] sm:$0xfe]  ;;  %v3894_v1 = vsel %vm1576_vm8, %v3892_v25, %v3893_v26  ;;  %v420_v26 = vld [vmem:[#allocation3 + $0x78] sm:$0x1] }
 0x225   : > { %9126 = vmatprep.subr.bf16.mxu0 %v10199_v21  ;;  %v3865_v49 = vrot.slane %v3815_v2, 1  ;;  %v3823_v15 = vld [vmem:[#allocation2 + $0xb0] sm:$0xfe] }
 0x226   : > { %v3527_v33 = vsel %vm884_vm4, %v3522_v17, %v3526_v63  ;;  %v3889_v0 = vrot.slane %v3823_v15, 1  ;;  %v3825_v63 = vld [vmem:[#allocation2 + $0xd0] sm:$0xfe]  ;;  %v4543_v15 = vld [vmem:[#allocation3 + $0x8] sm:$0x1] }
 0x227   : > { %v3867_v61 = vsel %vm1576_vm8, %v3865_v49, %v3866_v31  ;;  %v3829_v2 = vld [vmem:[#allocation2 + $0x110] sm:$0xfe]  ;;  %v10202_v31 = vld [vmem:[#allocation4 + $0x40] sm:$0xff]   ;;  %v4567_v37 = vshll.u32 %v4543_v15, 16 }
 0x228   : > { %9127 = vmatpush3.bf16.msra.mxu0 %v10199_v21  ;;  %v3536_v21 = vshll.u32 %v11307_v11, 16  ;;  %v3891_v17 = vsel %vm1576_vm8, %v3889_v0, %v3890_v22  ;;  %9164 = vmatprep.subr.bf16.mxu1 %v10202_v31  ;;  %v423_v22 = vld [vmem:[#allocation3 + $0x88] sm:$0x1] }
 0x229   : > { %9128 = vmatprep.subr.bf16.mxu0 %v10200_v60  ;;  %9165 = vmatpush3.bf16.msra.mxu1 %v10202_v31  ;;  %v4569_v0 = vrot.slane %v4567_v37, 1  ;;  %v424_v25 = vsel %vm10448_vm5, 0, %v423_v22  ;;  %v393_v31 = vld [vmem:[#allocation3 + $0xe0] sm:$0x1] }
 0x22a   : > { %425 = vst [vmem:[#allocation3 + $0x88] sm:$0x1] %v424_v25 }
 0x22b   : > { %9097 = vmatmul.mubr.bf16.gmra.mrb[12].mxu0 %v3443_v3  ;;  %v3538_v3 = vrot.slane %v3536_v21, 1  ;;  %v3899_v21 = vrot.slane %v11286_v55, 1  ;;  %v3907_v55 = vrot.slane %v3829_v2, 1  ;;  %v432_v2 = vld [vmem:[#allocation3 + $0xb8] sm:$0x1] }
 0x22c   : > { %9100 = vmatprep.mubr.bf16.mxu0 %v3455_v19  ;;  %9129 = vmatpush3.bf16.msra.mxu0 %v10200_v60  ;;  %v11313_v60 = vor.u32 %v3533_v34, %v3529_v14  ;;  %v3863_v19 = vrot.slane %v11205_v53, 1  ;;  %v3817_v53 = vld [vmem:[#allocation2 + $0x50] sm:$0xfe]  ;;  %v3896_v14 = vrot.slane %v11283_v30, 1 }
 0x22d   : > { %9130 = vmatprep.subr.bf16.mxu0 %v10201_v4  ;;  %v3909_v49 = vsel %vm1576_vm8, %v3907_v55, %v3908_v23  ;;  %v433_v55 = vsel %vm10448_vm5, 0, %v432_v2  ;;  %v384_v23 = vld [vmem:[#allocation3 + $0xb0] sm:$0x1] }
 0x22e   : > { %v3539_v35 = vsel %vm884_vm4, %v11313_v60, %v3538_v3  ;;  %v3901_v3 = vrot.slane %v3827_v56, 1  ;;  %434 = vst [vmem:[#allocation3 + $0xb8] sm:$0x1] %v433_v55 }
 0x230   : > { %9131 = vmatpush3.bf16.msra.mxu0 %v10201_v4  ;;  %v3864_v4 = vsel %vm1576_vm8, %v3862_v43, %v3863_v19  ;;  %v3902_v43 = vrot.slane %v11297_v62, 1  ;;  %v3904_v19 = vrot.slane %v3828_v32, 1  ;;  %v10203_v62 = vld [vmem:[#allocation4 + $0x48] sm:$0xff]   ;;  %v378_v32 = vld [vmem:[#allocation3 + $0x90] sm:$0x1] }
 0x231   : > { %9166 = vmatprep.subr.bf16.mxu1 %v10203_v62 }
 0x232   : > { %9167 = vmatpush3.bf16.msra.mxu1 %v10203_v62  ;;  %v441_v62 = vld [vmem:[#allocation3 + $0xe8] sm:$0x1] }
 0x233   : > { %9101 = vmatmul.mubr.bf16.gmra.mrb[16].mxu0 %v3467_v24  ;;  %v3869_v24 = vrot.slane %v11213_v18, 1  ;;  %v3820_v18 = vld [vmem:[#allocation2 + $0x80] sm:$0xfe] }
 0x234   : > { %9104 = vmatprep.mubr.bf16.mxu0 %v3479_v41  ;;  %v3871_v41 = vrot.slane %v3817_v53, 1  ;;  %v3880_v50 = vrot.slane %v3820_v18, 1 }
 0x235   : > { %v3870_v27 = vsel %vm1576_vm8, %v3868_v39, %v3869_v24  ;;  %v405_v39 = vld [vmem:[#allocation3 + $0x28] sm:$0x1]  ;;  %v357_v24 = vld [vmem:[#allocation3 + $0x20] sm:$0x1] }
 0x236   : > { %v3873_v54 = vsel %vm1576_vm8, %v3871_v41, %v3872_v46  ;;  %v3882_v48 = vsel %vm1576_vm8, %v3880_v50, %v3881_v57  ;;  %v358_v11 = vsel %vm10438_vm3, 0, %v357_v24  ;;  %v10205_v41 = vld [vmem:[#allocation4 + $0x58] sm:$0xff]   ;;  %v355_v46 = vsel %vm10438_vm3, 0, %v354_v7  ;;  %v10207_v50 = vld [vmem:[#allocation4 + $0x68] sm:$0xff]   ;;  %v390_v24 = vld [vmem:[#allocation3 + $0xd0] sm:$0x1] }
 0x237   : > { %359 = vst [vmem:[#allocation3 + $0x20] sm:$0x1] %v358_v11  ;;  %356 = vst [vmem:[#allocation3 + $0x10] sm:$0x1] %v355_v46  ;;  %v361_v57 = vsel %vm10438_vm3, 0, %v360_v8 }
 0x238   : > { %362 = vst [vmem:[#allocation3 + $0x30] sm:$0x1] %v361_v57 }
 0x23b   : > { %9105 = vmatmul.mubr.bf16.gmra.mrb[20].mxu0 %v3491_v9  ;;  %v3821_v9 = vld [vmem:[#allocation2 + $0x90] sm:$0xfe] }
 0x23c   : > { %9108 = vmatprep.mubr.bf16.mxu0 %v3503_v12  ;;  %v3883_v45 = vrot.slane %v3821_v9, 1  ;;  %v3887_v12 = vrot.slane %v11255_v36, 1  ;;  %v3826_v36 = vld [vmem:[#allocation2 + $0xe0] sm:$0xfe] }
 0x23d   : > { %v3898_v34 = vrot.slane %v3826_v36, 1 }
 0x23e   : > { %v3885_v20 = vsel %vm1576_vm8, %v3883_v45, %v3884_v16  ;;  %v3888_v59 = vsel %vm1576_vm8, %v3886_v52, %v3887_v12  ;;  %v369_v45 = vld [vmem:[#allocation3 + $0x60] sm:$0x1]  ;;  %v415_v16 = vsel %vm10448_vm5, 0, %v414_v42  ;;  %v366_v12 = vld [vmem:[#allocation3 + $0x50] sm:$0x1] }
 0x23f   : > { %v3900_v10 = vsel %vm1576_vm8, %v3898_v34, %v3899_v21  ;;  %v370_v52 = vsel %vm10438_vm3, 0, %v369_v45  ;;  %416 = vst [vmem:[#allocation3 + $0x58] sm:$0x1] %v415_v16  ;;  %v429_v34 = vld [vmem:[#allocation3 + $0xa8] sm:$0x1] }
 0x240   : > { %371 = vst [vmem:[#allocation3 + $0x60] sm:$0x1] %v370_v52  ;;  %v426_v21 = vld [vmem:[#allocation3 + $0x98] sm:$0x1] }
 0x243   : > { %9109 = vmatmul.mubr.bf16.gmra.mrb[24].mxu0 %v3515_v28  ;;  %v3895_v28 = vrot.slane %v3825_v63, 1  ;;  %v421_v63 = vsel %vm10448_vm5, 0, %v420_v26 }
 0x244   : > { %9112 = vmatprep.mubr.bf16.mxu0 %v3527_v33  ;;  %422 = vst [vmem:[#allocation3 + $0x78] sm:$0x1] %v421_v63 }
 0x245   : > { %v3897_v33 = vsel %vm1576_vm8, %v3895_v28, %v3896_v14  ;;  %v372_v28 = vld [vmem:[#allocation3 + $0x70] sm:$0x1] }
 0x246   : > { %v373_v14 = vsel %vm10438_vm3, 0, %v372_v28 }
 0x247   : > { %374 = vst [vmem:[#allocation3 + $0x70] sm:$0x1] %v373_v14  ;;  %v4421_v14 = vld [vmem:[#allocation3 + $0x20] sm:$0xff] }
 0x24b   : > { %9113 = vmatmul.mubr.bf16.gmra.mrb[28].mxu0 %v3539_v35  ;;  %v3905_v35 = vrot.slane %v11299_v38, 1  ;;  %v10204_v38 = vld [vmem:[#allocation4 + $0x50] sm:$0xff]  }
 0x24c   : > { %9132 = vmatprep.mubr.bf16.mxu0 %v3864_v4  ;;  %v3903_v4 = vsel %vm1576_vm8, %v3901_v3, %v3902_v43  ;;  %9168 = vmatprep.subr.bf16.mxu1 %v10204_v38  ;;  %v11389_v3 = vld [vmem:[#allocation4] sm:$0xff]   ;;  %v379_v43 = vsel %vm10438_vm3, 0, %v378_v32 }
 0x24d   : > { %v3906_v30 = vsel %vm1576_vm8, %v3904_v19, %v3905_v35  ;;  %9169 = vmatpush3.bf16.msra.mxu1 %v10204_v38  ;;  %380 = vst [vmem:[#allocation3 + $0x90] sm:$0x1] %v379_v43  ;;  %v387_v19 = vld [vmem:[#allocation3 + $0xc0] sm:$0x1]  ;;  %v394_v38 = vsel %vm10438_vm3, 0, %v393_v31 }
 0x24e   : > { %9170 = vmatprep.subr.bf16.mxu1 %v10205_v41  ;;  %v388_v35 = vsel %vm10438_vm3, 0, %v387_v19  ;;  %395 = vst [vmem:[#allocation3 + $0xe0] sm:$0x1] %v394_v38 }
 0x24f   : > { %389 = vst [vmem:[#allocation3 + $0xc0] sm:$0x1] %v388_v35 }
 0x251   : > { %9171 = vmatpush3.bf16.msra.mxu1 %v10205_v41  ;;  %v447_v41 = vld [vmem:[#allocation3 + $0x108] sm:$0x1] }
 0x252   : > { %9172 = vmatprep.subr.bf16.mxu1 %v10206_v44  ;;  %v448_v46 = vsel %vm10448_vm5, 0, %v447_v41 }
 0x253   : > { %9133 = vmatmul.mubr.bf16.vlgmr.msra.gmra.mrb[0].mxu0 %v3867_v61  ;;  %v406_v61 = vsel %vm10448_vm5, 0, %v405_v39  ;;  %v442_v39 = vsel %vm10448_vm5, 0, %v441_v62  ;;  %449 = vst [vmem:[#allocation3 + $0x108] sm:$0x1] %v448_v46 }
 0x254   : > { %9136 = vmatprep.mubr.bf16.mxu0 %v3870_v27  ;;  %v402_v27 = vld [vmem:[#allocation3 + $0x18] sm:$0x1]  ;;  %407 = vst [vmem:[#allocation3 + $0x28] sm:$0x1] %v406_v61  ;;  %443 = vst [vmem:[#allocation3 + $0xe8] sm:$0x1] %v442_v39 }
 0x255   : > { %v403_v53 = vsel %vm10448_vm5, 0, %v402_v27  ;;  %9173 = vmatpush3.bf16.msra.mxu1 %v10206_v44  ;;  %v438_v61 = vld [vmem:[#allocation3 + $0xd8] sm:$0x1]  ;;  %v391_v27 = vsel %vm10438_vm3, 0, %v390_v24  ;;  %v396_v44 = vld [vmem:[#allocation3 + $0xf0] sm:$0x1] }
 0x256   : > { %404 = vst [vmem:[#allocation3 + $0x18] sm:$0x1] %v403_v53  ;;  %9174 = vmatprep.subr.bf16.mxu1 %v10207_v50  ;;  %v439_v11 = vsel %vm10448_vm5, 0, %v438_v61  ;;  %v399_v53 = vld [vmem:[#allocation3 + $0x100] sm:$0x1] }
 0x257   : > { %392 = vst [vmem:[#allocation3 + $0xd0] sm:$0x1] %v391_v27  ;;  %440 = vst [vmem:[#allocation3 + $0xd8] sm:$0x1] %v439_v11  ;;  %v400_v7 = vsel %vm10438_vm3, 0, %v399_v53 }
 0x258   : > { %401 = vst [vmem:[#allocation3 + $0x100] sm:$0x1] %v400_v7 }
 0x259   : > { %9175 = vmatpush3.bf16.msra.mxu1 %v10207_v50 }
 0x25b   : > { %9137 = vmatmul.mubr.bf16.gmra.mrb[4].mxu0 %v3873_v54  ;;  %v412_v54 = vsel %vm10448_vm5, 0, %v411_v13  ;;  %v397_v13 = vsel %vm10438_vm3, 0, %v396_v44 }
 0x25c   : > { %9140 = vmatprep.mubr.bf16.mxu0 %v3876_v51  ;;  %v408_v51 = vld [vmem:[#allocation3 + $0x38] sm:$0x1]  ;;  %413 = vst [vmem:[#allocation3 + $0x48] sm:$0x1] %v412_v54  ;;  %398 = vst [vmem:[#allocation3 + $0xf0] sm:$0x1] %v397_v13 }
 0x25d   : > { %v409_v18 = vsel %vm10448_vm5, 0, %v408_v51  ;;  %v444_v54 = vld [vmem:[#allocation3 + $0xf8] sm:$0x1] }
 0x25e   : > { %410 = vst [vmem:[#allocation3 + $0x38] sm:$0x1] %v409_v18  ;;  %v445_v51 = vsel %vm10448_vm5, 0, %v444_v54  ;;  %v4418_v63 = vld [vmem:[#allocation3 + $0x18] sm:$0x1] }
 0x25f   : > { %446 = vst [vmem:[#allocation3 + $0xf8] sm:$0x1] %v445_v51 }
 0x263   : > { %9141 = vmatmul.mubr.bf16.gmra.mrb[8].mxu0 %v3879_v40  ;;  %v10208_v40 = vld [vmem:[#allocation4 + $0x70] sm:$0xff]   ;;  %v4436_v11 = vld [vmem:[#allocation3 + $0x48] sm:$0x1] }
 0x264   : > { %9144 = vmatprep.mubr.bf16.mxu0 %v3882_v48  ;;  %v417_v48 = vld [vmem:[#allocation3 + $0x68] sm:$0x1]  ;;  %9176 = vmatprep.subr.bf16.mxu1 %v10208_v40 }
 0x265   : > { %v418_v9 = vsel %vm10448_vm5, 0, %v417_v48  ;;  %9177 = vmatpush3.bf16.msra.mxu1 %v10208_v40  ;;  %v4430_v51 = vld [vmem:[#allocation3 + $0x38] sm:$0x1] }
 0x266   : > { %419 = vst [vmem:[#allocation3 + $0x68] sm:$0x1] %v418_v9 }
 0x26b   : > { %9145 = vmatmul.mubr.bf16.gmra.mrb[12].mxu0 %v3885_v20  ;;  %v10209_v20 = vld [vmem:[#allocation4 + $0x78] sm:$0xff]  }
 0x26c   : > { %9148 = vmatprep.mubr.bf16.mxu0 %v3888_v59  ;;  %v367_v59 = vsel %vm10438_vm3, 0, %v366_v12  ;;  %9178 = vmatprep.subr.bf16.mxu1 %v10209_v20 }
 0x26d   : > { %368 = vst [vmem:[#allocation3 + $0x50] sm:$0x1] %v367_v59  ;;  %9179 = vmatpush3.bf16.msra.mxu1 %v10209_v20 }
 0x26e   : > { %9212 = vmatprep.subr.bf16.mxu1 %v11389_v3 }
 0x273   : > { %9149 = vmatmul.mubr.bf16.gmra.mrb[16].mxu0 %v3891_v17  ;;  %v4570_v17 = vsel %vm884_vm4, %v11313_v60, %v4569_v0  ;;  %v430_v60 = vsel %vm10448_vm5, 0, %v429_v34  ;;  %v4424_v0 = vld [vmem:[#allocation3 + $0x28] sm:$0x1] }
 0x274   : > { %9152 = vmatprep.mubr.bf16.mxu0 %v3894_v1  ;;  %v375_v1 = vld [vmem:[#allocation3 + $0x80] sm:$0x1]  ;;  %9180 = vmatprep.mubr.bf16.mxu1 %v4570_v17  ;;  %431 = vst [vmem:[#allocation3 + $0xa8] sm:$0x1] %v430_v60 }
 0x275   : > { %v376_v36 = vsel %vm10438_vm3, 0, %v375_v1 }
 0x276   : > { %377 = vst [vmem:[#allocation3 + $0x80] sm:$0x1] %v376_v36 }
 0x27b   : > { %9153 = vmatmul.mubr.bf16.gmra.mrb[20].mxu0 %v3897_v33  ;;  %v381_v33 = vld [vmem:[#allocation3 + $0xa0] sm:$0x1] }
 0x27c   : > { %9156 = vmatprep.mubr.bf16.mxu0 %v3900_v10  ;;  %v427_v10 = vsel %vm10448_vm5, 0, %v426_v21  ;;  %v382_v56 = vsel %vm10438_vm3, 0, %v381_v33 }
 0x27d   : > { %428 = vst [vmem:[#allocation3 + $0x98] sm:$0x1] %v427_v10  ;;  %383 = vst [vmem:[#allocation3 + $0xa0] sm:$0x1] %v382_v56  ;;  %v4415_v56 = vld [vmem:[#allocation3 + $0x10] sm:$0xff] }
 0x283   : > { %9157 = vmatmul.mubr.bf16.gmra.mrb[24].mxu0 %v3903_v4  ;;  %v435_v4 = vld [vmem:[#allocation3 + $0xc8] sm:$0x1] }
 0x284   : > { %9160 = vmatprep.mubr.bf16.mxu0 %v3906_v30  ;;  %v436_v30 = vsel %vm10448_vm5, 0, %v435_v4 }
 0x285   : > { %437 = vst [vmem:[#allocation3 + $0xc8] sm:$0x1] %v436_v30 }
 0x28b   : > { %9161 = vmatmul.mubr.bf16.gmra.mrb[28].mxu0 %v3909_v49  ;;  %v385_v49 = vsel %vm10438_vm3, 0, %v384_v23 }
 0x28c   : > { %386 = vst [vmem:[#allocation3 + $0xb0] sm:$0x1] %v385_v49 }
 0x326   : > { %v9134_v18 = vpop.f32.mrb[0].mxu0 }
 0x327   : > { %v4193_v29 = vadd.f32 %v9134_v18, %v11421_v58  ;;  %v4025_v8 = vpop.f32.mrb[1].mxu0 }
 0x328   : > { %v4191_v50 = vadd.f32 %v11421_v58, %v4025_v8  ;;  %v9135_v57 = vpop.f32.mrb[2].mxu0 }
 0x329   : > { %v4194_v40 = vadd.f32 %v9135_v57, %v11421_v58  ;;  %v4028_v48 = vpop.f32.mrb[3].mxu0  ;;  %v4225_v6 = vmax.f32 %v4193_v29, 0.0 }
 0x32a   : > { %v4192_v9 = vadd.f32 %v11421_v58, %v4028_v48  ;;  %v4223_v45 = vmax.f32 %v4191_v50, 0.0  ;;  %v4433_v50 = vld [vmem:[#allocation3 + $0x40] sm:$0xff] }
 0x32b   : > { %v4226_v42 = vmax.f32 %v4194_v40, 0.0 }
 0x32c   : > { %v4224_v16 = vmax.f32 %v4192_v9, 0.0 }
 0x32d   : > { %v4256_v52 = vpack.c.bf16 %v4226_v42, %v4225_v6 }
 0x32e   : > { %v4255_v12 = vpack.c.bf16 %v4224_v16, %v4223_v45  ;;  %v9138_v20 = vpop.f32.mrb[4].mxu0  ;;  %v4427_v45 = vld [vmem:[#allocation3 + $0x30] sm:$0xff] }
 0x32f   : > { %v4279_v59 = vshrl.u32 %v4256_v52, 16  ;;  %v4197_v15 = vadd.f32 %v9138_v20, %v11421_v58  ;;  %v4041_v37 = vpop.f32.mrb[5].mxu0  ;;  %v4282_v1 = vshll.u32 %v4256_v52, 16 }
 0x330   : > { %v4272_v22 = vshrl.u32 %v4255_v12, 16  ;;  %v4195_v25 = vadd.f32 %v11421_v58, %v4041_v37  ;;  %v9139_v26 = vpop.f32.mrb[6].mxu0  ;;  %v4275_v60 = vshll.u32 %v4255_v12, 16 }
 0x331   : > { %v4281_v17 = vrot.slane %v4279_v59, 7  ;;  %v4198_v36 = vadd.f32 %v9139_v26, %v11421_v58  ;;  %v4044_v28 = vpop.f32.mrb[7].mxu0  ;;  %v4229_v32 = vmax.f32 %v4197_v15, 0.0 }
 0x332   : > { %v4274_v34 = vrot.slane %v4272_v22, 7  ;;  %v4196_v21 = vadd.f32 %v11421_v58, %v4044_v28  ;;  %v4227_v4 = vmax.f32 %v4195_v25, 0.0 }
 0x333   : > { %v4284_v33 = vor.u32 %v4282_v1, %v4281_v17  ;;  %v4425_v10 = vsel %vm10438_vm3, %v4281_v17, %v4424_v0  ;;  %v4230_v43 = vmax.f32 %v4198_v36, 0.0 }
 0x334   : > { %4426 = vst [vmem:[#allocation3 + $0x28] sm:$0x1] %v4425_v10  ;;  %v4277_v19 = vor.u32 %v4275_v60, %v4274_v34  ;;  %v4419_v35 = vsel %vm10438_vm3, %v4274_v34, %v4418_v63  ;;  %v4228_v30 = vmax.f32 %v4196_v21, 0.0  ;;  %v4448_v21 = vld [vmem:[#allocation3 + $0x68] sm:$0x1] }
 0x335   : > { %v11437_v2 = vsel %vm10491_vm7, %v4284_v33, %v4421_v14  ;;  %4420 = vst [vmem:[#allocation3 + $0x18] sm:$0x1] %v4419_v35  ;;  %v4258_v55 = vpack.c.bf16 %v4230_v43, %v4229_v32 }
 0x336   : > { %4423 = vst [vmem:[#allocation3 + $0x20] sm:$0xff] %v11437_v2  ;;  %v11442_v23 = vsel %vm10491_vm7, %v4277_v19, %v4415_v56  ;;  %v4257_v49 = vpack.c.bf16 %v4228_v30, %v4227_v4  ;;  %v9142_v31 = vpop.f32.mrb[8].mxu0  ;;  %v4586_v62 = vshll.u32 %v11437_v2, 16  ;;  %v4584_v27 = vshrl.u32 %v11437_v2, 16  ;;  %v10211_v30 = vld [vmem:[#allocation4 + $0x8] sm:$0xff]  }
 0x337   : > { %4417 = vst [vmem:[#allocation3 + $0x10] sm:$0xff] %v11442_v23  ;;  %v4293_v38 = vshrl.u32 %v4258_v55, 16  ;;  %v4296_v39 = vshll.u32 %v4258_v55, 16  ;;  %v4201_v24 = vadd.f32 %v9142_v31, %v11421_v58  ;;  %v4057_v61 = vpop.f32.mrb[9].mxu0  ;;  %v4572_v46 = vshrl.u32 %v11442_v23, 16 }
 0x338   : > { %v4286_v53 = vshrl.u32 %v4257_v49, 16  ;;  %v4199_v7 = vadd.f32 %v11421_v58, %v4057_v61  ;;  %v9143_v41 = vpop.f32.mrb[10].mxu0  ;;  %v4574_v44 = vshll.u32 %v11442_v23, 16  ;;  %v4289_v54 = vshll.u32 %v4257_v49, 16  ;;  %v4442_v49 = vld [vmem:[#allocation3 + $0x58] sm:$0x1] }
 0x339   : > { %v4295_v13 = vrot.slane %v4293_v38, 7  ;;  %v4202_v18 = vadd.f32 %v9143_v41, %v11421_v58  ;;  %v4060_v29 = vpop.f32.mrb[11].mxu0  ;;  %v4588_v8 = vrot.slane %v4586_v62, 1  ;;  %v4233_v40 = vmax.f32 %v4201_v24, 0.0  ;;  %v4445_v24 = vld [vmem:[#allocation3 + $0x60] sm:$0xff] }
 0x33a   : > { %v4288_v57 = vrot.slane %v4286_v53, 7  ;;  %v4200_v48 = vadd.f32 %v11421_v58, %v4060_v29  ;;  %v4576_v9 = vrot.slane %v4574_v44, 1  ;;  %v4231_v16 = vmax.f32 %v4199_v7, 0.0 }
 0x33b   : > { %v4298_v6 = vor.u32 %v4296_v39, %v4295_v13  ;;  %v4437_v42 = vsel %vm10438_vm3, %v4295_v13, %v4436_v11  ;;  %v4234_v52 = vmax.f32 %v4202_v18, 0.0  ;;  %v11455_v12 = vld [vmem:[#allocation3 + $0x28] sm:$0x1]  ;;  %v4589_v0 = vor.u32 %v4588_v8, %v4584_v27 }
 0x33c   : > { %4438 = vst [vmem:[#allocation3 + $0x48] sm:$0x1] %v4437_v42  ;;  %v4291_v20 = vor.u32 %v4289_v54, %v4288_v57  ;;  %v4431_v59 = vsel %vm10438_vm3, %v4288_v57, %v4430_v51  ;;  %v4232_v15 = vmax.f32 %v4200_v48, 0.0  ;;  %v11459_v37 = vld [vmem:[#allocation3 + $0x18] sm:$0x1]  ;;  %v4577_v26 = vor.u32 %v4576_v9, %v4572_v46  ;;  %v4439_v46 = vld [vmem:[#allocation3 + $0x50] sm:$0xff] }
 0x33d   : > { %v11463_v22 = vsel %vm10491_vm7, %v4298_v6, %v4433_v50  ;;  %4432 = vst [vmem:[#allocation3 + $0x38] sm:$0x1] %v4431_v59  ;;  %v4260_v25 = vpack.c.bf16 %v4234_v52, %v4233_v40  ;;  %v4579_v17 = vshll.u32 %v11459_v37, 16  ;;  %v4591_v28 = vshll.u32 %v11455_v12, 16  ;;  %v10212_v57 = vld [vmem:[#allocation4 + $0x10] sm:$0xff]  }
 0x33e   : > { %4435 = vst [vmem:[#allocation3 + $0x40] sm:$0xff] %v11463_v22  ;;  %v11469_v1 = vsel %vm10491_vm7, %v4291_v20, %v4427_v45  ;;  %v4259_v63 = vpack.c.bf16 %v4232_v15, %v4231_v16  ;;  %v9146_v36 = vpop.f32.mrb[12].mxu0  ;;  %v4608_v14 = vshrl.u32 %v11463_v22, 16  ;;  %v4610_v9 = vshll.u32 %v11463_v22, 16  ;;  %v4460_v15 = vld [vmem:[#allocation3 + $0x88] sm:$0x1] }
 0x33f   : > { %4429 = vst [vmem:[#allocation3 + $0x30] sm:$0xff] %v11469_v1  ;;  %v4307_v34 = vshrl.u32 %v4260_v25, 16  ;;  %v4310_v60 = vshll.u32 %v4260_v25, 16  ;;  %v4205_v33 = vadd.f32 %v9146_v36, %v11421_v58  ;;  %v4073_v10 = vpop.f32.mrb[13].mxu0  ;;  %v4581_v56 = vrot.slane %v4579_v17, 1 }
 0x340   : > { %v4300_v32 = vshrl.u32 %v4259_v63, 16  ;;  %v4303_v43 = vshll.u32 %v4259_v63, 16  ;;  %v4203_v19 = vadd.f32 %v11421_v58, %v4073_v10  ;;  %v9147_v35 = vpop.f32.mrb[14].mxu0  ;;  %v4593_v4 = vrot.slane %v4591_v28, 1  ;;  %v4454_v36 = vld [vmem:[#allocation3 + $0x78] sm:$0x1] }
 0x341   : > { %v4309_v55 = vrot.slane %v4307_v34, 7  ;;  %v4237_v31 = vmax.f32 %v4205_v33, 0.0  ;;  %v4206_v62 = vadd.f32 %v9147_v35, %v11421_v58  ;;  %v4076_v38 = vpop.f32.mrb[15].mxu0  ;;  %v4582_v39 = vsel %vm884_vm4, %v4577_v26, %v4581_v56 }
 0x342   : > { %v4302_v61 = vrot.slane %v4300_v32, 7  ;;  %v4235_v27 = vmax.f32 %v4203_v19, 0.0  ;;  %v4204_v11 = vadd.f32 %v11421_v58, %v4076_v38  ;;  %9181 = vmatmul.mubr.bf16.vlgmr.msra.gmra.mrb[0].mxu1 %v4582_v39  ;;  %v4594_v53 = vsel %vm884_vm4, %v4589_v0, %v4593_v4  ;;  %v4457_v19 = vld [vmem:[#allocation3 + $0x80] sm:$0xff] }
 0x343   : > { %v4312_v7 = vor.u32 %v4310_v60, %v4309_v55  ;;  %v4449_v41 = vsel %vm10438_vm3, %v4309_v55, %v4448_v21  ;;  %v4238_v44 = vmax.f32 %v4206_v62, 0.0  ;;  %9184 = vmatprep.mubr.bf16.mxu1 %v4594_v53  ;;  %9213 = vmatpush3.bf16.msra.mxu1 %v11389_v3  ;;  %v4596_v13 = vshrl.u32 %v11469_v1, 16  ;;  %v11484_v54 = vld [vmem:[#allocation3 + $0x48] sm:$0x1]  ;;  %v4451_v62 = vld [vmem:[#allocation3 + $0x70] sm:$0xff] }
 0x344   : > { %4450 = vst [vmem:[#allocation3 + $0x68] sm:$0x1] %v4449_v41  ;;  %v4305_v51 = vor.u32 %v4303_v43, %v4302_v61  ;;  %v4443_v18 = vsel %vm10438_vm3, %v4302_v61, %v4442_v49  ;;  %v4236_v29 = vmax.f32 %v4204_v11, 0.0  ;;  %v11488_v8 = vld [vmem:[#allocation3 + $0x38] sm:$0x1]  ;;  %v4598_v50 = vshll.u32 %v11469_v1, 16  ;;  %9214 = vmatprep.subr.bf16.mxu1 %v10211_v30 }
 0x345   : > { %v11493_v40 = vsel %vm10491_vm7, %v4312_v7, %v4445_v24  ;;  %4444 = vst [vmem:[#allocation3 + $0x58] sm:$0x1] %v4443_v18  ;;  %v4262_v3 = vpack.c.bf16 %v4238_v44, %v4237_v31  ;;  %v4603_v48 = vshll.u32 %v11488_v8, 16  ;;  %v4615_v52 = vshll.u32 %v11484_v54, 16  ;;  %v10213_v43 = vld [vmem:[#allocation4 + $0x18] sm:$0xff]  }
 0x346   : > { %4447 = vst [vmem:[#allocation3 + $0x60] sm:$0xff] %v11493_v40  ;;  %v11500_v6 = vsel %vm10491_vm7, %v4305_v51, %v4439_v46  ;;  %v4261_v42 = vpack.c.bf16 %v4236_v29, %v4235_v27  ;;  %v9150_v45 = vpop.f32.mrb[16].mxu0  ;;  %v4600_v16 = vrot.slane %v4598_v50, 1  ;;  %v4612_v32 = vrot.slane %v4610_v9, 1 }
 0x347   : > { %4441 = vst [vmem:[#allocation3 + $0x50] sm:$0xff] %v11500_v6  ;;  %v4321_v20 = vshrl.u32 %v4262_v3, 16  ;;  %v4324_v59 = vshll.u32 %v4262_v3, 16  ;;  %v4209_v0 = vadd.f32 %v9150_v45, %v11421_v58  ;;  %v4089_v25 = vpop.f32.mrb[17].mxu0  ;;  %v4605_v26 = vrot.slane %v4603_v48, 1  ;;  %9215 = vmatpush3.bf16.msra.mxu1 %v10211_v30 }
 0x348   : > { %v4314_v17 = vshrl.u32 %v4261_v42, 16  ;;  %v4317_v63 = vshll.u32 %v4261_v42, 16  ;;  %v4207_v28 = vadd.f32 %v11421_v58, %v4089_v25  ;;  %v9151_v34 = vpop.f32.mrb[18].mxu0  ;;  %v4601_v60 = vor.u32 %v4600_v16, %v4596_v13  ;;  %9216 = vmatprep.subr.bf16.mxu1 %v10212_v57  ;;  %v4472_v45 = vld [vmem:[#allocation3 + $0xa8] sm:$0x1] }
 0x349   : > { %v4323_v21 = vrot.slane %v4321_v20, 7  ;;  %v4241_v33 = vmax.f32 %v4209_v0, 0.0  ;;  %v4210_v10 = vadd.f32 %v9151_v34, %v11421_v58  ;;  %v4092_v56 = vpop.f32.mrb[19].mxu0  ;;  %v4613_v39 = vor.u32 %v4612_v32, %v4608_v14  ;;  %v10214_v14 = vld [vmem:[#allocation4 + $0x20] sm:$0xff]  }
 0x34a   : > { %v4316_v35 = vrot.slane %v4314_v17, 7  ;;  %v4239_v4 = vmax.f32 %v4207_v28, 0.0  ;;  %v4208_v30 = vadd.f32 %v11421_v58, %v4092_v56  ;;  %v4606_v55 = vsel %vm884_vm4, %v4601_v60, %v4605_v26  ;;  %v4469_v0 = vld [vmem:[#allocation3 + $0xa0] sm:$0xff]  ;;  %v4466_v26 = vld [vmem:[#allocation3 + $0x98] sm:$0x1] }
 0x34b   : > { %v4326_v49 = vor.u32 %v4324_v59, %v4323_v21  ;;  %v4461_v31 = vsel %vm10438_vm3, %v4323_v21, %v4460_v15  ;;  %v4242_v38 = vmax.f32 %v4210_v10, 0.0  ;;  %9185 = vmatmul.mubr.bf16.gmra.mrb[4].mxu1 %v4606_v55  ;;  %v4617_v11 = vrot.slane %v4615_v52, 1  ;;  %v10215_v10 = vld [vmem:[#allocation4 + $0x28] sm:$0xff]  }
 0x34c   : > { %4462 = vst [vmem:[#allocation3 + $0x88] sm:$0x1] %v4461_v31  ;;  %v4319_v24 = vor.u32 %v4317_v63, %v4316_v35  ;;  %v4455_v61 = vsel %vm10438_vm3, %v4316_v35, %v4454_v36  ;;  %v4240_v27 = vmax.f32 %v4208_v30, 0.0  ;;  %v11515_v53 = vld [vmem:[#allocation3 + $0x58] sm:$0x1]  ;;  %9217 = vmatpush3.bf16.msra.mxu1 %v10212_v57  ;;  %v4622_v46 = vshll.u32 %v11500_v6, 16 }
 0x34d   : > { %v11519_v7 = vsel %vm10491_vm7, %v4326_v49, %v4457_v19  ;;  %4456 = vst [vmem:[#allocation3 + $0x78] sm:$0x1] %v4455_v61  ;;  %v4264_v41 = vpack.c.bf16 %v4242_v38, %v4241_v33  ;;  %9218 = vmatprep.subr.bf16.mxu1 %v10213_v43  ;;  %v4618_v18 = vsel %vm884_vm4, %v4613_v39, %v4617_v11  ;;  %v4627_v29 = vshll.u32 %v11515_v53, 16  ;;  %v11535_v33 = vld [vmem:[#allocation3 + $0x68] sm:$0x1] }
 0x34e   : > { %4459 = vst [vmem:[#allocation3 + $0x80] sm:$0xff] %v11519_v7  ;;  %v11525_v44 = vsel %vm10491_vm7, %v4319_v24, %v4451_v62  ;;  %v4263_v13 = vpack.c.bf16 %v4240_v27, %v4239_v4  ;;  %v9154_v51 = vpop.f32.mrb[20].mxu0  ;;  %9188 = vmatprep.mubr.bf16.mxu1 %v4618_v18  ;;  %v4620_v48 = vshrl.u32 %v11500_v6, 16  ;;  %v4624_v9 = vrot.slane %v4622_v46, 1  ;;  %v10216_v46 = vld [vmem:[#allocation4 + $0x30] sm:$0xff]  }
 0x34f   : > { %4453 = vst [vmem:[#allocation3 + $0x70] sm:$0xff] %v11525_v44  ;;  %v4335_v50 = vshrl.u32 %v4264_v41, 16  ;;  %v4213_v57 = vadd.f32 %v9154_v51, %v11421_v58  ;;  %v4105_v3 = vpop.f32.mrb[21].mxu0  ;;  %v4338_v42 = vshll.u32 %v4264_v41, 16  ;;  %v4629_v59 = vrot.slane %v4627_v29, 1 }
 0x350   : > { %v4328_v16 = vshrl.u32 %v4263_v13, 16  ;;  %v4211_v52 = vadd.f32 %v11421_v58, %v4105_v3  ;;  %v9155_v20 = vpop.f32.mrb[22].mxu0  ;;  %9219 = vmatpush3.bf16.msra.mxu1 %v10213_v43  ;;  %v4331_v25 = vshll.u32 %v4263_v13, 16  ;;  %v4625_v36 = vor.u32 %v4624_v9, %v4620_v48  ;;  %v4463_v43 = vld [vmem:[#allocation3 + $0x90] sm:$0xff]  ;;  %v4484_v51 = vld [vmem:[#allocation3 + $0xc8] sm:$0x1] }
 0x351   : > { %v4337_v15 = vrot.slane %v4335_v50, 7  ;;  %v4214_v17 = vadd.f32 %v9155_v20, %v11421_v58  ;;  %v4108_v63 = vpop.f32.mrb[23].mxu0  ;;  %9220 = vmatprep.subr.bf16.mxu1 %v10214_v14  ;;  %v4245_v34 = vmax.f32 %v4213_v57, 0.0  ;;  %v4634_v49 = vshll.u32 %v11493_v40, 16  ;;  %v4478_v48 = vld [vmem:[#allocation3 + $0xb8] sm:$0x1] }
 0x352   : > { %v4330_v28 = vrot.slane %v4328_v16, 7  ;;  %v4243_v60 = vmax.f32 %v4211_v52, 0.0  ;;  %v4212_v21 = vadd.f32 %v11421_v58, %v4108_v63  ;;  %v4630_v35 = vsel %vm884_vm4, %v4625_v36, %v4629_v59 }
 0x353   : > { %v4340_v56 = vor.u32 %v4338_v42, %v4337_v15  ;;  %v4473_v32 = vsel %vm10438_vm3, %v4337_v15, %v4472_v45  ;;  %v4246_v19 = vmax.f32 %v4214_v17, 0.0  ;;  %9189 = vmatmul.mubr.bf16.gmra.mrb[8].mxu1 %v4630_v35  ;;  %v4632_v38 = vshrl.u32 %v11493_v40, 16 }
 0x354   : > { %4474 = vst [vmem:[#allocation3 + $0xa8] sm:$0x1] %v4473_v32  ;;  %v4333_v4 = vor.u32 %v4331_v25, %v4330_v28  ;;  %v4467_v30 = vsel %vm10438_vm3, %v4330_v28, %v4466_v26  ;;  %v4244_v55 = vmax.f32 %v4212_v21, 0.0  ;;  %v4639_v39 = vshll.u32 %v11535_v33, 16  ;;  %9221 = vmatpush3.bf16.msra.mxu1 %v10214_v14  ;;  %v11560_v15 = vld [vmem:[#allocation3 + $0x78] sm:$0x1] }
 0x355   : > { %v11545_v31 = vsel %vm10491_vm7, %v4340_v56, %v4469_v0  ;;  %4468 = vst [vmem:[#allocation3 + $0x98] sm:$0x1] %v4467_v30  ;;  %v4266_v62 = vpack.c.bf16 %v4246_v19, %v4245_v34  ;;  %v4636_v11 = vrot.slane %v4634_v49, 1  ;;  %v4646_v41 = vshll.u32 %v11525_v44, 16  ;;  %9222 = vmatprep.subr.bf16.mxu1 %v10215_v10  ;;  %v4481_v25 = vld [vmem:[#allocation3 + $0xc0] sm:$0xff]  ;;  %v10217_v28 = vld [vmem:[#allocation4 + $0x38] sm:$0xff]  }
 0x356   : > { %4471 = vst [vmem:[#allocation3 + $0xa0] sm:$0xff] %v11545_v31  ;;  %v11552_v24 = vsel %vm10491_vm7, %v4333_v4, %v4463_v43  ;;  %v4265_v61 = vpack.c.bf16 %v4244_v55, %v4243_v60  ;;  %v9158_v27 = vpop.f32.mrb[24].mxu0  ;;  %v4641_v29 = vrot.slane %v4639_v39, 1  ;;  %v4644_v50 = vshrl.u32 %v11525_v44, 16  ;;  %v4475_v21 = vld [vmem:[#allocation3 + $0xb0] sm:$0xff] }
 0x357   : > { %4465 = vst [vmem:[#allocation3 + $0x90] sm:$0xff] %v11552_v24  ;;  %v4349_v13 = vshrl.u32 %v4266_v62, 16  ;;  %v4217_v18 = vadd.f32 %v9158_v27, %v11421_v58  ;;  %v4121_v14 = vpop.f32.mrb[25].mxu0  ;;  %v4352_v57 = vshll.u32 %v4266_v62, 16  ;;  %v4637_v42 = vor.u32 %v4636_v11, %v4632_v38  ;;  %v11566_v43 = vld [vmem:[#allocation3 + $0x88] sm:$0x1] }
 0x358   : > { %v4342_v3 = vshrl.u32 %v4265_v61, 16  ;;  %v4215_v9 = vadd.f32 %v11421_v58, %v4121_v14  ;;  %v9159_v45 = vpop.f32.mrb[26].mxu0  ;;  %v4345_v52 = vshll.u32 %v4265_v61, 16  ;;  %v4648_v0 = vrot.slane %v4646_v41, 1  ;;  %9223 = vmatpush3.bf16.msra.mxu1 %v10215_v10  ;;  %v11585_v14 = vld [vmem:[#allocation4 + $0x80] sm:$0xff]  }
 0x359   : > { %v4351_v16 = vrot.slane %v4349_v13, 7  ;;  %v4218_v20 = vadd.f32 %v9159_v45, %v11421_v58  ;;  %v4124_v59 = vpop.f32.mrb[27].mxu0  ;;  %v4249_v17 = vmax.f32 %v4217_v18, 0.0  ;;  %v4642_v63 = vsel %vm884_vm4, %v4637_v42, %v4641_v29  ;;  %9224 = vmatprep.subr.bf16.mxu1 %v10216_v46 }
 0x35a   : > { %v4344_v26 = vrot.slane %v4342_v3, 7  ;;  %v4216_v36 = vadd.f32 %v11421_v58, %v4124_v59  ;;  %v4247_v56 = vmax.f32 %v4215_v9, 0.0  ;;  %9192 = vmatprep.mubr.bf16.mxu1 %v4642_v63  ;;  %v4651_v4 = vshll.u32 %v11560_v15, 16 }
 0x35b   : > { %v4354_v34 = vor.u32 %v4352_v57, %v4351_v16  ;;  %v4485_v60 = vsel %vm10438_vm3, %v4351_v16, %v4484_v51  ;;  %v4250_v32 = vmax.f32 %v4218_v20, 0.0  ;;  %v4649_v49 = vor.u32 %v4648_v0, %v4644_v50  ;;  %v4496_v50 = vld [vmem:[#allocation3 + $0xe8] sm:$0x1]  ;;  %v4490_v16 = vld [vmem:[#allocation3 + $0xd8] sm:$0x1]  ;;  %v4493_v0 = vld [vmem:[#allocation3 + $0xe0] sm:$0xff] }
 0x35c   : > { %4486 = vst [vmem:[#allocation3 + $0xc8] sm:$0x1] %v4485_v60  ;;  %v4347_v10 = vor.u32 %v4345_v52, %v4344_v26  ;;  %v4479_v19 = vsel %vm10438_vm3, %v4344_v26, %v4478_v48  ;;  %v4248_v35 = vmax.f32 %v4216_v36, 0.0  ;;  %v4658_v62 = vshll.u32 %v11519_v7, 16  ;;  %9225 = vmatpush3.bf16.msra.mxu1 %v10216_v46  ;;  %v11591_v36 = vld [vmem:[#allocation3 + $0x98] sm:$0x1] }
 0x35d   : > { %v11573_v30 = vsel %vm10491_vm7, %v4354_v34, %v4481_v25  ;;  %4480 = vst [vmem:[#allocation3 + $0xb8] sm:$0x1] %v4479_v19  ;;  %v4268_v55 = vpack.c.bf16 %v4250_v32, %v4249_v17  ;;  %v4653_v27 = vrot.slane %v4651_v4, 1  ;;  %v4663_v11 = vshll.u32 %v11566_v43, 16  ;;  %9226 = vmatprep.subr.bf16.mxu1 %v10217_v28  ;;  %v11599_v4 = vld [vmem:[#allocation3 + $0xa8] sm:$0x1] }
 0x35e   : > { %4483 = vst [vmem:[#allocation3 + $0xc0] sm:$0xff] %v11573_v30  ;;  %v11579_v38 = vsel %vm10491_vm7, %v4347_v10, %v4475_v21  ;;  %v4267_v39 = vpack.c.bf16 %v4248_v35, %v4247_v56  ;;  %v9162_v61 = vpop.f32.mrb[28].mxu0  ;;  %v4656_v46 = vshrl.u32 %v11519_v7, 16  ;;  %v4660_v18 = vrot.slane %v4658_v62, 1  ;;  %v4487_v21 = vld [vmem:[#allocation3 + $0xd0] sm:$0xff] }
 0x35f   : > { %4477 = vst [vmem:[#allocation3 + $0xb0] sm:$0xff] %v11579_v38  ;;  %v4363_v41 = vshrl.u32 %v4268_v55, 16  ;;  %v4221_v13 = vadd.f32 %v9162_v61, %v11421_v58  ;;  %v4137_v51 = vpop.f32.mrb[29].mxu0  ;;  %v4366_v29 = vshll.u32 %v4268_v55, 16  ;;  %v4654_v3 = vsel %vm884_vm4, %v4649_v49, %v4653_v27 }
 0x360   : > { %v4356_v57 = vshrl.u32 %v4267_v39, 16  ;;  %v4219_v48 = vadd.f32 %v11421_v58, %v4137_v51  ;;  %v9163_v9 = vpop.f32.mrb[30].mxu0  ;;  %v4359_v45 = vshll.u32 %v4267_v39, 16  ;;  %9193 = vmatmul.mubr.bf16.gmra.mrb[12].mxu1 %v4654_v3  ;;  %v4661_v52 = vor.u32 %v4660_v18, %v4656_v46 }
 0x361   : > { %v4365_v42 = vrot.slane %v4363_v41, 7  ;;  %v4665_v20 = vrot.slane %v4663_v11, 1  ;;  %v4140_v59 = vpop.f32.mrb[31].mxu0  ;;  %v4253_v26 = vmax.f32 %v4221_v13, 0.0  ;;  %v4222_v17 = vadd.f32 %v9163_v9, %v11421_v58  ;;  %9227 = vmatpush3.bf16.msra.mxu1 %v10217_v28 }
 0x362   : > { %v4358_v25 = vrot.slane %v4356_v57, 7  ;;  %v4220_v63 = vadd.f32 %v11421_v58, %v4140_v59  ;;  %v4251_v56 = vmax.f32 %v4219_v48, 0.0  ;;  %9260 = vmatprep.subr.bf16.mxu1 %v11585_v14  ;;  %v4670_v55 = vshll.u32 %v11552_v24, 16  ;;  %v4502_v48 = vld [vmem:[#allocation3 + $0xf8] sm:$0x1] }
 0x363   : > { %v4368_v34 = vor.u32 %v4366_v29, %v4365_v42  ;;  %v4497_v60 = vsel %vm10438_vm3, %v4365_v42, %v4496_v50  ;;  %v4666_v32 = vsel %vm884_vm4, %v4661_v52, %v4665_v20  ;;  %v4254_v58 = vmax.f32 %v4222_v17, 0.0  ;;  %v4508_v50 = vld [vmem:[#allocation3 + $0x108] sm:$0x1] }
 0x364   : > { %4498 = vst [vmem:[#allocation3 + $0xe8] sm:$0x1] %v4497_v60  ;;  %v4361_v10 = vor.u32 %v4359_v45, %v4358_v25  ;;  %v4491_v19 = vsel %vm10438_vm3, %v4358_v25, %v4490_v16  ;;  %9196 = vmatprep.mubr.bf16.mxu1 %v4666_v32  ;;  %v4252_v35 = vmax.f32 %v4220_v63, 0.0  ;;  %v4675_v49 = vshll.u32 %v11591_v36, 16  ;;  %v11616_v46 = vld [vmem:[#allocation3 + $0xb8] sm:$0x1] }
 0x365   : > { %v11603_v28 = vsel %vm10491_vm7, %v4368_v34, %v4493_v0  ;;  %4492 = vst [vmem:[#allocation3 + $0xd8] sm:$0x1] %v4491_v19  ;;  %v4270_v39 = vpack.c.bf16 %v4254_v58, %v4253_v26  ;;  %v4682_v27 = vshll.u32 %v11545_v31, 16  ;;  %v4668_v11 = vshrl.u32 %v11552_v24, 16  ;;  %v4505_v25 = vld [vmem:[#allocation3 + $0x100] sm:$0xff]  ;;  %v4499_v26 = vld [vmem:[#allocation3 + $0xf0] sm:$0xff] }
 0x366   : > { %4495 = vst [vmem:[#allocation3 + $0xe0] sm:$0xff] %v11603_v28  ;;  %v11610_v62 = vsel %vm10491_vm7, %v4361_v10, %v4487_v21  ;;  %v4269_v61 = vpack.c.bf16 %v4252_v35, %v4251_v56  ;;  %v4672_v41 = vrot.slane %v4670_v55, 1  ;;  %v4677_v13 = vrot.slane %v4675_v49, 1  ;;  %v11622_v60 = vld [vmem:[#allocation3 + $0xc8] sm:$0x1] }
 0x367   : > { %4489 = vst [vmem:[#allocation3 + $0xd0] sm:$0xff] %v11610_v62  ;;  %v4687_v51 = vshll.u32 %v11599_v4, 16  ;;  %v4377_v18 = vshrl.u32 %v4270_v39, 16  ;;  %v4380_v29 = vshll.u32 %v4270_v39, 16  ;;  %v4680_v3 = vshrl.u32 %v11545_v31, 16 }
 0x368   : > { %v4370_v57 = vshrl.u32 %v4269_v61, 16  ;;  %v4673_v9 = vor.u32 %v4672_v41, %v4668_v11  ;;  %v4684_v42 = vrot.slane %v4682_v27, 1  ;;  %v4694_v16 = vshll.u32 %v11579_v38, 16 }
 0x369   : > { %v4689_v45 = vrot.slane %v4687_v51, 1  ;;  %v4379_v52 = vrot.slane %v4377_v18, 7  ;;  %v4373_v59 = vshll.u32 %v4269_v61, 16  ;;  %v4699_v0 = vshll.u32 %v11616_v46, 16 }
 0x36a   : > { %v4372_v20 = vrot.slane %v4370_v57, 7  ;;  %v4678_v17 = vsel %vm884_vm4, %v4673_v9, %v4677_v13  ;;  %v4685_v63 = vor.u32 %v4684_v42, %v4680_v3  ;;  %v4696_v34 = vrot.slane %v4694_v16, 1 }
 0x36b   : > { %v4706_v21 = vshll.u32 %v11573_v30, 16  ;;  %v4382_v56 = vor.u32 %v4380_v29, %v4379_v52  ;;  %v4509_v32 = vsel %vm10438_vm3, %v4379_v52, %v4508_v50  ;;  %9197 = vmatmul.mubr.bf16.gmra.mrb[16].mxu1 %v4678_v17  ;;  %v4692_v35 = vshrl.u32 %v11579_v38, 16  ;;  %v11648_v29 = vld [vmem:[#allocation3 + $0xe8] sm:$0x1] }
 0x36c   : > { %v4375_v10 = vor.u32 %v4373_v59, %v4372_v20  ;;  %v4503_v19 = vsel %vm10438_vm3, %v4372_v20, %v4502_v48  ;;  %4510 = vst [vmem:[#allocation3 + $0x108] sm:$0x1] %v4509_v32  ;;  %v4690_v58 = vsel %vm884_vm4, %v4685_v63, %v4689_v45  ;;  %v4701_v55 = vrot.slane %v4699_v0, 1  ;;  %v11640_v27 = vld [vmem:[#allocation3 + $0xd8] sm:$0x1] }
 0x36d   : > { %4504 = vst [vmem:[#allocation3 + $0xf8] sm:$0x1] %v4503_v19  ;;  %v11633_v49 = vsel %vm10491_vm7, %v4382_v56, %v4505_v25  ;;  %9200 = vmatprep.mubr.bf16.mxu1 %v4690_v58  ;;  %v4708_v61 = vrot.slane %v4706_v21, 1  ;;  %v4711_v5 = vshll.u32 %v11622_v60, 16  ;;  %v4697_v11 = vor.u32 %v4696_v34, %v4692_v35  ;;  %v10293_v58 = vld [vmem:[#allocation2] sm:$0xff]  ;;  %v10219_v35 = vld [vmem:[#allocation4 + $0x88] sm:$0xff]  }
 0x36e   : > { %v11637_v39 = vsel %vm10491_vm7, %v4375_v10, %v4499_v26  ;;  %4507 = vst [vmem:[#allocation3 + $0x100] sm:$0xff] %v11633_v49  ;;  %v4718_v41 = vshll.u32 %v11610_v62, 16  ;;  %v4704_v13 = vshrl.u32 %v11573_v30, 16  ;;  %v4723_v18 = vshll.u32 %v11640_v27, 16 }
 0x36f   : > { %4501 = vst [vmem:[#allocation3 + $0xf0] sm:$0xff] %v11637_v39  ;;  %v4713_v51 = vrot.slane %v4711_v5, 1  ;;  %v4702_v47 = vsel %vm884_vm4, %v4697_v11, %v4701_v55  ;;  %v4730_v57 = vshll.u32 %v11603_v28, 16  ;;  %v4735_v9 = vshll.u32 %v11648_v29, 16  ;;  %v10220_v55 = vld [vmem:[#allocation4 + $0x90] sm:$0xff]   ;;  %v10222_v5 = vld [vmem:[#allocation4 + $0xa0] sm:$0xff]  }
 0x370   : > { %v4709_v50 = vor.u32 %v4708_v61, %v4704_v13  ;;  %v4720_v3 = vrot.slane %v4718_v41, 1  ;;  %v4716_v42 = vshrl.u32 %v11610_v62, 16  ;;  %v4725_v45 = vrot.slane %v4723_v18, 1  ;;  %v10221_v61 = vld [vmem:[#allocation4 + $0x98] sm:$0xff]   ;;  %v10223_v11 = vld [vmem:[#allocation4 + $0xa8] sm:$0xff]  }
 0x371   : > { %v4732_v16 = vrot.slane %v4730_v57, 1  ;;  %v4742_v59 = vshll.u32 %v11637_v39, 16  ;;  %v4728_v0 = vshrl.u32 %v11603_v28, 16  ;;  %v4737_v25 = vrot.slane %v4735_v9, 1  ;;  %v5205_v57 = vld [vmem:[#allocation3 + $0x30] sm:$0xfe] }
 0x372   : > { %v4714_v48 = vsel %vm884_vm4, %v4709_v50, %v4713_v51  ;;  %v4721_v20 = vor.u32 %v4720_v3, %v4716_v42  ;;  %v4740_v56 = vshrl.u32 %v11637_v39, 16  ;;  %v5254_v13 = vrot.slane %v11459_v37, 1  ;;  %v5206_v3 = vld [vmem:[#allocation3 + $0x40] sm:$0xfe] }
 0x373   : > { %9201 = vmatmul.mubr.bf16.gmra.mrb[20].mxu1 %v4702_v47  ;;  %v4733_v63 = vor.u32 %v4732_v16, %v4728_v0  ;;  %v4744_v34 = vrot.slane %v4742_v59, 1  ;;  %v5257_v51 = vrot.slane %v11455_v12, 1  ;;  %v10227_v47 = vld [vmem:[#allocation4 + $0xc8] sm:$0xff]   ;;  %v5259_v9 = vrot.slane %v5205_v57, 1  ;;  %v10229_v12 = vld [vmem:[#allocation4 + $0xd8] sm:$0xff]  }
 0x374   : > { %9204 = vmatprep.mubr.bf16.mxu1 %v4714_v48  ;;  %v11654_v52 = vld [vmem:[#allocation3 + $0xf8] sm:$0x1]  ;;  %v4726_v26 = vsel %vm884_vm4, %v4721_v20, %v4725_v45  ;;  %v10228_v48 = vld [vmem:[#allocation4 + $0xd0] sm:$0xff]   ;;  %v5262_v42 = vrot.slane %v5206_v3, 1  ;;  %v5260_v45 = vrot.slane %v11488_v8, 1  ;;  %v5263_v37 = vrot.slane %v11484_v54, 1 }
 0x375   : > { %v4747_v17 = vshll.u32 %v11654_v52, 16  ;;  %v4738_v21 = vsel %vm884_vm4, %v4733_v63, %v4737_v25  ;;  %v4745_v10 = vor.u32 %v4744_v34, %v4740_v56  ;;  %v5207_v59 = vld [vmem:[#allocation3 + $0x50] sm:$0xfe]  ;;  %v5208_v0 = vld [vmem:[#allocation3 + $0x60] sm:$0xfe]  ;;  %v5266_v8 = vrot.slane %v11515_v53, 1 }
 0x376   : > { %v5261_v16 = vsel %vm1576_vm8, %v5259_v9, %v5260_v45  ;;  %v5264_v20 = vsel %vm1576_vm8, %v5262_v42, %v5263_v37  ;;  %v10230_v25 = vld [vmem:[#allocation4 + $0xe0] sm:$0xff]   ;;  %v5269_v54 = vrot.slane %v11535_v33, 1  ;;  %v10231_v63 = vld [vmem:[#allocation4 + $0xe8] sm:$0xff]   ;;  %v5209_v56 = vld [vmem:[#allocation3 + $0x70] sm:$0xfe]  ;;  %v5272_v53 = vrot.slane %v11560_v15, 1 }
 0x377   : > { %v4749_v32 = vrot.slane %v4747_v17, 1  ;;  %v5268_v17 = vrot.slane %v5208_v0, 1  ;;  %v5275_v33 = vrot.slane %v11566_v43, 1  ;;  %v5278_v15 = vrot.slane %v11591_v36, 1  ;;  %v5572_v42 = vld [vmem:[#allocation3 + $0x10] sm:$0xff]  ;;  %v10235_v45 = vld [vmem:[#allocation4 + $0x108] sm:$0xff]  }
 0x378   : > { %v5281_v43 = vrot.slane %v11599_v4, 1  ;;  %v11710_v37 = vld [vmem:[#allocation3 + $0x20] sm:$0xff] }
 0x379   : > { %v4750_v19 = vsel %vm884_vm4, %v4745_v10, %v4749_v32  ;;  %v5210_v32 = vld [vmem:[#allocation3 + $0x80] sm:$0xfe]  ;;  %v10232_v10 = vld [vmem:[#allocation4 + $0xf0] sm:$0xff]  }
 0x37a   : > { %v11722_v0 = vld [vmem:[#allocation3 + $0x60] sm:$0xff] }
 0x37b   : > { %9205 = vmatmul.mubr.bf16.gmra.mrb[24].mxu1 %v4726_v26  ;;  %v5265_v26 = vrot.slane %v5207_v59, 1  ;;  %v10239_v59 = vld [vmem:[#allocation4 + $0x128] sm:$0xff]  }
 0x37c   : > { %9208 = vmatprep.mubr.bf16.mxu1 %v4738_v21  ;;  %v5270_v21 = vsel %vm1576_vm8, %v5268_v17, %v5269_v54  ;;  %v10241_v17 = vld [vmem:[#allocation4 + $0x138] sm:$0xff]   ;;  %v11731_v54 = vld [vmem:[#allocation3 + $0x90] sm:$0xff] }
 0x37d   : > { %v5267_v34 = vsel %vm1576_vm8, %v5265_v26, %v5266_v8  ;;  %v10240_v26 = vld [vmem:[#allocation4 + $0x130] sm:$0xff]   ;;  %v11728_v8 = vld [vmem:[#allocation3 + $0x80] sm:$0xff] }
 0x383   : > { %9209 = vmatmul.mubr.bf16.gmra.mrb[28].mxu1 %v4750_v19  ;;  %v5271_v19 = vrot.slane %v5209_v56, 1  ;;  %v11740_v56 = vld [vmem:[#allocation3 + $0x18] sm:$0x1] }
 0x384   : > { %9228 = vmatprep.mubr.bf16.mxu1 %v10293_v58  ;;  %v5274_v58 = vrot.slane %v5210_v32, 1 }
 0x38b   : > { %9229 = vmatmul.mubr.bf16.vlgmr.msra.gmra.mrb[0].mxu1 %v11442_v23  ;;  %v10225_v23 = vld [vmem:[#allocation4 + $0xb8] sm:$0xff]  }
 0x38c   : > { %9232 = vmatprep.mubr.bf16.mxu1 %v11437_v2  ;;  %9261 = vmatpush3.bf16.msra.mxu1 %v11585_v14  ;;  %v10224_v2 = vld [vmem:[#allocation4 + $0xb0] sm:$0xff]  }
 0x38d   : > { %9262 = vmatprep.subr.bf16.mxu1 %v10219_v35  ;;  %v5203_v14 = vld [vmem:[#allocation3 + $0x10] sm:$0xfe] }
 0x390   : > { %9263 = vmatpush3.bf16.msra.mxu1 %v10219_v35  ;;  %v10233_v35 = vld [vmem:[#allocation4 + $0xf8] sm:$0xff]  }
 0x391   : > { %9264 = vmatprep.subr.bf16.mxu1 %v10220_v55 }
 0x393   : > { %9233 = vmatmul.mubr.bf16.gmra.mrb[4].mxu1 %v11469_v1  ;;  %v5202_v1 = vld [vmem:[#allocation3] sm:$0xfe] }
 0x394   : > { %9236 = vmatprep.mubr.bf16.mxu1 %v11463_v22  ;;  %9265 = vmatpush3.bf16.msra.mxu1 %v10220_v55  ;;  %v10226_v22 = vld [vmem:[#allocation4 + $0xc0] sm:$0xff]   ;;  %v5273_v55 = vsel %vm1576_vm8, %v5271_v19, %v5272_v53  ;;  %v5886_v19 = vshll.u32 %v11740_v56, 16 }
 0x395   : > { %9266 = vmatprep.subr.bf16.mxu1 %v10221_v61 }
 0x398   : > { %9267 = vmatpush3.bf16.msra.mxu1 %v10221_v61  ;;  %v5276_v61 = vsel %vm1576_vm8, %v5274_v58, %v5275_v33  ;;  %v5893_v58 = vshll.u32 %v11710_v37, 16  ;;  %v5888_v33 = vrot.slane %v5886_v19, 1 }
 0x399   : > { %9268 = vmatprep.subr.bf16.mxu1 %v10222_v5 }
 0x39b   : > { %9237 = vmatmul.mubr.bf16.gmra.mrb[8].mxu1 %v11500_v6  ;;  %v10294_v6 = vld [vmem:[#allocation3 + $0x8] sm:$0x1] }
 0x39c   : > { %9240 = vmatprep.mubr.bf16.mxu1 %v11493_v40  ;;  %9269 = vmatpush3.bf16.msra.mxu1 %v10222_v5  ;;  %v5250_v40 = vrot.slane %v5202_v1, 1  ;;  %v5211_v5 = vld [vmem:[#allocation3 + $0x90] sm:$0xfe] }
 0x39d   : > { %9270 = vmatprep.subr.bf16.mxu1 %v10223_v11 }
 0x3a0   : > { %9271 = vmatpush3.bf16.msra.mxu1 %v10223_v11  ;;  %v5212_v11 = vld [vmem:[#allocation3 + $0xa0] sm:$0xfe] }
 0x3a1   : > { %9272 = vmatprep.subr.bf16.mxu1 %v10224_v2 }
 0x3a3   : > { %9241 = vmatmul.mubr.bf16.gmra.mrb[12].mxu1 %v11525_v44 }
 0x3a4   : > { %9244 = vmatprep.mubr.bf16.mxu1 %v11519_v7  ;;  %9273 = vmatpush3.bf16.msra.mxu1 %v10224_v2  ;;  %v5251_v7 = vrot.slane %v10294_v6, 1  ;;  %v10234_v2 = vld [vmem:[#allocation4 + $0x100] sm:$0xff]   ;;  %v5213_v6 = vld [vmem:[#allocation3 + $0xb0] sm:$0xfe] }
 0x3a5   : > { %9274 = vmatprep.subr.bf16.mxu1 %v10225_v23 }
 0x3a6   : > { %v5252_v44 = vsel %vm1576_vm8, %v5250_v40, %v5251_v7  ;;  %v5214_v7 = vld [vmem:[#allocation3 + $0xc0] sm:$0xfe] }
 0x3a8   : > { %9275 = vmatpush3.bf16.msra.mxu1 %v10225_v23  ;;  %v5277_v23 = vrot.slane %v5211_v5, 1 }
 0x3a9   : > { %9308 = vmatprep.subr.bf16.mxu1 %v10226_v22 }
 0x3aa   : > { %v5279_v1 = vsel %vm1576_vm8, %v5277_v23, %v5278_v15 }
 0x3ab   : > { %9245 = vmatmul.mubr.bf16.gmra.mrb[16].mxu1 %v11552_v24  ;;  %v5204_v24 = vld [vmem:[#allocation3 + $0x20] sm:$0xfe] }
 0x3ac   : > { %9248 = vmatprep.mubr.bf16.mxu1 %v11545_v31  ;;  %v5253_v31 = vrot.slane %v5203_v14, 1  ;;  %v5256_v41 = vrot.slane %v5204_v24, 1  ;;  %v5286_v14 = vrot.slane %v5214_v7, 1  ;;  %v5284_v24 = vrot.slane %v11616_v46, 1 }
 0x3ae   : > { %v5255_v18 = vsel %vm1576_vm8, %v5253_v31, %v5254_v13  ;;  %v5258_v50 = vsel %vm1576_vm8, %v5256_v41, %v5257_v51  ;;  %v5287_v31 = vrot.slane %v11622_v60, 1  ;;  %v5215_v41 = vld [vmem:[#allocation3 + $0xd0] sm:$0xfe]  ;;  %v5216_v13 = vld [vmem:[#allocation3 + $0xe0] sm:$0xfe] }
 0x3af   : > { %v5289_v51 = vrot.slane %v5215_v41, 1  ;;  %v5217_v60 = vld [vmem:[#allocation3 + $0xf0] sm:$0xfe] }
 0x3b0   : > { %v5288_v4 = vsel %vm1576_vm8, %v5286_v14, %v5287_v31  ;;  %v5295_v3 = vrot.slane %v5217_v60, 1  ;;  %v11781_v60 = vld [vmem:[#allocation3 + $0x68] sm:$0x1] }
 0x3b3   : > { %9249 = vmatmul.mubr.bf16.gmra.mrb[20].mxu1 %v11579_v38 }
 0x3b4   : > { %9252 = vmatprep.mubr.bf16.mxu1 %v11573_v30 }
 0x3bb   : > { %9253 = vmatmul.mubr.bf16.gmra.mrb[24].mxu1 %v11610_v62 }
 0x3bc   : > { %9256 = vmatprep.mubr.bf16.mxu1 %v11603_v28 }
 0x3c3   : > { %9257 = vmatmul.mubr.bf16.gmra.mrb[28].mxu1 %v11637_v39 }
 0x3c4   : > { %9276 = vmatprep.mubr.bf16.mxu1 %v5252_v44  ;;  %v5283_v44 = vrot.slane %v5213_v6, 1 }
 0x3c6   : > { %v5285_v36 = vsel %vm1576_vm8, %v5283_v44, %v5284_v24  ;;  %v11767_v44 = vld [vmem:[#allocation3 + $0x58] sm:$0x1] }
 0x3c7   : > { %v5934_v41 = vshll.u32 %v11767_v44, 16 }
 0x3cb   : > { %9277 = vmatmul.mubr.bf16.vlgmr.msra.gmra.mrb[0].mxu1 %v5255_v18  ;;  %v5290_v18 = vrot.slane %v11640_v27, 1  ;;  %v11713_v27 = vld [vmem:[#allocation3 + $0x30] sm:$0xff] }
 0x3cc   : > { %9280 = vmatprep.mubr.bf16.mxu1 %v5258_v50  ;;  %9309 = vmatpush3.bf16.msra.mxu1 %v10226_v22  ;;  %v5280_v22 = vrot.slane %v5212_v11, 1  ;;  %v5293_v50 = vrot.slane %v11648_v29, 1  ;;  %v10236_v29 = vld [vmem:[#allocation4 + $0x110] sm:$0xff]   ;;  %v5903_v5 = vshrl.u32 %v11713_v27, 16 }
 0x3cd   : > { %9310 = vmatprep.subr.bf16.mxu1 %v10227_v47  ;;  %v5291_v57 = vsel %vm1576_vm8, %v5289_v51, %v5290_v18 }
 0x3ce   : > { %v5282_v40 = vsel %vm1576_vm8, %v5280_v22, %v5281_v43 }
 0x3d0   : > { %9311 = vmatpush3.bf16.msra.mxu1 %v10227_v47  ;;  %v5292_v47 = vrot.slane %v5216_v13, 1  ;;  %v10244_v13 = vld [vmem:[#allocation4 + $0x150] sm:$0xff]  }
 0x3d1   : > { %9312 = vmatprep.subr.bf16.mxu1 %v10228_v48 }
 0x3d2   : > { %v5294_v46 = vsel %vm1576_vm8, %v5292_v47, %v5293_v50  ;;  %v5941_v47 = vshll.u32 %v11722_v0, 16 }
 0x3d3   : > { %9281 = vmatmul.mubr.bf16.gmra.mrb[4].mxu1 %v5261_v16  ;;  %v11719_v16 = vld [vmem:[#allocation3 + $0x50] sm:$0xff] }
 0x3d4   : > { %9284 = vmatprep.mubr.bf16.mxu1 %v5264_v20  ;;  %9313 = vmatpush3.bf16.msra.mxu1 %v10228_v48  ;;  %v5296_v48 = vrot.slane %v11654_v52, 1  ;;  %v10237_v52 = vld [vmem:[#allocation4 + $0x118] sm:$0xff]   ;;  %v10238_v20 = vld [vmem:[#allocation4 + $0x120] sm:$0xff]  }
 0x3d5   : > { %9314 = vmatprep.subr.bf16.mxu1 %v10229_v12 }
 0x3d6   : > { %v5297_v9 = vsel %vm1576_vm8, %v5295_v3, %v5296_v48  ;;  %v10245_v3 = vld [vmem:[#allocation4 + $0x158] sm:$0xff]  }
 0x3d8   : > { %9315 = vmatpush3.bf16.msra.mxu1 %v10229_v12  ;;  %v11716_v12 = vld [vmem:[#allocation3 + $0x40] sm:$0xff] }
 0x3d9   : > { %9316 = vmatprep.subr.bf16.mxu1 %v10230_v25  ;;  %v5917_v23 = vshll.u32 %v11716_v12, 16  ;;  %v5915_v31 = vshrl.u32 %v11716_v12, 16 }
 0x3db   : > { %9285 = vmatmul.mubr.bf16.gmra.mrb[8].mxu1 %v5267_v34  ;;  %v11734_v34 = vld [vmem:[#allocation3 + $0xa0] sm:$0xff]  ;;  %v5919_v7 = vrot.slane %v5917_v23, 1  ;;  %v5975_v23 = vshrl.u32 %v11731_v54, 16 }
 0x3dc   : > { %9288 = vmatprep.mubr.bf16.mxu1 %v5270_v21  ;;  %9317 = vmatpush3.bf16.msra.mxu1 %v10230_v25  ;;  %v11725_v25 = vld [vmem:[#allocation3 + $0x70] sm:$0xff]  ;;  %v5881_v21 = vshll.u32 %v5572_v42, 16 }
 0x3dd   : > { %9318 = vmatprep.subr.bf16.mxu1 %v10231_v63  ;;  %v11775_v51 = vor.u32 %v5919_v7, %v5915_v31  ;;  %v5953_v50 = vshll.u32 %v11725_v25, 16  ;;  %v11817_v31 = vld [vmem:[#allocation3 + $0xa8] sm:$0x1] }
 0x3de   : > { %v5883_v32 = vrot.slane %v5881_v21, 1  ;;  %v5965_v21 = vshll.u32 %v11728_v8, 16 }
 0x3e0   : > { %9319 = vmatpush3.bf16.msra.mxu1 %v10231_v63  ;;  %v10242_v63 = vld [vmem:[#allocation4 + $0x140] sm:$0xff]  }
 0x3e1   : > { %9320 = vmatprep.subr.bf16.mxu1 %v10232_v10 }
 0x3e3   : > { %9289 = vmatmul.mubr.bf16.gmra.mrb[12].mxu1 %v5273_v55 }
 0x3e4   : > { %9292 = vmatprep.mubr.bf16.mxu1 %v5276_v61  ;;  %9321 = vmatpush3.bf16.msra.mxu1 %v10232_v10  ;;  %v5879_v10 = vshrl.u32 %v5572_v42, 16 }
 0x3e5   : > { %9322 = vmatprep.subr.bf16.mxu1 %v10233_v35 }
 0x3e6   : > { %v5884_v53 = vor.u32 %v5883_v32, %v5879_v10  ;;  %v5977_v10 = vshll.u32 %v11731_v54, 16 }
 0x3e8   : > { %9323 = vmatpush3.bf16.msra.mxu1 %v10233_v35  ;;  %v11749_v35 = vld [vmem:[#allocation3 + $0x38] sm:$0x1] }
 0x3e9   : > { %9356 = vmatprep.subr.bf16.mxu1 %v10234_v2  ;;  %v5910_v11 = vshll.u32 %v11749_v35, 16 }
 0x3eb   : > { %9293 = vmatmul.mubr.bf16.gmra.mrb[16].mxu1 %v5279_v1  ;;  %v5912_v43 = vrot.slane %v5910_v11, 1  ;;  %v11763_v1 = vld [vmem:[#allocation3 + $0x48] sm:$0x1]  ;;  %v11809_v11 = vld [vmem:[#allocation3 + $0xb0] sm:$0xff] }
 0x3ec   : > { %9296 = vmatprep.mubr.bf16.mxu1 %v5282_v40  ;;  %v10243_v40 = vld [vmem:[#allocation4 + $0x148] sm:$0xff]   ;;  %v6001_v7 = vshll.u32 %v11809_v11, 16 }
 0x3f3   : > { %9297 = vmatmul.mubr.bf16.gmra.mrb[20].mxu1 %v5285_v36  ;;  %v5922_v36 = vshll.u32 %v11763_v1, 16 }
 0x3f4   : > { %9300 = vmatprep.mubr.bf16.mxu1 %v5288_v4  ;;  %v5927_v4 = vshrl.u32 %v11719_v16, 16 }
 0x3fb   : > { %9301 = vmatmul.mubr.bf16.gmra.mrb[24].mxu1 %v5291_v57  ;;  %v5924_v57 = vrot.slane %v5922_v36, 1  ;;  %v10249_v36 = vld [vmem:[#allocation4 + $0x178] sm:$0xff]  }
 0x3fc   : > { %9304 = vmatprep.mubr.bf16.mxu1 %v5294_v46  ;;  %v5936_v46 = vrot.slane %v5934_v41, 1 }
 0x3fd   : > { %v5925_v48 = vsel %vm884_vm4, %v11775_v51, %v5924_v57  ;;  %v11824_v57 = vld [vmem:[#allocation3 + $0xc0] sm:$0xff] }
 0x403   : > { %9305 = vmatmul.mubr.bf16.gmra.mrb[28].mxu1 %v5297_v9  ;;  %v5943_v9 = vrot.slane %v5941_v47, 1 }
 0x404   : > { %9324 = vmatprep.mubr.bf16.mxu1 %v5572_v42  ;;  %v11785_v42 = vld [vmem:[#allocation3 + $0x78] sm:$0x1] }
 0x40b   : > { %9325 = vmatmul.mubr.bf16.vlgmr.msra.gmra.mrb[0].mxu1 %v11710_v37 }
 0x40c   : > { %9328 = vmatprep.mubr.bf16.mxu1 %v11713_v27  ;;  %9357 = vmatpush3.bf16.msra.mxu1 %v10234_v2 }
 0x40d   : > { %9358 = vmatprep.subr.bf16.mxu1 %v10235_v45 }
 0x410   : > { %9359 = vmatpush3.bf16.msra.mxu1 %v10235_v45 }
 0x411   : > { %9360 = vmatprep.subr.bf16.mxu1 %v10236_v29 }
 0x413   : > { %9329 = vmatmul.mubr.bf16.gmra.mrb[4].mxu1 %v11716_v12 }
 0x414   : > { %9332 = vmatprep.mubr.bf16.mxu1 %v11719_v16  ;;  %9361 = vmatpush3.bf16.msra.mxu1 %v10236_v29  ;;  %v5955_v29 = vrot.slane %v5953_v50, 1  ;;  %v6003_v50 = vrot.slane %v6001_v7, 1 }
 0x415   : > { %9362 = vmatprep.subr.bf16.mxu1 %v10237_v52 }
 0x418   : > { %9363 = vmatpush3.bf16.msra.mxu1 %v10237_v52  ;;  %v5939_v52 = vshrl.u32 %v11722_v0, 16 }
 0x419   : > { %9364 = vmatprep.subr.bf16.mxu1 %v10238_v20 }
 0x41b   : > { %9333 = vmatmul.mubr.bf16.gmra.mrb[8].mxu1 %v11722_v0 }
 0x41c   : > { %9336 = vmatprep.mubr.bf16.mxu1 %v11725_v25  ;;  %9365 = vmatpush3.bf16.msra.mxu1 %v10238_v20  ;;  %v5946_v20 = vshll.u32 %v11781_v60, 16 }
 0x41d   : > { %9366 = vmatprep.subr.bf16.mxu1 %v10239_v59 }
 0x41e   : > { %v5948_v19 = vrot.slane %v5946_v20, 1  ;;  %v6013_v20 = vshll.u32 %v11824_v57, 16 }
 0x420   : > { %9367 = vmatpush3.bf16.msra.mxu1 %v10239_v59  ;;  %v5951_v59 = vshrl.u32 %v11725_v25, 16 }
 0x421   : > { %9368 = vmatprep.subr.bf16.mxu1 %v10240_v26 }
 0x422   : > { %v11796_v32 = vor.u32 %v5955_v29, %v5951_v59  ;;  %v11832_v29 = vld [vmem:[#allocation4 + $0x180] sm:$0xff]  }
 0x423   : > { %9337 = vmatmul.mubr.bf16.gmra.mrb[12].mxu1 %v11728_v8 }
 0x424   : > { %9340 = vmatprep.mubr.bf16.mxu1 %v11731_v54  ;;  %9369 = vmatpush3.bf16.msra.mxu1 %v10240_v26  ;;  %v5958_v26 = vshll.u32 %v11785_v42, 16 }
 0x425   : > { %9370 = vmatprep.subr.bf16.mxu1 %v10241_v17 }
 0x428   : > { %9371 = vmatpush3.bf16.msra.mxu1 %v10241_v17  ;;  %v10246_v17 = vld [vmem:[#allocation4 + $0x160] sm:$0xff]  }
 0x429   : > { %9404 = vmatprep.subr.bf16.mxu1 %v10242_v63 }
 0x42b   : > { %9341 = vmatmul.mubr.bf16.gmra.mrb[16].mxu1 %v11734_v34 }
 0x42c   : > { %9344 = vmatprep.mubr.bf16.mxu1 %v11579_v38  ;;  %v5905_v38 = vshll.u32 %v11713_v27, 16 }
 0x42e   : > { %v5907_v55 = vrot.slane %v5905_v38, 1  ;;  %v10247_v38 = vld [vmem:[#allocation4 + $0x168] sm:$0xff]  }
 0x430   : > { %v11760_v22 = vor.u32 %v5907_v55, %v5903_v5 }
 0x432   : > { %v5913_v14 = vsel %vm884_vm4, %v11760_v22, %v5912_v43 }
 0x433   : > { %9345 = vmatmul.mubr.bf16.gmra.mrb[20].mxu1 %v11573_v30  ;;  %v11747_v30 = vld [vmem:[#allocation3 + $0x28] sm:$0x1] }
 0x434   : > { %9348 = vmatprep.mubr.bf16.mxu1 %v11610_v62  ;;  %v5895_v62 = vrot.slane %v5893_v58, 1  ;;  %v5898_v61 = vshll.u32 %v11747_v30, 16  ;;  %v5960_v58 = vrot.slane %v5958_v26, 1 }
 0x436   : > { %v5900_v15 = vrot.slane %v5898_v61, 1  ;;  %v5961_v55 = vsel %vm884_vm4, %v11796_v32, %v5960_v58  ;;  %v5963_v61 = vshrl.u32 %v11728_v8, 16  ;;  %v6015_v58 = vrot.slane %v6013_v20, 1 }
 0x43b   : > { %9349 = vmatmul.mubr.bf16.gmra.mrb[24].mxu1 %v11603_v28  ;;  %v5889_v28 = vsel %vm884_vm4, %v5884_v53, %v5888_v33  ;;  %v11799_v53 = vld [vmem:[#allocation3 + $0x88] sm:$0x1] }
 0x43c   : > { %9352 = vmatprep.mubr.bf16.mxu1 %v11637_v39  ;;  %v5891_v39 = vshrl.u32 %v11710_v37, 16  ;;  %v5970_v5 = vshll.u32 %v11799_v53, 16 }
 0x43e   : > { %v11757_v2 = vor.u32 %v5895_v62, %v5891_v39  ;;  %v5967_v62 = vrot.slane %v5965_v21, 1  ;;  %v5979_v39 = vrot.slane %v5977_v10, 1  ;;  %v11838_v10 = vld [vmem:[#allocation3 + $0xc8] sm:$0x1] }
 0x440   : > { %v5901_v6 = vsel %vm884_vm4, %v11757_v2, %v5900_v15  ;;  %v10248_v15 = vld [vmem:[#allocation4 + $0x170] sm:$0xff]   ;;  %v11813_v43 = vor.u32 %v5967_v62, %v5963_v61  ;;  %v6018_v61 = vshll.u32 %v11838_v10, 16 }
 0x443   : > { %9353 = vmatmul.mubr.bf16.gmra.mrb[28].mxu1 %v11633_v49  ;;  %v5929_v49 = vshll.u32 %v11719_v16, 16 }
 0x444   : > { %9372 = vmatprep.mubr.bf16.mxu1 %v5889_v28  ;;  %v11803_v28 = vld [vmem:[#allocation3 + $0x98] sm:$0x1] }
 0x445   : > { %v5931_v24 = vrot.slane %v5929_v49, 1  ;;  %v5982_v49 = vshll.u32 %v11803_v28, 16 }
 0x447   : > { %v11778_v18 = vor.u32 %v5931_v24, %v5927_v4  ;;  %v5984_v24 = vrot.slane %v5982_v49, 1 }
 0x449   : > { %v5937_v45 = vsel %vm884_vm4, %v11778_v18, %v5936_v46  ;;  %v5987_v46 = vshrl.u32 %v11734_v34, 16 }
 0x44b   : > { %9373 = vmatmul.mubr.bf16.vlgmr.msra.gmra.mrb[0].mxu1 %v5901_v6  ;;  %v5980_v6 = vor.u32 %v5979_v39, %v5975_v23  ;;  %v6011_v39 = vshrl.u32 %v11824_v57, 16 }
 0x44c   : > { %9376 = vmatprep.mubr.bf16.mxu1 %v5913_v14  ;;  %9405 = vmatpush3.bf16.msra.mxu1 %v10242_v63  ;;  %v11793_v63 = vor.u32 %v5943_v9, %v5939_v52  ;;  %v5972_v14 = vrot.slane %v5970_v5, 1  ;;  %v5999_v9 = vshrl.u32 %v11809_v11, 16  ;;  %v11850_v5 = vld [vmem:[#allocation3 + $0xf0] sm:$0xff] }
 0x44d   : > { %9406 = vmatprep.subr.bf16.mxu1 %v10243_v40  ;;  %v5985_v47 = vsel %vm884_vm4, %v5980_v6, %v5984_v24  ;;  %v6049_v7 = vshll.u32 %v11850_v5, 16 }
 0x44e   : > { %v5949_v33 = vsel %vm884_vm4, %v11793_v63, %v5948_v19  ;;  %v5973_v4 = vsel %vm884_vm4, %v11813_v43, %v5972_v14  ;;  %v11835_v59 = vor.u32 %v6003_v50, %v5999_v9  ;;  %v6020_v14 = vrot.slane %v6018_v61, 1 }
 0x450   : > { %9407 = vmatpush3.bf16.msra.mxu1 %v10243_v40  ;;  %v5989_v40 = vshll.u32 %v11734_v34, 16 }
 0x451   : > { %9408 = vmatprep.subr.bf16.mxu1 %v10244_v13 }
 0x452   : > { %v5991_v41 = vrot.slane %v5989_v40, 1 }
 0x453   : > { %9377 = vmatmul.mubr.bf16.gmra.mrb[4].mxu1 %v5925_v48  ;;  %v11828_v48 = vld [vmem:[#allocation3 + $0xd0] sm:$0xff] }
 0x454   : > { %9380 = vmatprep.mubr.bf16.mxu1 %v5937_v45  ;;  %9409 = vmatpush3.bf16.msra.mxu1 %v10244_v13  ;;  %v11821_v13 = vld [vmem:[#allocation3 + $0xb8] sm:$0x1]  ;;  %v5992_v52 = vor.u32 %v5991_v41, %v5987_v46  ;;  %v6025_v26 = vshll.u32 %v11828_v48, 16  ;;  %v6023_v23 = vshrl.u32 %v11828_v48, 16  ;;  %v6051_v46 = vrot.slane %v6049_v7, 1 }
 0x455   : > { %9410 = vmatprep.subr.bf16.mxu1 %v10245_v3  ;;  %v6006_v45 = vshll.u32 %v11821_v13, 16 }
 0x456   : > { %v6027_v62 = vrot.slane %v6025_v26, 1 }
 0x457   : > { %v6008_v21 = vrot.slane %v6006_v45, 1 }
 0x458   : > { %9411 = vmatpush3.bf16.msra.mxu1 %v10245_v3  ;;  %v5994_v3 = vshll.u32 %v11817_v31, 16  ;;  %v11857_v6 = vor.u32 %v6027_v62, %v6023_v23 }
 0x459   : > { %9412 = vmatprep.subr.bf16.mxu1 %v10246_v17 }
 0x45b   : > { %9381 = vmatmul.mubr.bf16.gmra.mrb[8].mxu1 %v5949_v33  ;;  %v6009_v33 = vsel %vm884_vm4, %v11835_v59, %v6008_v21 }
 0x45c   : > { %9384 = vmatprep.mubr.bf16.mxu1 %v5961_v55  ;;  %9413 = vmatpush3.bf16.msra.mxu1 %v10246_v17  ;;  %v5996_v17 = vrot.slane %v5994_v3, 1  ;;  %v11846_v55 = vld [vmem:[#allocation3 + $0xe0] sm:$0xff] }
 0x45d   : > { %9414 = vmatprep.subr.bf16.mxu1 %v10247_v38  ;;  %v6037_v40 = vshll.u32 %v11846_v55, 16  ;;  %v11868_v3 = vld [vmem:[#allocation3 + $0x100] sm:$0xff]  ;;  %v6035_v9 = vshrl.u32 %v11846_v55, 16 }
 0x45e   : > { %v5997_v19 = vsel %vm884_vm4, %v5992_v52, %v5996_v17  ;;  %v6047_v52 = vshrl.u32 %v11850_v5, 16  ;;  %v6061_v17 = vshll.u32 %v11868_v3, 16  ;;  %v6059_v23 = vshrl.u32 %v11868_v3, 16 }
 0x45f   : > { %v6039_v41 = vrot.slane %v6037_v40, 1  ;;  %v6344_v40 = vld [vmem:[#allocation3 + $0x10] sm:$0xfe] }
 0x460   : > { %9415 = vmatpush3.bf16.msra.mxu1 %v10247_v38  ;;  %v11842_v38 = vld [vmem:[#allocation3 + $0xd8] sm:$0x1]  ;;  %v11877_v21 = vor.u32 %v6051_v46, %v6047_v52  ;;  %v6345_v46 = vld [vmem:[#allocation3 + $0x20] sm:$0xfe] }
 0x461   : > { %9416 = vmatprep.subr.bf16.mxu1 %v10248_v15  ;;  %v6030_v49 = vshll.u32 %v11842_v38, 16  ;;  %v11874_v26 = vor.u32 %v6039_v41, %v6035_v9  ;;  %v6346_v9 = vld [vmem:[#allocation3 + $0x30] sm:$0xfe] }
 0x462   : > { %v6398_v52 = vrot.slane %v6346_v9, 1  ;;  %v10255_v9 = vld [vmem:[#allocation4 + $0x1a8] sm:$0xff]  }
 0x463   : > { %9385 = vmatmul.mubr.bf16.gmra.mrb[12].mxu1 %v5973_v4  ;;  %v6032_v24 = vrot.slane %v6030_v49, 1 }
 0x464   : > { %9388 = vmatprep.mubr.bf16.mxu1 %v5985_v47  ;;  %9417 = vmatpush3.bf16.msra.mxu1 %v10248_v15  ;;  %v11854_v15 = vor.u32 %v6015_v58, %v6011_v39  ;;  %v11864_v47 = vld [vmem:[#allocation3 + $0xf8] sm:$0x1]  ;;  %v6063_v39 = vrot.slane %v6061_v17, 1  ;;  %v6399_v17 = vrot.slane %v11749_v35, 1 }
 0x465   : > { %9418 = vmatprep.subr.bf16.mxu1 %v10249_v36  ;;  %v6033_v50 = vsel %vm884_vm4, %v11857_v6, %v6032_v24  ;;  %v6054_v20 = vshll.u32 %v11864_v47, 16  ;;  %v10253_v35 = vld [vmem:[#allocation4 + $0x198] sm:$0xff]  }
 0x466   : > { %v6021_v4 = vsel %vm884_vm4, %v11854_v15, %v6020_v14  ;;  %v11887_v7 = vor.u32 %v6063_v39, %v6059_v23  ;;  %v6392_v14 = vrot.slane %v6344_v40, 1  ;;  %v6348_v39 = vld [vmem:[#allocation3 + $0x50] sm:$0xfe]  ;;  %v6402_v40 = vrot.slane %v11763_v1, 1 }
 0x467   : > { %v6056_v58 = vrot.slane %v6054_v20, 1  ;;  %v6396_v20 = vrot.slane %v11747_v30, 1  ;;  %v6405_v30 = vrot.slane %v11767_v44, 1  ;;  %v6408_v1 = vrot.slane %v11781_v60, 1 }
 0x468   : > { %9419 = vmatpush3.bf16.msra.mxu1 %v10249_v36  ;;  %v11860_v36 = vld [vmem:[#allocation3 + $0xe8] sm:$0x1]  ;;  %v6411_v44 = vrot.slane %v11785_v42, 1  ;;  %v6414_v60 = vrot.slane %v11799_v53, 1  ;;  %v6417_v42 = vrot.slane %v11803_v28, 1  ;;  %v6420_v53 = vrot.slane %v11817_v31, 1 }
 0x469   : > { %9452 = vmatprep.subr.bf16.mxu1 %v11832_v29  ;;  %v6042_v45 = vshll.u32 %v11860_v36, 16  ;;  %v6057_v61 = vsel %vm884_vm4, %v11877_v21, %v6056_v58  ;;  %v6423_v28 = vrot.slane %v11821_v13, 1 }
 0x46b   : > { %9389 = vmatmul.mubr.bf16.gmra.mrb[16].mxu1 %v5997_v19  ;;  %v6044_v19 = vrot.slane %v6042_v45, 1  ;;  %v6395_v45 = vrot.slane %v6345_v46, 1 }
 0x46c   : > { %9392 = vmatprep.mubr.bf16.mxu1 %v6009_v33  ;;  %v11879_v33 = vld [vmem:[#allocation3 + $0x108] sm:$0x1] }
 0x46d   : > { %v6045_v62 = vsel %vm884_vm4, %v11874_v26, %v6044_v19  ;;  %v6066_v49 = vshll.u32 %v11879_v33, 16  ;;  %v10251_v19 = vld [vmem:[#allocation4 + $0x188] sm:$0xff]   ;;  %v6397_v58 = vsel %vm1576_vm8, %v6395_v45, %v6396_v20  ;;  %v6351_v20 = vld [vmem:[#allocation3 + $0x80] sm:$0xfe] }
 0x46f   : > { %v6068_v24 = vrot.slane %v6066_v49, 1  ;;  %v6404_v49 = vrot.slane %v6348_v39, 1 }
 0x471   : > { %v6069_v41 = vsel %vm884_vm4, %v11887_v7, %v6068_v24  ;;  %v6406_v24 = vsel %vm1576_vm8, %v6404_v49, %v6405_v30  ;;  %v6354_v49 = vld [vmem:[#allocation3 + $0xb0] sm:$0xfe] }
 0x473   : > { %9393 = vmatmul.mubr.bf16.gmra.mrb[20].mxu1 %v6021_v4  ;;  %v6393_v4 = vrot.slane %v11740_v56, 1  ;;  %v6400_v56 = vsel %vm1576_vm8, %v6398_v52, %v6399_v17  ;;  %v6352_v17 = vld [vmem:[#allocation3 + $0x90] sm:$0xfe] }
 0x474   : > { %9396 = vmatprep.mubr.bf16.mxu1 %v6033_v50 }
 0x475   : > { %v6394_v50 = vsel %vm1576_vm8, %v6392_v14, %v6393_v4  ;;  %v6349_v4 = vld [vmem:[#allocation3 + $0x60] sm:$0xfe] }
 0x47b   : > { %9397 = vmatmul.mubr.bf16.gmra.mrb[24].mxu1 %v6045_v62  ;;  %v6347_v62 = vld [vmem:[#allocation3 + $0x40] sm:$0xfe] }
 0x47c   : > { %9400 = vmatprep.mubr.bf16.mxu1 %v6057_v61  ;;  %v10252_v61 = vld [vmem:[#allocation4 + $0x190] sm:$0xff]   ;;  %v6401_v23 = vrot.slane %v6347_v62, 1  ;;  %v10257_v62 = vld [vmem:[#allocation4 + $0x1b8] sm:$0xff]  }
 0x47e   : > { %v6403_v14 = vsel %vm1576_vm8, %v6401_v23, %v6402_v40  ;;  %v6353_v23 = vld [vmem:[#allocation3 + $0xa0] sm:$0xfe] }
 0x47f   : > { %v10258_v40 = vld [vmem:[#allocation4 + $0x1c0] sm:$0xff]   ;;  %v6419_v30 = vrot.slane %v6353_v23, 1  ;;  %v11957_v23 = vld [vmem:[#allocation3 + $0x68] sm:$0x1] }
 0x483   : > { %9401 = vmatmul.mubr.bf16.gmra.mrb[28].mxu1 %v6069_v41  ;;  %v10254_v41 = vld [vmem:[#allocation4 + $0x1a0] sm:$0xff]  }
 0x484   : > { %9420 = vmatprep.mubr.bf16.mxu1 %v6394_v50  ;;  %v6407_v50 = vrot.slane %v6349_v4, 1  ;;  %v6355_v4 = vld [vmem:[#allocation3 + $0xc0] sm:$0xfe] }
 0x486   : > { %v6409_v45 = vsel %vm1576_vm8, %v6407_v50, %v6408_v1  ;;  %v6429_v1 = vrot.slane %v11842_v38, 1  ;;  %v6359_v38 = vld [vmem:[#allocation3 + $0x100] sm:$0xfe] }
 0x48b   : > { %9421 = vmatmul.mubr.bf16.vlgmr.msra.gmra.mrb[0].mxu1 %v6397_v58  ;;  %v6413_v58 = vrot.slane %v6351_v20, 1  ;;  %v6432_v20 = vrot.slane %v11860_v36, 1  ;;  %v10260_v36 = vld [vmem:[#allocation4 + $0x1d0] sm:$0xff]  }
 0x48c   : > { %9424 = vmatprep.mubr.bf16.mxu1 %v6400_v56  ;;  %9453 = vmatpush3.bf16.msra.mxu1 %v11832_v29  ;;  %v6350_v29 = vld [vmem:[#allocation3 + $0x70] sm:$0xfe]  ;;  %v6416_v56 = vrot.slane %v6352_v17, 1  ;;  %v6435_v17 = vrot.slane %v11864_v47, 1  ;;  %v10261_v47 = vld [vmem:[#allocation4 + $0x1d8] sm:$0xff]  }
 0x48d   : > { %9454 = vmatprep.subr.bf16.mxu1 %v10251_v19  ;;  %v6410_v46 = vrot.slane %v6350_v29, 1  ;;  %v6415_v39 = vsel %vm1576_vm8, %v6413_v58, %v6414_v60  ;;  %v6356_v29 = vld [vmem:[#allocation3 + $0xd0] sm:$0xfe]  ;;  %v6437_v58 = vrot.slane %v6359_v38, 1 }
 0x48e   : > { %v6428_v50 = vrot.slane %v6356_v29, 1 }
 0x48f   : > { %v6412_v52 = vsel %vm1576_vm8, %v6410_v46, %v6411_v44  ;;  %v6426_v46 = vrot.slane %v11838_v10, 1  ;;  %v6357_v44 = vld [vmem:[#allocation3 + $0xe0] sm:$0xfe] }
 0x490   : > { %9455 = vmatpush3.bf16.msra.mxu1 %v10251_v19  ;;  %v10256_v19 = vld [vmem:[#allocation4 + $0x1b0] sm:$0xff]   ;;  %v6430_v13 = vsel %vm1576_vm8, %v6428_v50, %v6429_v1 }
 0x491   : > { %9456 = vmatprep.subr.bf16.mxu1 %v10252_v61 }
 0x493   : > { %9425 = vmatmul.mubr.bf16.gmra.mrb[4].mxu1 %v6403_v14  ;;  %v6421_v14 = vsel %vm1576_vm8, %v6419_v30, %v6420_v53  ;;  %v10268_v30 = vld [vmem:[#allocation4 + $0x210] sm:$0xff]  }
 0x494   : > { %9428 = vmatprep.mubr.bf16.mxu1 %v6406_v24  ;;  %9457 = vmatpush3.bf16.msra.mxu1 %v10252_v61  ;;  %v6418_v61 = vsel %vm1576_vm8, %v6416_v56, %v6417_v42  ;;  %v6438_v56 = vrot.slane %v11879_v33, 1  ;;  %v10259_v42 = vld [vmem:[#allocation4 + $0x1c8] sm:$0xff]   ;;  %v10262_v33 = vld [vmem:[#allocation4 + $0x1e0] sm:$0xff]  }
 0x495   : > { %9458 = vmatprep.subr.bf16.mxu1 %v10253_v35 }
 0x496   : > { %v6439_v60 = vsel %vm1576_vm8, %v6437_v58, %v6438_v56  ;;  %v10272_v56 = vld [vmem:[#allocation4 + $0x230] sm:$0xff]  }
 0x498   : > { %9459 = vmatpush3.bf16.msra.mxu1 %v10253_v35  ;;  %v6422_v35 = vrot.slane %v6354_v49, 1 }
 0x499   : > { %9460 = vmatprep.subr.bf16.mxu1 %v10254_v41 }
 0x49a   : > { %v6424_v24 = vsel %vm1576_vm8, %v6422_v35, %v6423_v28  ;;  %v11963_v28 = vld [vmem:[#allocation3 + $0x78] sm:$0x1] }
 0x49b   : > { %9429 = vmatmul.mubr.bf16.gmra.mrb[8].mxu1 %v6409_v45  ;;  %v6431_v45 = vrot.slane %v6357_v44, 1  ;;  %v7089_v29 = vshll.u32 %v11963_v28, 16  ;;  %v11973_v44 = vld [vmem:[#allocation3 + $0x98] sm:$0x1] }
 0x49c   : > { %9432 = vmatprep.mubr.bf16.mxu1 %v6412_v52  ;;  %9461 = vmatpush3.bf16.msra.mxu1 %v10254_v41  ;;  %v6425_v41 = vrot.slane %v6355_v4, 1  ;;  %v7003_v4 = vld [vmem:[#allocation3 + $0x90] sm:$0xff] }
 0x49d   : > { %9462 = vmatprep.subr.bf16.mxu1 %v10255_v9  ;;  %v7108_v1 = vshll.u32 %v7003_v4, 16 }
 0x49e   : > { %v6427_v31 = vsel %vm1576_vm8, %v6425_v41, %v6426_v46  ;;  %v7005_v41 = vld [vmem:[#allocation3 + $0xa0] sm:$0xff] }
 0x49f   : > { %v10270_v46 = vld [vmem:[#allocation4 + $0x220] sm:$0xff]   ;;  %v7118_v38 = vshrl.u32 %v7005_v41, 16 }
 0x4a0   : > { %9463 = vmatpush3.bf16.msra.mxu1 %v10255_v9  ;;  %v6358_v9 = vld [vmem:[#allocation3 + $0xf0] sm:$0xfe] }
 0x4a1   : > { %9464 = vmatprep.subr.bf16.mxu1 %v10256_v19  ;;  %v6434_v52 = vrot.slane %v6358_v9, 1  ;;  %v10271_v9 = vld [vmem:[#allocation4 + $0x228] sm:$0xff]  }
 0x4a3   : > { %9433 = vmatmul.mubr.bf16.gmra.mrb[12].mxu1 %v6415_v39  ;;  %v6436_v10 = vsel %vm1576_vm8, %v6434_v52, %v6435_v17  ;;  %v10267_v39 = vld [vmem:[#allocation4 + $0x208] sm:$0xff]  }
 0x4a4   : > { %9436 = vmatprep.mubr.bf16.mxu1 %v6418_v61  ;;  %9465 = vmatpush3.bf16.msra.mxu1 %v10256_v19  ;;  %v6433_v19 = vsel %vm1576_vm8, %v6431_v45, %v6432_v20  ;;  %v7110_v45 = vrot.slane %v7108_v1, 1  ;;  %v11977_v52 = vld [vmem:[#allocation3 + $0xa8] sm:$0x1]  ;;  %v7487_v1 = vld [vmem:[#allocation3 + $0x20] sm:$0xfe] }
 0x4a5   : > { %9466 = vmatprep.subr.bf16.mxu1 %v10257_v62  ;;  %v7125_v58 = vshll.u32 %v11977_v52, 16 }
 0x4a8   : > { %9467 = vmatpush3.bf16.msra.mxu1 %v10257_v62  ;;  %v11953_v62 = vld [vmem:[#allocation3 + $0x58] sm:$0x1] }
 0x4a9   : > { %9500 = vmatprep.subr.bf16.mxu1 %v10258_v40 }
 0x4ab   : > { %9437 = vmatmul.mubr.bf16.gmra.mrb[16].mxu1 %v6421_v14 }
 0x4ac   : > { %9440 = vmatprep.mubr.bf16.mxu1 %v6424_v24  ;;  %v11967_v24 = vld [vmem:[#allocation3 + $0x88] sm:$0x1] }
 0x4ad   : > { %v7101_v50 = vshll.u32 %v11967_v24, 16 }
 0x4b3   : > { %9441 = vmatmul.mubr.bf16.gmra.mrb[20].mxu1 %v6427_v31  ;;  %v7120_v31 = vshll.u32 %v7005_v41, 16 }
 0x4b4   : > { %9444 = vmatprep.mubr.bf16.mxu1 %v6430_v13  ;;  %v7091_v13 = vrot.slane %v7089_v29, 1 }
 0x4b5   : > { %v7122_v17 = vrot.slane %v7120_v31, 1  ;;  %v7535_v31 = vrot.slane %v7487_v1, 1  ;;  %v7502_v1 = vld [vmem:[#allocation3 + $0x110] sm:$0xfe] }
 0x4bb   : > { %9445 = vmatmul.mubr.bf16.gmra.mrb[24].mxu1 %v6433_v19  ;;  %v7106_v19 = vshrl.u32 %v7003_v4, 16 }
 0x4bc   : > { %9448 = vmatprep.mubr.bf16.mxu1 %v6436_v10  ;;  %v7113_v10 = vshll.u32 %v11973_v44, 16 }
 0x4c3   : > { %9449 = vmatmul.mubr.bf16.gmra.mrb[28].mxu1 %v6439_v60  ;;  %v7111_v60 = vor.u32 %v7110_v45, %v7106_v19 }
 0x4c4   : > { %9468 = vmatprep.mubr.bf16.mxu1 %v11710_v37  ;;  %v10263_v37 = vld [vmem:[#allocation4 + $0x1e8] sm:$0xff]  }
 0x4cb   : > { %9469 = vmatmul.mubr.bf16.vlgmr.msra.gmra.mrb[0].mxu1 %v11713_v27  ;;  %v10264_v27 = vld [vmem:[#allocation4 + $0x1f0] sm:$0xff]  }
 0x4cc   : > { %9472 = vmatprep.mubr.bf16.mxu1 %v11716_v12  ;;  %9501 = vmatpush3.bf16.msra.mxu1 %v10258_v40  ;;  %v10265_v12 = vld [vmem:[#allocation4 + $0x1f8] sm:$0xff]   ;;  %v7077_v40 = vshll.u32 %v11957_v23, 16 }
 0x4cd   : > { %9502 = vmatprep.subr.bf16.mxu1 %v10259_v42 }
 0x4ce   : > { %v7079_v53 = vrot.slane %v7077_v40, 1 }
 0x4d0   : > { %9503 = vmatpush3.bf16.msra.mxu1 %v10259_v42  ;;  %v7115_v42 = vrot.slane %v7113_v10, 1  ;;  %v7490_v10 = vld [vmem:[#allocation3 + $0x50] sm:$0xfe] }
 0x4d1   : > { %9504 = vmatprep.subr.bf16.mxu1 %v10260_v36 }
 0x4d3   : > { %9473 = vmatmul.mubr.bf16.gmra.mrb[4].mxu1 %v11719_v16  ;;  %v10266_v16 = vld [vmem:[#allocation4 + $0x200] sm:$0xff]  }
 0x4d4   : > { %9476 = vmatprep.mubr.bf16.mxu1 %v11722_v0  ;;  %9505 = vmatpush3.bf16.msra.mxu1 %v10260_v36  ;;  %v11937_v0 = vld [vmem:[#allocation3 + $0x28] sm:$0x1]  ;;  %v7127_v36 = vrot.slane %v7125_v58, 1 }
 0x4d5   : > { %9506 = vmatprep.subr.bf16.mxu1 %v10261_v47 }
 0x4d8   : > { %9507 = vmatpush3.bf16.msra.mxu1 %v10261_v47  ;;  %v11983_v47 = vld [vmem:[#allocation3 + $0xb8] sm:$0x1] }
 0x4d9   : > { %9508 = vmatprep.subr.bf16.mxu1 %v10262_v33 }
 0x4db   : > { %9477 = vmatmul.mubr.bf16.gmra.mrb[8].mxu1 %v11725_v25  ;;  %v7029_v25 = vshll.u32 %v11937_v0, 16 }
 0x4dc   : > { %9480 = vmatprep.mubr.bf16.mxu1 %v11728_v8  ;;  %9509 = vmatpush3.bf16.msra.mxu1 %v10262_v33  ;;  %v7116_v33 = vsel %vm884_vm4, %v7111_v60, %v7115_v42  ;;  %v7548_v60 = vrot.slane %v11957_v23, 1  ;;  %v7493_v42 = vld [vmem:[#allocation3 + $0x80] sm:$0xfe]  ;;  %v7494_v23 = vld [vmem:[#allocation3 + $0x90] sm:$0xfe] }
 0x4dd   : > { %9510 = vmatprep.subr.bf16.mxu1 %v10263_v37  ;;  %v7031_v8 = vrot.slane %v7029_v25, 1 }
 0x4e0   : > { %9511 = vmatpush3.bf16.msra.mxu1 %v10263_v37  ;;  %v11986_v37 = vld [vmem:[#allocation3 + $0xc8] sm:$0x1] }
 0x4e1   : > { %9512 = vmatprep.subr.bf16.mxu1 %v10264_v27 }
 0x4e3   : > { %9481 = vmatmul.mubr.bf16.gmra.mrb[12].mxu1 %v11731_v54  ;;  %v11942_v54 = vld [vmem:[#allocation3 + $0x38] sm:$0x1] }
 0x4e4   : > { %9484 = vmatprep.mubr.bf16.mxu1 %v11734_v34  ;;  %9513 = vmatpush3.bf16.msra.mxu1 %v10264_v27  ;;  %v11944_v34 = vld [vmem:[#allocation3 + $0x48] sm:$0x1] }
 0x4e5   : > { %9514 = vmatprep.subr.bf16.mxu1 %v10265_v12 }
 0x4e8   : > { %9515 = vmatpush3.bf16.msra.mxu1 %v10265_v12  ;;  %v7137_v12 = vshll.u32 %v11983_v47, 16 }
 0x4e9   : > { %9548 = vmatprep.subr.bf16.mxu1 %v10266_v16 }
 0x4ea   : > { %v7139_v25 = vrot.slane %v7137_v12, 1 }
 0x4eb   : > { %9485 = vmatmul.mubr.bf16.gmra.mrb[16].mxu1 %v11809_v11  ;;  %v11946_v11 = vld [vmem:[#allocation2] sm:$0xff] }
 0x4ec   : > { %9488 = vmatprep.mubr.bf16.mxu1 %v11824_v57  ;;  %v7032_v57 = vsel %vm884_vm4, %v11757_v2, %v7031_v8  ;;  %v7065_v2 = vshll.u32 %v11953_v62, 16 }
 0x4ee   : > { %v7067_v35 = vrot.slane %v7065_v2, 1  ;;  %v12001_v2 = vld [vmem:[#allocation3 + $0xf8] sm:$0x1] }
 0x4f0   : > { %v7068_v14 = vsel %vm884_vm4, %v11778_v18, %v7067_v35  ;;  %v7103_v18 = vrot.slane %v7101_v50, 1  ;;  %v7204_v35 = vshll.u32 %v11946_v11, 16 }
 0x4f2   : > { %v7104_v20 = vsel %vm884_vm4, %v11813_v43, %v7103_v18  ;;  %v10273_v43 = vld [vmem:[#allocation4 + $0x238] sm:$0xff]   ;;  %v7206_v4 = vrot.slane %v7204_v35, 1  ;;  %v7499_v35 = vld [vmem:[#allocation3 + $0xe0] sm:$0xfe] }
 0x4f3   : > { %9489 = vmatmul.mubr.bf16.gmra.mrb[20].mxu1 %v11828_v48  ;;  %v7041_v48 = vshll.u32 %v11942_v54, 16 }
 0x4f4   : > { %9492 = vmatprep.mubr.bf16.mxu1 %v11846_v55  ;;  %v7053_v55 = vshll.u32 %v11944_v34, 16 }
 0x4fb   : > { %9493 = vmatmul.mubr.bf16.gmra.mrb[24].mxu1 %v11850_v5  ;;  %v7043_v5 = vrot.slane %v7041_v48, 1  ;;  %v7140_v48 = vsel %vm884_vm4, %v11835_v59, %v7139_v25  ;;  %v7556_v25 = vrot.slane %v7494_v23, 1 }
 0x4fc   : > { %9496 = vmatprep.mubr.bf16.mxu1 %v11868_v3  ;;  %v7055_v3 = vrot.slane %v7053_v55, 1  ;;  %v11995_v55 = vld [vmem:[#allocation3 + $0xe8] sm:$0x1] }
 0x4fd   : > { %v7044_v61 = vsel %vm884_vm4, %v11760_v22, %v7043_v5  ;;  %v10269_v22 = vld [vmem:[#allocation4 + $0x218] sm:$0xff]  }
 0x4fe   : > { %v7056_v49 = vsel %vm884_vm4, %v11775_v51, %v7055_v3  ;;  %v7080_v51 = vsel %vm884_vm4, %v11793_v63, %v7079_v53  ;;  %v7092_v63 = vsel %vm884_vm4, %v11796_v32, %v7091_v13  ;;  %v7123_v32 = vor.u32 %v7122_v17, %v7118_v38 }
 0x4ff   : > { %v7544_v38 = vrot.slane %v7490_v10, 1 }
 0x500   : > { %v7128_v27 = vsel %vm884_vm4, %v7123_v32, %v7127_v36 }
 0x503   : > { %9497 = vmatmul.mubr.bf16.gmra.mrb[28].mxu1 %v11946_v11 }
 0x504   : > { %9516 = vmatprep.mubr.bf16.mxu1 %v7032_v57  ;;  %v11991_v57 = vld [vmem:[#allocation3 + $0xd8] sm:$0x1] }
 0x505   : > { %v7161_v3 = vshll.u32 %v11991_v57, 16 }
 0x50b   : > { %9517 = vmatmul.mubr.bf16.vlgmr.msra.gmra.mrb[0].mxu1 %v7044_v61  ;;  %v7163_v61 = vrot.slane %v7161_v3, 1 }
 0x50c   : > { %9520 = vmatprep.mubr.bf16.mxu1 %v7056_v49  ;;  %9549 = vmatpush3.bf16.msra.mxu1 %v10266_v16  ;;  %v7149_v16 = vshll.u32 %v11986_v37, 16 }
 0x50d   : > { %9550 = vmatprep.subr.bf16.mxu1 %v10267_v39  ;;  %v7164_v40 = vsel %vm884_vm4, %v11857_v6, %v7163_v61 }
 0x50e   : > { %v7151_v8 = vrot.slane %v7149_v16, 1  ;;  %v7495_v16 = vld [vmem:[#allocation3 + $0xa0] sm:$0xfe] }
 0x510   : > { %9551 = vmatpush3.bf16.msra.mxu1 %v10267_v39  ;;  %v7152_v5 = vsel %vm884_vm4, %v11854_v15, %v7151_v8  ;;  %v7173_v39 = vshll.u32 %v11995_v55, 16  ;;  %v7185_v15 = vshll.u32 %v12001_v2, 16  ;;  %v7559_v8 = vrot.slane %v7495_v16, 1 }
 0x511   : > { %9552 = vmatprep.subr.bf16.mxu1 %v10268_v30 }
 0x512   : > { %v7175_v49 = vrot.slane %v7173_v39, 1  ;;  %v7497_v39 = vld [vmem:[#allocation3 + $0xc0] sm:$0xfe] }
 0x513   : > { %9521 = vmatmul.mubr.bf16.gmra.mrb[4].mxu1 %v7068_v14  ;;  %v7187_v14 = vrot.slane %v7185_v15, 1 }
 0x514   : > { %9524 = vmatprep.mubr.bf16.mxu1 %v7080_v51  ;;  %9553 = vmatpush3.bf16.msra.mxu1 %v10268_v30  ;;  %v12005_v30 = vld [vmem:[#allocation3 + $0x108] sm:$0x1]  ;;  %v7176_v59 = vsel %vm884_vm4, %v11874_v26, %v7175_v49  ;;  %v7202_v51 = vshrl.u32 %v11946_v11, 16  ;;  %v7536_v11 = vrot.slane %v11937_v0, 1  ;;  %v7491_v0 = vld [vmem:[#allocation3 + $0x60] sm:$0xfe] }
 0x515   : > { %9554 = vmatprep.subr.bf16.mxu1 %v10269_v22  ;;  %v7197_v53 = vshll.u32 %v12005_v30, 16  ;;  %v7188_v41 = vsel %vm884_vm4, %v11877_v21, %v7187_v14  ;;  %v7547_v58 = vrot.slane %v7491_v0, 1  ;;  %v7565_v49 = vrot.slane %v7497_v39, 1 }
 0x516   : > { %v7207_v50 = vor.u32 %v7206_v4, %v7202_v51  ;;  %v7537_v18 = vsel %vm1576_vm8, %v7535_v31, %v7536_v11  ;;  %v7571_v14 = vrot.slane %v7499_v35, 1  ;;  %v7569_v51 = vrot.slane %v11991_v57, 1 }
 0x517   : > { %v7199_v29 = vrot.slane %v7197_v53, 1  ;;  %v7572_v4 = vrot.slane %v11995_v55, 1  ;;  %v7580_v31 = vrot.slane %v7502_v1, 1 }
 0x518   : > { %9555 = vmatpush3.bf16.msra.mxu1 %v10269_v22  ;;  %v12012_v22 = vld [vmem:[#allocation3 + $0x118] sm:$0x1] }
 0x519   : > { %9556 = vmatprep.subr.bf16.mxu1 %v10270_v46  ;;  %v7209_v6 = vshll.u32 %v12012_v22, 16  ;;  %v7200_v26 = vsel %vm884_vm4, %v11887_v7, %v7199_v29  ;;  %v7542_v7 = vrot.slane %v11944_v34, 1  ;;  %v7492_v34 = vld [vmem:[#allocation3 + $0x70] sm:$0xfe]  ;;  %v7501_v29 = vld [vmem:[#allocation3 + $0x100] sm:$0xfe] }
 0x51a   : > { %v7550_v36 = vrot.slane %v7492_v34, 1 }
 0x51b   : > { %9525 = vmatmul.mubr.bf16.gmra.mrb[8].mxu1 %v7092_v63  ;;  %v7489_v63 = vld [vmem:[#allocation3 + $0x40] sm:$0xfe] }
 0x51c   : > { %9528 = vmatprep.mubr.bf16.mxu1 %v7104_v20  ;;  %9557 = vmatpush3.bf16.msra.mxu1 %v10270_v46  ;;  %v7211_v46 = vrot.slane %v7209_v6, 1  ;;  %v7541_v45 = vrot.slane %v7489_v63, 1  ;;  %v7539_v20 = vrot.slane %v11942_v54, 1  ;;  %v7549_v54 = vsel %vm1576_vm8, %v7547_v58, %v7548_v60 }
 0x51d   : > { %9558 = vmatprep.subr.bf16.mxu1 %v10271_v9 }
 0x51e   : > { %v7212_v13 = vsel %vm884_vm4, %v7207_v50, %v7211_v46  ;;  %v7543_v19 = vsel %vm1576_vm8, %v7541_v45, %v7542_v7  ;;  %v7575_v50 = vrot.slane %v12001_v2, 1  ;;  %v7578_v46 = vrot.slane %v12005_v30, 1  ;;  %v12057_v2 = vld [vmem:[%s12135_s4] ss:$0 sm:$0xff] }
 0x520   : > { %9559 = vmatpush3.bf16.msra.mxu1 %v10271_v9  ;;  %v7488_v9 = vld [vmem:[#allocation3 + $0x30] sm:$0xfe] }
 0x521   : > { %9560 = vmatprep.subr.bf16.mxu1 %v10272_v56  ;;  %v7538_v21 = vrot.slane %v7488_v9, 1 }
 0x523   : > { %9529 = vmatmul.mubr.bf16.gmra.mrb[12].mxu1 %v7116_v33  ;;  %v7540_v17 = vsel %vm1576_vm8, %v7538_v21, %v7539_v20  ;;  %v7551_v33 = vrot.slane %v11963_v28, 1 }
 0x524   : > { %9532 = vmatprep.mubr.bf16.mxu1 %v7128_v27  ;;  %9561 = vmatpush3.bf16.msra.mxu1 %v10272_v56  ;;  %v7545_v56 = vrot.slane %v11953_v62, 1  ;;  %v7554_v27 = vrot.slane %v11967_v24, 1  ;;  %v7496_v24 = vld [vmem:[#allocation3 + $0xb0] sm:$0xfe] }
 0x525   : > { %9562 = vmatprep.subr.bf16.mxu1 %v10273_v43  ;;  %v7552_v12 = vsel %vm1576_vm8, %v7550_v36, %v7551_v33  ;;  %v7562_v61 = vrot.slane %v7496_v24, 1 }
 0x526   : > { %v7546_v32 = vsel %vm1576_vm8, %v7544_v38, %v7545_v56 }
 0x528   : > { %9563 = vmatpush3.bf16.msra.mxu1 %v10273_v43  ;;  %v7553_v43 = vrot.slane %v7493_v42, 1 }
 0x52a   : > { %v7555_v62 = vsel %vm1576_vm8, %v7553_v43, %v7554_v27 }
 0x52b   : > { %9533 = vmatmul.mubr.bf16.gmra.mrb[16].mxu1 %v7140_v48  ;;  %v7557_v48 = vrot.slane %v11973_v44, 1 }
 0x52c   : > { %9536 = vmatprep.mubr.bf16.mxu1 %v7152_v5  ;;  %v7560_v5 = vrot.slane %v11977_v52, 1  ;;  %v7498_v52 = vld [vmem:[#allocation3 + $0xd0] sm:$0xfe] }
 0x52d   : > { %v7558_v3 = vsel %vm1576_vm8, %v7556_v25, %v7557_v48  ;;  %v7568_v53 = vrot.slane %v7498_v52, 1 }
 0x52e   : > { %v7561_v28 = vsel %vm1576_vm8, %v7559_v8, %v7560_v5 }
 0x52f   : > { %v7570_v6 = vsel %vm1576_vm8, %v7568_v53, %v7569_v51 }
 0x533   : > { %9537 = vmatmul.mubr.bf16.gmra.mrb[20].mxu1 %v7164_v40  ;;  %v7563_v40 = vrot.slane %v11983_v47, 1  ;;  %v7573_v47 = vsel %vm1576_vm8, %v7571_v14, %v7572_v4 }
 0x534   : > { %9540 = vmatprep.mubr.bf16.mxu1 %v7176_v59  ;;  %v7566_v59 = vrot.slane %v11986_v37, 1  ;;  %v7500_v37 = vld [vmem:[#allocation3 + $0xf0] sm:$0xfe] }
 0x535   : > { %v7564_v15 = vsel %vm1576_vm8, %v7562_v61, %v7563_v40 }
 0x536   : > { %v7567_v44 = vsel %vm1576_vm8, %v7565_v49, %v7566_v59 }
 0x53b   : > { %9541 = vmatmul.mubr.bf16.gmra.mrb[24].mxu1 %v7188_v41  ;;  %v7574_v41 = vrot.slane %v7500_v37, 1 }
 0x53c   : > { %9544 = vmatprep.mubr.bf16.mxu1 %v7200_v26  ;;  %v7577_v26 = vrot.slane %v7501_v29, 1 }
 0x53d   : > { %v7576_v57 = vsel %vm1576_vm8, %v7574_v41, %v7575_v50 }
 0x53e   : > { %v7579_v55 = vsel %vm1576_vm8, %v7577_v26, %v7578_v46 }
 0x543   : > { %9545 = vmatmul.mubr.bf16.gmra.mrb[28].mxu1 %v7212_v13  ;;  %v7581_v13 = vrot.slane %v12012_v22, 1 }
 0x544   : > { %9564 = vmatprep.mubr.bf16.mxu1 %v7537_v18 }
 0x545   : > { %v7582_v11 = vsel %vm1576_vm8, %v7580_v31, %v7581_v13 }
 0x54b   : > { %9565 = vmatmul.mubr.bf16.vlgmr.msra.gmra.mrb[0].mxu1 %v7540_v17 }
 0x54c   : > { %9568 = vmatprep.mubr.bf16.mxu1 %v7543_v19 }
 0x553   : > { %9569 = vmatmul.mubr.bf16.gmra.mrb[4].mxu1 %v7546_v32 }
 0x554   : > { %9572 = vmatprep.mubr.bf16.mxu1 %v7549_v54 }
 0x55b   : > { %9573 = vmatmul.mubr.bf16.gmra.mrb[8].mxu1 %v7552_v12 }
 0x55c   : > { %9576 = vmatprep.mubr.bf16.mxu1 %v7555_v62 }
 0x563   : > { %9577 = vmatmul.mubr.bf16.gmra.mrb[12].mxu1 %v7558_v3 }
 0x564   : > { %9580 = vmatprep.mubr.bf16.mxu1 %v7561_v28 }
 0x56b   : > { %9581 = vmatmul.mubr.bf16.gmra.mrb[16].mxu1 %v7564_v15 }
 0x56c   : > { %9584 = vmatprep.mubr.bf16.mxu1 %v7567_v44 }
 0x573   : > { %9585 = vmatmul.mubr.bf16.gmra.mrb[20].mxu1 %v7570_v6 }
 0x574   : > { %9588 = vmatprep.mubr.bf16.mxu1 %v7573_v47 }
 0x57b   : > { %9589 = vmatmul.mubr.bf16.gmra.mrb[24].mxu1 %v7576_v57 }
 0x57c   : > { %9592 = vmatprep.mubr.bf16.mxu1 %v7579_v55 }
 0x583   : > { %9593 = vmatmul.mubr.bf16.gmra.mrb[28].mxu1 %v7582_v11 }
 0x61e   : > { %v9566_v30 = vpop.f32.mrb[0].mxu1 }
 0x61f   : > { %v7866_v22 = vadd.f32 %v9566_v30, %v12057_v2  ;;  %v7698_v18 = vpop.f32.mrb[1].mxu1 }
 0x620   : > { %v7864_v9 = vadd.f32 %v12057_v2, %v7698_v18  ;;  %v9567_v63 = vpop.f32.mrb[2].mxu1 }
 0x621   : > { %7898 = vst [vmem:[%s12062_s6 + $0x10] sm:$0xff] %v7866_v22  ;;  %v7867_v21 = vadd.f32 %v9567_v63, %v12057_v2  ;;  %v7701_v45 = vpop.f32.mrb[3].mxu1 }
 0x622   : > { %7896 = vst [vmem:[%s12062_s6] sm:$0xff] %v7864_v9  ;;  %v7865_v20 = vadd.f32 %v12057_v2, %v7701_v45 }
 0x623   : > { %7899 = vst [vmem:[%s12062_s6 + $0x18] sm:$0xff] %v7867_v21 }
 0x624   : > { %7897 = vst [vmem:[%s12062_s6 + $0x8] sm:$0xff] %v7865_v20 }
 0x626   : > { %v9570_v7 = vpop.f32.mrb[4].mxu1 }
 0x627   : > { %v7870_v17 = vadd.f32 %v9570_v7, %v12057_v2  ;;  %v7714_v19 = vpop.f32.mrb[5].mxu1 }
 0x628   : > { %v7868_v10 = vadd.f32 %v12057_v2, %v7714_v19  ;;  %v9571_v0 = vpop.f32.mrb[6].mxu1 }
 0x629   : > { %7902 = vst [vmem:[%s12062_s6 + $0x30] sm:$0xff] %v7870_v17  ;;  %v7871_v38 = vadd.f32 %v9571_v0, %v12057_v2  ;;  %v7717_v58 = vpop.f32.mrb[7].mxu1 }
 0x62a   : > { %7900 = vst [vmem:[%s12062_s6 + $0x20] sm:$0xff] %v7868_v10  ;;  %v7869_v56 = vadd.f32 %v12057_v2, %v7717_v58 }
 0x62b   : > { %7903 = vst [vmem:[%s12062_s6 + $0x38] sm:$0xff] %v7871_v38 }
 0x62c   : > { %7901 = vst [vmem:[%s12062_s6 + $0x28] sm:$0xff] %v7869_v56 }
 0x62e   : > { %v9574_v60 = vpop.f32.mrb[8].mxu1 }
 0x62f   : > { %v7874_v32 = vadd.f32 %v9574_v60, %v12057_v2  ;;  %v7730_v54 = vpop.f32.mrb[9].mxu1 }
 0x630   : > { %v7872_v34 = vadd.f32 %v12057_v2, %v7730_v54  ;;  %v9575_v42 = vpop.f32.mrb[10].mxu1 }
 0x631   : > { %7906 = vst [vmem:[%s12062_s6 + $0x50] sm:$0xff] %v7874_v32  ;;  %v7875_v36 = vadd.f32 %v9575_v42, %v12057_v2  ;;  %v7733_v43 = vpop.f32.mrb[11].mxu1 }
 0x632   : > { %7904 = vst [vmem:[%s12062_s6 + $0x40] sm:$0xff] %v7872_v34  ;;  %v7873_v33 = vadd.f32 %v12057_v2, %v7733_v43 }
 0x633   : > { %7907 = vst [vmem:[%s12062_s6 + $0x58] sm:$0xff] %v7875_v36 }
 0x634   : > { %7905 = vst [vmem:[%s12062_s6 + $0x48] sm:$0xff] %v7873_v33 }
 0x636   : > { %v9578_v27 = vpop.f32.mrb[12].mxu1 }
 0x637   : > { %v7878_v12 = vadd.f32 %v9578_v27, %v12057_v2  ;;  %v7746_v62 = vpop.f32.mrb[13].mxu1 }
 0x638   : > { %v7876_v23 = vadd.f32 %v12057_v2, %v7746_v62  ;;  %v9579_v16 = vpop.f32.mrb[14].mxu1 }
 0x639   : > { %7910 = vst [vmem:[%s12062_s6 + $0x70] sm:$0xff] %v7878_v12  ;;  %v7879_v25 = vadd.f32 %v9579_v16, %v12057_v2  ;;  %v7749_v8 = vpop.f32.mrb[15].mxu1 }
 0x63a   : > { %7908 = vst [vmem:[%s12062_s6 + $0x60] sm:$0xff] %v7876_v23  ;;  %v7877_v48 = vadd.f32 %v12057_v2, %v7749_v8 }
 0x63b   : > { %7911 = vst [vmem:[%s12062_s6 + $0x78] sm:$0xff] %v7879_v25 }
 0x63c   : > { %7909 = vst [vmem:[%s12062_s6 + $0x68] sm:$0xff] %v7877_v48 }
 0x63e   : > { %v9582_v5 = vpop.f32.mrb[16].mxu1 }
 0x63f   : > { %v7882_v3 = vadd.f32 %v9582_v5, %v12057_v2  ;;  %v7762_v28 = vpop.f32.mrb[17].mxu1 }
 0x640   : > { %v7880_v24 = vadd.f32 %v12057_v2, %v7762_v28  ;;  %v9583_v39 = vpop.f32.mrb[18].mxu1 }
 0x641   : > { %7914 = vst [vmem:[%s12062_s6 + $0x90] sm:$0xff] %v7882_v3  ;;  %v7883_v61 = vadd.f32 %v9583_v39, %v12057_v2  ;;  %v7765_v49 = vpop.f32.mrb[19].mxu1 }
 0x642   : > { %7912 = vst [vmem:[%s12062_s6 + $0x80] sm:$0xff] %v7880_v24  ;;  %v7881_v40 = vadd.f32 %v12057_v2, %v7765_v49 }
 0x643   : > { %7915 = vst [vmem:[%s12062_s6 + $0x98] sm:$0xff] %v7883_v61 }
 0x644   : > { %7913 = vst [vmem:[%s12062_s6 + $0x88] sm:$0xff] %v7881_v40 }
 0x646   : > { %v9586_v59 = vpop.f32.mrb[20].mxu1 }
 0x647   : > { %v7886_v15 = vadd.f32 %v9586_v59, %v12057_v2  ;;  %v7778_v44 = vpop.f32.mrb[21].mxu1 }
 0x648   : > { %v7884_v52 = vadd.f32 %v12057_v2, %v7778_v44  ;;  %v9587_v35 = vpop.f32.mrb[22].mxu1 }
 0x649   : > { %7918 = vst [vmem:[%s12062_s6 + $0xb0] sm:$0xff] %v7886_v15  ;;  %v7887_v53 = vadd.f32 %v9587_v35, %v12057_v2  ;;  %v7781_v14 = vpop.f32.mrb[23].mxu1 }
 0x64a   : > { %7916 = vst [vmem:[%s12062_s6 + $0xa0] sm:$0xff] %v7884_v52  ;;  %v7885_v51 = vadd.f32 %v12057_v2, %v7781_v14 }
 0x64b   : > { %7919 = vst [vmem:[%s12062_s6 + $0xb8] sm:$0xff] %v7887_v53 }
 0x64c   : > { %7917 = vst [vmem:[%s12062_s6 + $0xa8] sm:$0xff] %v7885_v51 }
 0x64e   : > { %v9590_v4 = vpop.f32.mrb[24].mxu1 }
 0x64f   : > { %v7890_v6 = vadd.f32 %v9590_v4, %v12057_v2  ;;  %v7794_v47 = vpop.f32.mrb[25].mxu1 }
 0x650   : > { %v7888_v37 = vadd.f32 %v12057_v2, %v7794_v47  ;;  %v9591_v29 = vpop.f32.mrb[26].mxu1 }
 0x651   : > { %7922 = vst [vmem:[%s12062_s6 + $0xd0] sm:$0xff] %v7890_v6  ;;  %v7891_v41 = vadd.f32 %v9591_v29, %v12057_v2  ;;  %v7797_v26 = vpop.f32.mrb[27].mxu1 }
 0x652   : > { %7920 = vst [vmem:[%s12062_s6 + $0xc0] sm:$0xff] %v7888_v37  ;;  %v7889_v50 = vadd.f32 %v12057_v2, %v7797_v26 }
 0x653   : > { %7923 = vst [vmem:[%s12062_s6 + $0xd8] sm:$0xff] %v7891_v41 }
 0x654   : > { %7921 = vst [vmem:[%s12062_s6 + $0xc8] sm:$0xff] %v7889_v50 }
 0x656   : > { %v9594_v46 = vpop.f32.mrb[28].mxu1 }
 0x657   : > { %v7894_v1 = vadd.f32 %v9594_v46, %v12057_v2  ;;  %v7810_v57 = vpop.f32.mrb[29].mxu1 }
 0x658   : > { %v7892_v55 = vadd.f32 %v12057_v2, %v7810_v57  ;;  %v9595_v31 = vpop.f32.mrb[30].mxu1 }
 0x659   : > { %7926 = vst [vmem:[%s12062_s6 + $0xf0] sm:$0xff] %v7894_v1  ;;  %v7895_v13 = vadd.f32 %v9595_v31, %v12057_v2  ;;  %v7813_v11 = vpop.f32.mrb[31].mxu1 }
 0x65a   : > { %7924 = vst [vmem:[%s12062_s6 + $0xe0] sm:$0xff] %v7892_v55  ;;  %v7893_v30 = vadd.f32 %v12057_v2, %v7813_v11 }
 0x65b   : > { %7927 = vst [vmem:[%s12062_s6 + $0xf8] sm:$0xff] %v7895_v13 }
 0x65c   : > { %7925 = vst [vmem:[%s12062_s6 + $0xe8] sm:$0xff] %v7893_v30 }
 0x65d PF: > { %s16_s18 = sadd.s32 1, %s10334_s18  }
 0x65e   : > { %p13_p3 = scmp.ge.s32.totalorder %s16_s18, 4  }
 0x660   :  { %15 = sbr.rel (!%p13_p3) target bundleno = 1 (0x1), region = 97 }
 0x667   :  { %7949 = vsyncpa [#allocation5], 1 }
 0x668   :  { %7951 = vsyncpa [#allocation5 + $0x1], 1 }

</bundles_post_ra>
